<compile_context>
chip_gen: v7x
topology: tpu7x:2x2x1
jax: 0.10.0
libtpu: 0.0.40
codegen_flags: <defaults>
</compile_context>

<pallas_src>
import functools

import jax
import jax.numpy as jnp
from jax import lax
from jax.experimental import pallas as pl
from jax.experimental.pallas import tpu as pltpu

_EPS = 1e-5            # PyTorch GroupNorm default eps
_LANE = 128


def _gelu_tanh(x):
    # TODO(synk): PyTorch F.gelu defaults to the exact erf GELU; erf has no guaranteed
    # Mosaic lowering, so the tanh approximation is used (the in-script reference matches).
    c = jnp.float32(0.7978845608028654)  # sqrt(2/pi)
    return 0.5 * x * (1.0 + jnp.tanh(c * (x + 0.044715 * x * x * x)))


def _round_up(v, m):
    return (v + m - 1) // m * m


def _vmem_limit_bytes():
    """Generation-aware vmem request: ~3/4 of physical VMEM, capped at 100 MiB."""
    cap = 128 * 1024 * 1024  # v5e/v6e default if query unavailable
    try:
        info = pltpu.get_tpu_info()
        cap = int(getattr(info, "vmem_capacity_bytes", cap))
    except Exception:
        pass
    return min(cap * 3 // 4, 100 * 1024 * 1024)   # 48 MiB on v7x (64 MiB), 96 MiB on v5e/v6e


def _pick_tile_rows(H, W, c_in, c_pad, budget_bytes, min_tiles=1):
    """Largest divisor of H whose per-tile VMEM working set stays under budget."""
    # Rough f32 bytes per output row for the per-tap conv path:
    #   2x double-buffered input rows + haloed block + one tap slice + f32 accumulator
    #   + 2x double-buffered output rows; 1.5x slack for relayout temporaries.
    per_row = 4 * W * (2 * c_in + 2 * c_in + c_in + c_pad + 2 * c_pad)
    per_row = per_row * 3 // 2
    cap = max(1, budget_bytes // max(per_row, 1))
    cap = min(cap, max(1, H // max(min_tiles, 1)))
    best = 1
    for d in range(1, H + 1):
        if H % d == 0 and d <= cap:
            best = d
    return best


def _resident_spec(shape, index_map):
    """Grid-invariant block: single-buffer it (double-buffering a constant block is waste)."""
    if hasattr(pl, "Buffered"):
        try:
            return pl.BlockSpec(shape, index_map, pipeline_mode=pl.Buffered(1))
        except TypeError:   # older jax without pipeline_mode kwarg
            pass
    return pl.BlockSpec(shape, index_map)


# --------------------------------------------------------------------------------------
# Pass 1 / 2: 3x3 conv (per-tap accumulated matmuls over a haloed row tile) + GN partials.
# Pass 2 additionally applies the previous GroupNorm + GELU on the fly to its input.
# --------------------------------------------------------------------------------------
def _make_conv_kernel(TH, W, C, Cpad, pre_norm, mm_dtype):
    use_patches = C < 64   # tiny contraction dim: fuse the 9 taps into one K=9*C matmul

    def kernel(*refs):
        if pre_norm:
            above_ref, body_ref, below_ref, w_ref, scale_ref, shift_ref, y_ref, stat_ref = refs
        else:
            above_ref, body_ref, below_ref, w_ref, y_ref, stat_ref = refs
        i = pl.program_id(1)
        n_tiles = pl.num_programs(1)

        top = above_ref[0].astype(jnp.float32)     # (1, W, C)   row i*TH-1 (clamped)
        mid = body_ref[0].astype(jnp.float32)      # (TH, W, C)  rows [i*TH, i*TH+TH)
        bot = below_ref[0].astype(jnp.float32)     # (1, W, C)   row i*TH+TH (clamped)
        xh = jnp.concatenate([top, mid, bot], axis=0)            # (TH+2, W, C)

        if pre_norm:
            # Fused GroupNorm(1)-apply + GELU of the previous stage, applied ONCE to the
            # whole haloed block (per-sample scale/shift, hoisted broadcast).
            xh = _gelu_tanh(xh * scale_ref[0] + shift_ref[0])

        # Zero halo rows that fall outside the image (conv zero padding); must happen
        # AFTER the fused normalization so padding stays exactly zero.
        top_row = jnp.where(i == 0, jnp.zeros((1, W, C), jnp.float32), xh[0:1])
        bot_row = jnp.where(i == n_tiles - 1,
                            jnp.zeros((1, W, C), jnp.float32), xh[TH + 1:TH + 2])
        xh = jnp.concatenate([top_row, xh[1:TH + 1], bot_row], axis=0)

        zcol = jnp.zeros((TH + 2, 1, C), jnp.float32)
        xb = jnp.concatenate([zcol, xh, zcol], axis=1)           # (TH+2, W+2, C)
        xb = xb.astype(mm_dtype)                                 # bf16 operands on v6e/v7x
        w = w_ref[...]                                           # (9*C, Cpad), mm_dtype

        if use_patches:
            patches = jnp.concatenate(
                [xb[kh:kh + TH, kw:kw + W, :] for kh in range(3) for kw in range(3)],
                axis=-1).reshape(TH * W, 9 * C)
            y = jnp.dot(patches, w, preferred_element_type=jnp.float32)  # (TH*W, Cpad)
        else:
            # Accumulate over the 9 taps: no im2col buffer, peak VMEM ~ one input tile.
            y = jnp.zeros((TH * W, Cpad), jnp.float32)
            for t, (kh, kw) in enumerate((a, b) for a in range(3) for b in range(3)):
                xs = xb[kh:kh + TH, kw:kw + W, :].reshape(TH * W, C)
                y = y + jnp.dot(xs, w[t * C:(t + 1) * C, :],
                                preferred_element_type=jnp.float32)

        # GroupNorm(1) partial statistics for this tile (padded channels are exactly 0).
        s = jnp.sum(y)
        ss = jnp.sum(y * y)
        stat_ref[0, 0] = jnp.concatenate(
            [jnp.full((1, _LANE), s, jnp.float32),
             jnp.full((1, _LANE), ss, jnp.float32)], axis=0)

        y_ref[0] = y.reshape(TH, W, Cpad).astype(y_ref.dtype)

    return kernel


def _conv_pass(x_nhwc, w_mat, scale=None, shift=None, *, tile_rows, out_dtype,
               mm_dtype, vmem_limit):
    N, H, W, C = x_nhwc.shape
    K2, Cpad = w_mat.shape
    assert K2 == 9 * C
    TH = tile_rows
    assert H % TH == 0
    T = H // TH
    pre = scale is not None

    in_specs = [
        # one halo row above (clamped; zeroed in-kernel when outside the image)
        pl.BlockSpec((1, 1, W, C), lambda n, i: (n, jnp.maximum(i * TH - 1, 0), 0, 0)),
        # body tile
        pl.BlockSpec((1, TH, W, C), lambda n, i: (n, i, 0, 0)),
        # one halo row below (clamped)
        pl.BlockSpec((1, 1, W, C), lambda n, i: (n, jnp.minimum(i * TH + TH, H - 1), 0, 0)),
        # full weight matrix, resident across the grid -> single buffer
        _resident_spec((K2, Cpad), lambda n, i: (0, 0)),
    ]
    args = [x_nhwc, x_nhwc, x_nhwc, w_mat]
    if pre:
        in_specs += [pl.BlockSpec((1, 1, Cpad), lambda n, i: (n, 0, 0)),
                     pl.BlockSpec((1, 1, Cpad), lambda n, i: (n, 0, 0))]
        args += [scale, shift]

    y, stats = pl.pallas_call(
        _make_conv_kernel(TH, W, C, Cpad, pre, mm_dtype),
        grid=(N, T),
        in_specs=in_specs,
        out_specs=(pl.BlockSpec((1, TH, W, Cpad), lambda n, i: (n, i, 0, 0)),
                   pl.BlockSpec((1, 1, 2, _LANE), lambda n, i: (n, i, 0, 0))),
        out_shape=(jax.ShapeDtypeStruct((N, H, W, Cpad), out_dtype),
                   jax.ShapeDtypeStruct((N, T, 2, _LANE), jnp.float32)),
        compiler_params=pltpu.CompilerParams(
            dimension_semantics=("parallel", "parallel"),
            vmem_limit_bytes=vmem_limit),
    )(*args)
    return y, stats


def _gn_stats(stats, count):
    """Reduce per-tile (sum, sumsq) partials -> per-sample (mean, rstd)."""
    s = jnp.sum(stats[:, :, 0, 0], axis=1)
    ss = jnp.sum(stats[:, :, 1, 0], axis=1)
    mean = s / count
    # TODO(synk): single-pass E[y^2]-mean^2 loses precision for huge activations;
    # a Welford-style per-tile reduction would be more robust.
    var = jnp.maximum(ss / count - mean * mean, 0.0)
    rstd = lax.rsqrt(var + _EPS)
    return mean, rstd


# --------------------------------------------------------------------------------------
# Pass 3: pointwise GroupNorm2-apply [+ residual] [+ GELU], writing UNPADDED Cout lanes.
# --------------------------------------------------------------------------------------
def _make_finalize_kernel(Cout, residual, apply_gelu):
    def kernel(*refs):
        if residual:
            y_ref, s_ref, t_ref, r_ref, o_ref = refs
        else:
            y_ref, s_ref, t_ref, o_ref = refs
        z = y_ref[0].astype(jnp.float32)[:, :, :Cout]      # drop padded lanes before pointwise
        z = z * s_ref[0] + t_ref[0]
        if residual:
            z = z + r_ref[0].astype(jnp.float32)           # unpadded residual, added in-kernel
        if apply_gelu:
            z = _gelu_tanh(z)
        o_ref[0] = z.astype(o_ref.dtype)

    return kernel


def _finalize_pass(y, scale, shift, x_res, apply_gelu, *, tile_rows, out_channels, vmem_limit):
    N, H, W, Cpad = y.shape
    TH = tile_rows
    T = H // TH
    Cout = out_channels
    residual = x_res is not None

    in_specs = [
        pl.BlockSpec((1, TH, W, Cpad), lambda n, i: (n, i, 0, 0)),
        pl.BlockSpec((1, 1, Cout), lambda n, i: (n, 0, 0)),
        pl.BlockSpec((1, 1, Cout), lambda n, i: (n, 0, 0)),
    ]
    args = [y, scale, shift]
    if residual:
        in_specs.append(pl.BlockSpec((1, TH, W, Cout), lambda n, i: (n, i, 0, 0)))
        args.append(x_res)

    return pl.pallas_call(
        _make_finalize_kernel(Cout, residual, apply_gelu),
        grid=(N, T),
        in_specs=in_specs,
        out_specs=pl.BlockSpec((1, TH, W, Cout), lambda n, i: (n, i, 0, 0)),
        out_shape=jax.ShapeDtypeStruct((N, H, W, Cout), jnp.float32),
        compiler_params=pltpu.CompilerParams(
            dimension_semantics=("parallel", "parallel"),
            vmem_limit_bytes=vmem_limit),
    )(*args)


# --------------------------------------------------------------------------------------
# Parameters / forward / reference
# --------------------------------------------------------------------------------------
def init_double_conv_params(key, in_channels, out_channels, dtype=jnp.float32):
    """Deterministic synthetic init matching the PyTorch module's parameter shapes."""
    k1, k2 = jax.random.split(key)
    b1 = 1.0 / (in_channels * 9) ** 0.5
    b2 = 1.0 / (out_channels * 9) ** 0.5
    return {
        "w1": jax.random.uniform(k1, (out_channels, in_channels, 3, 3), dtype, -b1, b1),
        "w2": jax.random.uniform(k2, (out_channels, out_channels, 3, 3), dtype, -b2, b2),
        "g1": jnp.ones((out_channels,), dtype),
        "b1": jnp.zeros((out_channels,), dtype),
        "g2": jnp.ones((out_channels,), dtype),
        "b2": jnp.zeros((out_channels,), dtype),
    }


@functools.partial(jax.jit,
                   static_argnames=("residule", "tile_rows", "compute_dtype", "channels_last"))
def double_conv_forward(x_nchw, params, residule=False, tile_rows=None,
                        compute_dtype=jnp.float32, channels_last=False):
    N, Cin, H, W = x_nchw.shape
    Cout = params["w1"].shape[0]
    Cpad = _round_up(Cout, _LANE)
    # TODO(synk): for Cout > 192 not a 256-multiple, padding to 256 would fill the
    # v6e/v7x 256-wide MXU better; 128 keeps v5e exact and avoids burning extra FLOPs.
    vmem_limit = _vmem_limit_bytes()

    if tile_rows is None:
        # Budget = vmem request minus resident weights (count 2 buffers to be safe) - headroom.
        w_bytes = 2 * 9 * Cpad * Cpad * jnp.dtype(compute_dtype).itemsize
        budget = max(1 << 20, vmem_limit - w_bytes - 4 * 1024 * 1024)
        min_tiles = 2 if N == 1 else 1     # give both v7x TensorCores work when N == 1
        tile_rows = _pick_tile_rows(H, W, Cpad, Cpad, budget, min_tiles)
    TH = tile_rows
    assert H % TH == 0, (H, TH)

    # TODO(synk): the NCHW<->NHWC glue transposes are still XLA-level HBM round trips;
    # callers that can consume NHWC should pass channels_last=True (skips the output one).
    x_nhwc = jnp.transpose(x_nchw, (0, 2, 3, 1))  # NCHW -> NHWC

    # Weights OIHW -> (kh, kw, ci, co) -> [9*C_in, Cpad]; zero-pad co (and ci for conv2)
    # so the matmul output / intermediate stores are lane-dense.  Stored in compute_dtype.
    w1 = jnp.transpose(params["w1"], (2, 3, 1, 0))                       # (3,3,Cin,Cout)
    w1 = jnp.pad(w1, ((0, 0), (0, 0), (0, 0), (0, Cpad - Cout)))
    w1 = w1.reshape(9 * Cin, Cpad).astype(compute_dtype)
    w2 = jnp.transpose(params["w2"], (2, 3, 1, 0))                       # (3,3,Cout,Cout)
    w2 = jnp.pad(w2, ((0, 0), (0, 0), (0, Cpad - Cout), (0, Cpad - Cout)))
    w2 = w2.reshape(9 * Cpad, Cpad).astype(compute_dtype)

    g1 = jnp.pad(params["g1"].astype(jnp.float32), (0, Cpad - Cout))
    b1 = jnp.pad(params["b1"].astype(jnp.float32), (0, Cpad - Cout))
    g2 = params["g2"].astype(jnp.float32)
    b2 = params["b2"].astype(jnp.float32)

    count = H * W * Cout  # GroupNorm(1) normalizes over all real C*H*W elements per sample

    # conv1 + GN1 partial stats
    y1, st1 = _conv_pass(x_nhwc, w1, tile_rows=TH, out_dtype=compute_dtype,
                         mm_dtype=compute_dtype, vmem_limit=vmem_limit)
    mean1, rstd1 = _gn_stats(st1, count)
    scale1 = (rstd1[:, None] * g1[None, :]).reshape(N, 1, Cpad)
    shift1 = (b1[None, :] - mean1[:, None] * rstd1[:, None] * g1[None, :]).reshape(N, 1, Cpad)

    # (GN1-apply + GELU fused into the read) + conv2 + GN2 partial stats
    y2, st2 = _conv_pass(y1, w2, scale1, shift1, tile_rows=TH, out_dtype=compute_dtype,
                         mm_dtype=compute_dtype, vmem_limit=vmem_limit)
    mean2, rstd2 = _gn_stats(st2, count)
    scale2 = (rstd2[:, None] * g2[None, :]).reshape(N, 1, Cout)
    shift2 = (b2[None, :] - mean2[:, None] * rstd2[:, None] * g2[None, :]).reshape(N, 1, Cout)

    # GN2-apply [+ residual] [+ GELU]; output is unpadded NHWC straight from the kernel.
    if residule:
        assert Cin == Cout, "residual path requires in_channels == out_channels"
        out = _finalize_pass(y2, scale2, shift2, x_nhwc, True,
                             tile_rows=TH, out_channels=Cout, vmem_limit=vmem_limit)
    else:
        out = _finalize_pass(y2, scale2, shift2, None, False,
                             tile_rows=TH, out_channels=Cout, vmem_limit=vmem_limit)

    if channels_last:
        return out
    return jnp.transpose(out, (0, 3, 1, 2))  # -> NCHW


def _reference(x_nchw, params, residule=False):
    """Pure-JAX reference of the same forward (same tanh GELU) for a sanity check."""
    def conv(x, w):
        return lax.conv_general_dilated(
            x, w, window_strides=(1, 1), padding=((1, 1), (1, 1)),
            dimension_numbers=("NCHW", "OIHW", "NCHW"))

    def gn(x, g, b):
        mean = jnp.mean(x, axis=(1, 2, 3), keepdims=True)
        var = jnp.mean((x - mean) ** 2, axis=(1, 2, 3), keepdims=True)
        xn = (x - mean) * lax.rsqrt(var + _EPS)
        return xn * g[None, :, None, None] + b[None, :, None, None]

    h = _gelu_tanh(gn(conv(x_nchw, params["w1"]), params["g1"], params["b1"]))
    y = gn(conv(h, params["w2"]), params["g2"], params["b2"])
    return _gelu_tanh(y + x_nchw) if residule else y


if __name__ == "__main__":
    key = jax.random.PRNGKey(0)
    kx, kp, kx2, kp2 = jax.random.split(key, 4)

    # non-residual path (Cin != Cout); tile_rows=8 -> 2 spatial tiles exercises the halo logic
    N, Cin, Cout, H, W = 2, 4, 8, 16, 16
    x = jax.random.normal(kx, (N, Cin, H, W), jnp.float32)
    params = init_double_conv_params(kp, Cin, Cout)
    out = jax.block_until_ready(double_conv_forward(x, params, residule=False, tile_rows=8))
    assert out.shape == (N, Cout, H, W), out.shape
    ref = _reference(x, params, residule=False)
    err = float(jnp.max(jnp.abs(out - ref)))
    if err > 2e-2:
        raise AssertionError(f"non-residual mismatch vs reference: max abs err {err}")

    # residual path (requires Cin == Cout); auto-picked tile_rows exercises the sizing logic
    C = 8
    xr = jax.random.normal(kx2, (N, C, H, W), jnp.float32)
    params_r = init_double_conv_params(kp2, C, C)
    out_r = jax.block_until_ready(double_conv_forward(xr, params_r, residule=True))
    assert out_r.shape == (N, C, H, W), out_r.shape
    ref_r = _reference(xr, params_r, residule=True)
    err_r = float(jnp.max(jnp.abs(out_r - ref_r)))
    if err_r > 2e-2:
        raise AssertionError(f"residual mismatch vs reference: max abs err {err_r}")

    # bf16 MXU operands + bf16 intermediates (v6e/v7x throughput, v5e HBM traffic):
    # loose tolerance, bf16 rounding through two convs + two GroupNorms.
    out_bf = jax.block_until_ready(
        double_conv_forward(xr, params_r, residule=True, tile_rows=8,
                            compute_dtype=jnp.bfloat16))
    err_bf = float(jnp.max(jnp.abs(out_bf - ref_r)))
    if not (err_bf < 3e-1):
        raise AssertionError(f"bf16 path mismatch vs reference: max abs err {err_bf}")

    print("KERNEL_OK")
</pallas_src>

<mosaic_0001>
module attributes {stable_mosaic.version = 11 : i64} {
  func.func @kernel(%arg0: i32, %arg1: i32, %arg2: memref<1x1x16x4xf32, #tpu.memory_space<vmem>>, %arg3: memref<1x8x16x4xf32, #tpu.memory_space<vmem>>, %arg4: memref<1x1x16x4xf32, #tpu.memory_space<vmem>>, %arg5: memref<36x128xf32, #tpu.memory_space<vmem>>, %arg6: memref<1x8x16x128xf32, #tpu.memory_space<vmem>>, %arg7: memref<1x1x2x128xf32, #tpu.memory_space<vmem>>) attributes {dimension_semantics = [#tpu.dimension_semantics<parallel>, #tpu.dimension_semantics<parallel>], iteration_bounds = array<i64: 2, 2>, scalar_prefetch = 0 : i64, scratch_operands = 0 : i64, tpu.core_type = #tpu.core_type<tc>, window_params = [{transform_indices = @transform_0, window_bounds = array<i64: 1, 1, 16, 4>}, {transform_indices = @transform_1, window_bounds = array<i64: 1, 8, 16, 4>}, {transform_indices = @transform_2, window_bounds = array<i64: 1, 1, 16, 4>}, {pipeline_mode = #tpu.pipeline_mode<synchronous>, transform_indices = @transform_3, window_bounds = array<i64: 36, 128>}, {transform_indices = @transform_4, window_bounds = array<i64: 1, 8, 16, 128>}, {transform_indices = @transform_5, window_bounds = array<i64: 1, 1, 2, 128>}]} {
    %c0 = arith.constant 0 : index
    %c0_0 = arith.constant 0 : index
    %c0_1 = arith.constant 0 : index
    %c0_2 = arith.constant 0 : index
    %0 = vector.load %arg2[%c0, %c0_0, %c0_1, %c0_2] : memref<1x1x16x4xf32, #tpu.memory_space<vmem>>, vector<1x1x16x4xf32>
    %1 = vector.shape_cast %0 : vector<1x1x16x4xf32> to vector<1x16x4xf32>
    %c0_3 = arith.constant 0 : index
    %c0_4 = arith.constant 0 : index
    %c0_5 = arith.constant 0 : index
    %c0_6 = arith.constant 0 : index
    %2 = vector.load %arg3[%c0_3, %c0_4, %c0_5, %c0_6] : memref<1x8x16x4xf32, #tpu.memory_space<vmem>>, vector<1x8x16x4xf32>
    %3 = vector.shape_cast %2 : vector<1x8x16x4xf32> to vector<8x16x4xf32>
    %c0_7 = arith.constant 0 : index
    %c0_8 = arith.constant 0 : index
    %c0_9 = arith.constant 0 : index
    %c0_10 = arith.constant 0 : index
    %4 = vector.load %arg4[%c0_7, %c0_8, %c0_9, %c0_10] : memref<1x1x16x4xf32, #tpu.memory_space<vmem>>, vector<1x1x16x4xf32>
    %5 = vector.shape_cast %4 : vector<1x1x16x4xf32> to vector<1x16x4xf32>
    %6 = tpu.concatenate %1, %3, %5 in 0 : vector<1x16x4xf32>, vector<8x16x4xf32>, vector<1x16x4xf32> -> vector<10x16x4xf32>
    %c0_i32 = arith.constant 0 : i32
    %7 = arith.cmpi eq, %arg1, %c0_i32 : i32
    %cst = arith.constant 0.000000e+00 : f32
    %8 = vector.broadcast %cst : f32 to vector<1x16x4xf32>
    %9 = vector.extract_strided_slice %6 {offsets = [0, 0, 0], sizes = [1, 16, 4], strides = [1, 1, 1]} : vector<10x16x4xf32> to vector<1x16x4xf32>
    %10 = arith.select %7, %8, %9 : vector<1x16x4xf32>
    %c1_i32 = arith.constant 1 : i32
    %11 = arith.cmpi eq, %arg1, %c1_i32 : i32
    %cst_11 = arith.constant 0.000000e+00 : f32
    %12 = vector.broadcast %cst_11 : f32 to vector<1x16x4xf32>
    %13 = vector.extract_strided_slice %6 {offsets = [9, 0, 0], sizes = [1, 16, 4], strides = [1, 1, 1]} : vector<10x16x4xf32> to vector<1x16x4xf32>
    %14 = arith.select %11, %12, %13 : vector<1x16x4xf32>
    %15 = vector.extract_strided_slice %6 {offsets = [1, 0, 0], sizes = [8, 16, 4], strides = [1, 1, 1]} : vector<10x16x4xf32> to vector<8x16x4xf32>
    %16 = tpu.concatenate %10, %15, %14 in 0 : vector<1x16x4xf32>, vector<8x16x4xf32>, vector<1x16x4xf32> -> vector<10x16x4xf32>
    %cst_12 = arith.constant 0.000000e+00 : f32
    %17 = vector.broadcast %cst_12 : f32 to vector<10x1x4xf32>
    %18 = tpu.concatenate %17, %16, %17 in 1 : vector<10x1x4xf32>, vector<10x16x4xf32>, vector<10x1x4xf32> -> vector<10x18x4xf32>
    %c0_13 = arith.constant 0 : index
    %c0_14 = arith.constant 0 : index
    %19 = vector.load %arg5[%c0_13, %c0_14] : memref<36x128xf32, #tpu.memory_space<vmem>>, vector<36x128xf32>
    %20 = vector.extract_strided_slice %18 {offsets = [0, 0, 0], sizes = [8, 16, 4], strides = [1, 1, 1]} : vector<10x18x4xf32> to vector<8x16x4xf32>
    %21 = vector.extract_strided_slice %18 {offsets = [0, 1, 0], sizes = [8, 16, 4], strides = [1, 1, 1]} : vector<10x18x4xf32> to vector<8x16x4xf32>
    %22 = vector.extract_strided_slice %18 {offsets = [0, 2, 0], sizes = [8, 16, 4], strides = [1, 1, 1]} : vector<10x18x4xf32> to vector<8x16x4xf32>
    %23 = vector.extract_strided_slice %18 {offsets = [1, 0, 0], sizes = [8, 16, 4], strides = [1, 1, 1]} : vector<10x18x4xf32> to vector<8x16x4xf32>
    %24 = vector.extract_strided_slice %18 {offsets = [1, 1, 0], sizes = [8, 16, 4], strides = [1, 1, 1]} : vector<10x18x4xf32> to vector<8x16x4xf32>
    %25 = vector.extract_strided_slice %18 {offsets = [1, 2, 0], sizes = [8, 16, 4], strides = [1, 1, 1]} : vector<10x18x4xf32> to vector<8x16x4xf32>
    %26 = vector.extract_strided_slice %18 {offsets = [2, 0, 0], sizes = [8, 16, 4], strides = [1, 1, 1]} : vector<10x18x4xf32> to vector<8x16x4xf32>
    %27 = vector.extract_strided_slice %18 {offsets = [2, 1, 0], sizes = [8, 16, 4], strides = [1, 1, 1]} : vector<10x18x4xf32> to vector<8x16x4xf32>
    %28 = vector.extract_strided_slice %18 {offsets = [2, 2, 0], sizes = [8, 16, 4], strides = [1, 1, 1]} : vector<10x18x4xf32> to vector<8x16x4xf32>
    %29 = tpu.concatenate %20, %21, %22, %23, %24, %25, %26, %27, %28 in 2 : vector<8x16x4xf32>, vector<8x16x4xf32>, vector<8x16x4xf32>, vector<8x16x4xf32>, vector<8x16x4xf32>, vector<8x16x4xf32>, vector<8x16x4xf32>, vector<8x16x4xf32>, vector<8x16x4xf32> -> vector<8x16x36xf32>
    %30 = vector.shape_cast %29 : vector<8x16x36xf32> to vector<128x36xf32>
    %cst_15 = arith.constant dense<0.000000e+00> : vector<128x128xf32>
    %31 = tpu.matmul %30, %19, %cst_15 {dimension_numbers = #tpu.dot_dimension_numbers<[1], [0], [0], [1], [0, 0, 1, 1], [], []>} : vector<128x36xf32>, vector<36x128xf32>, vector<128x128xf32> -> vector<128x128xf32>
    %32 = vector.shape_cast %31 : vector<128x128xf32> to vector<1x128x128xf32>
    %cst_16 = arith.constant dense<0.000000e+00> : vector<1xf32>
    %33 = vector.multi_reduction <add>, %32, %cst_16 [1, 2] : vector<1x128x128xf32> to vector<1xf32>
    %34 = vector.shape_cast %33 : vector<1xf32> to vector<1x1x1xf32>
    %35 = vector.extract %34[0, 0, 0] : f32 from vector<1x1x1xf32>
    %36 = arith.mulf %31, %31 : vector<128x128xf32>
    %37 = vector.shape_cast %36 : vector<128x128xf32> to vector<1x128x128xf32>
    %cst_17 = arith.constant dense<0.000000e+00> : vector<1xf32>
    %38 = vector.multi_reduction <add>, %37, %cst_17 [1, 2] : vector<1x128x128xf32> to vector<1xf32>
    %39 = vector.shape_cast %38 : vector<1xf32> to vector<1x1x1xf32>
    %40 = vector.extract %39[0, 0, 0] : f32 from vector<1x1x1xf32>
    %41 = vector.broadcast %35 : f32 to vector<1x128xf32>
    %42 = vector.broadcast %40 : f32 to vector<1x128xf32>
    %43 = tpu.concatenate %41, %42 in 0 : vector<1x128xf32>, vector<1x128xf32> -> vector<2x128xf32>
    %c0_18 = arith.constant 0 : index
    %c0_19 = arith.constant 0 : index
    %c0_20 = arith.constant 0 : index
    %c0_21 = arith.constant 0 : index
    %44 = vector.load %arg7[%c0_18, %c0_19, %c0_20, %c0_21] : memref<1x1x2x128xf32, #tpu.memory_space<vmem>>, vector<1x1x2x128xf32>
    %45 = vector.shape_cast %44 : vector<1x1x2x128xf32> to vector<2x128xf32>
    %46 = vector.shape_cast %43 : vector<2x128xf32> to vector<1x1x2x128xf32>
    tpu.vector_store %arg7[%c0_18, %c0_19, %c0_20, %c0_21], %46 {strides = array<i32>} : memref<1x1x2x128xf32, #tpu.memory_space<vmem>>, vector<1x1x2x128xf32>,
    %47 = vector.shape_cast %31 : vector<128x128xf32> to vector<8x16x128xf32>
    %c0_22 = arith.constant 0 : index
    %c0_23 = arith.constant 0 : index
    %c0_24 = arith.constant 0 : index
    %c0_25 = arith.constant 0 : index
    %48 = vector.load %arg6[%c0_22, %c0_23, %c0_24, %c0_25] : memref<1x8x16x128xf32, #tpu.memory_space<vmem>>, vector<1x8x16x128xf32>
    %49 = vector.shape_cast %48 : vector<1x8x16x128xf32> to vector<8x16x128xf32>
    %50 = vector.shape_cast %47 : vector<8x16x128xf32> to vector<1x8x16x128xf32>
    tpu.vector_store %arg6[%c0_22, %c0_23, %c0_24, %c0_25], %50 {strides = array<i32>} : memref<1x8x16x128xf32, #tpu.memory_space<vmem>>, vector<1x8x16x128xf32>,
    return
  }
  func.func @transform_0(%arg0: i32, %arg1: i32) -> (i32, i32, i32, i32) {
    %c8_i32 = arith.constant 8 : i32
    %0 = arith.muli %arg1, %c8_i32 : i32
    %c1_i32 = arith.constant 1 : i32
    %1 = arith.subi %0, %c1_i32 : i32
    %c0_i32 = arith.constant 0 : i32
    %2 = arith.maxsi %1, %c0_i32 : i32
    %c0_i32_0 = arith.constant 0 : i32
    %c0_i32_1 = arith.constant 0 : i32
    %c0_i32_2 = arith.constant 0 : i32
    return %arg0, %2, %c0_i32_0, %c0_i32_1 : i32, i32, i32, i32
  }
  func.func @transform_1(%arg0: i32, %arg1: i32) -> (i32, i32, i32, i32) {
    %c0_i32 = arith.constant 0 : i32
    %c0_i32_0 = arith.constant 0 : i32
    %c0_i32_1 = arith.constant 0 : i32
    return %arg0, %arg1, %c0_i32, %c0_i32_0 : i32, i32, i32, i32
  }
  func.func @transform_2(%arg0: i32, %arg1: i32) -> (i32, i32, i32, i32) {
    %c8_i32 = arith.constant 8 : i32
    %0 = arith.muli %arg1, %c8_i32 : i32
    %c8_i32_0 = arith.constant 8 : i32
    %1 = arith.addi %0, %c8_i32_0 : i32
    %c15_i32 = arith.constant 15 : i32
    %2 = arith.minsi %1, %c15_i32 : i32
    %c0_i32 = arith.constant 0 : i32
    %c0_i32_1 = arith.constant 0 : i32
    %c0_i32_2 = arith.constant 0 : i32
    return %arg0, %2, %c0_i32, %c0_i32_1 : i32, i32, i32, i32
  }
  func.func @transform_3(%arg0: i32, %arg1: i32) -> (i32, i32) {
    %c0_i32 = arith.constant 0 : i32
    %c0_i32_0 = arith.constant 0 : i32
    %c0_i32_1 = arith.constant 0 : i32
    return %c0_i32, %c0_i32_0 : i32, i32
  }
  func.func @transform_4(%arg0: i32, %arg1: i32) -> (i32, i32, i32, i32) {
    %c0_i32 = arith.constant 0 : i32
    %c0_i32_0 = arith.constant 0 : i32
    %c0_i32_1 = arith.constant 0 : i32
    return %arg0, %arg1, %c0_i32, %c0_i32_0 : i32, i32, i32, i32
  }
  func.func @transform_5(%arg0: i32, %arg1: i32) -> (i32, i32, i32, i32) {
    %c0_i32 = arith.constant 0 : i32
    %c0_i32_0 = arith.constant 0 : i32
    %c0_i32_1 = arith.constant 0 : i32
    return %arg0, %arg1, %c0_i32, %c0_i32_0 : i32, i32, i32, i32
  }
}

module attributes {stable_mosaic.version = 11 : i64} {
  func.func @kernel(%arg0: i32, %arg1: i32, %arg2: memref<1x1x16x128xf32, #tpu.memory_space<vmem>>, %arg3: memref<1x8x16x128xf32, #tpu.memory_space<vmem>>, %arg4: memref<1x1x16x128xf32, #tpu.memory_space<vmem>>, %arg5: memref<1152x128xf32, #tpu.memory_space<vmem>>, %arg6: memref<1x1x128xf32, #tpu.memory_space<vmem>>, %arg7: memref<1x1x128xf32, #tpu.memory_space<vmem>>, %arg8: memref<1x8x16x128xf32, #tpu.memory_space<vmem>>, %arg9: memref<1x1x2x128xf32, #tpu.memory_space<vmem>>) attributes {dimension_semantics = [#tpu.dimension_semantics<parallel>, #tpu.dimension_semantics<parallel>], iteration_bounds = array<i64: 2, 2>, scalar_prefetch = 0 : i64, scratch_operands = 0 : i64, tpu.core_type = #tpu.core_type<tc>, window_params = [{transform_indices = @transform_0, window_bounds = array<i64: 1, 1, 16, 128>}, {transform_indices = @transform_1, window_bounds = array<i64: 1, 8, 16, 128>}, {transform_indices = @transform_2, window_bounds = array<i64: 1, 1, 16, 128>}, {pipeline_mode = #tpu.pipeline_mode<synchronous>, transform_indices = @transform_3, window_bounds = array<i64: 1152, 128>}, {transform_indices = @transform_4, window_bounds = array<i64: 1, 1, 128>}, {transform_indices = @transform_5, window_bounds = array<i64: 1, 1, 128>}, {transform_indices = @transform_6, window_bounds = array<i64: 1, 8, 16, 128>}, {transform_indices = @transform_7, window_bounds = array<i64: 1, 1, 2, 128>}]} {
    %c0 = arith.constant 0 : index
    %c0_0 = arith.constant 0 : index
    %c0_1 = arith.constant 0 : index
    %c0_2 = arith.constant 0 : index
    %0 = vector.load %arg2[%c0, %c0_0, %c0_1, %c0_2] : memref<1x1x16x128xf32, #tpu.memory_space<vmem>>, vector<1x1x16x128xf32>
    %1 = vector.shape_cast %0 : vector<1x1x16x128xf32> to vector<1x16x128xf32>
    %c0_3 = arith.constant 0 : index
    %c0_4 = arith.constant 0 : index
    %c0_5 = arith.constant 0 : index
    %c0_6 = arith.constant 0 : index
    %2 = vector.load %arg3[%c0_3, %c0_4, %c0_5, %c0_6] : memref<1x8x16x128xf32, #tpu.memory_space<vmem>>, vector<1x8x16x128xf32>
    %3 = vector.shape_cast %2 : vector<1x8x16x128xf32> to vector<8x16x128xf32>
    %c0_7 = arith.constant 0 : index
    %c0_8 = arith.constant 0 : index
    %c0_9 = arith.constant 0 : index
    %c0_10 = arith.constant 0 : index
    %4 = vector.load %arg4[%c0_7, %c0_8, %c0_9, %c0_10] : memref<1x1x16x128xf32, #tpu.memory_space<vmem>>, vector<1x1x16x128xf32>
    %5 = vector.shape_cast %4 : vector<1x1x16x128xf32> to vector<1x16x128xf32>
    %6 = tpu.concatenate %1, %3, %5 in 0 : vector<1x16x128xf32>, vector<8x16x128xf32>, vector<1x16x128xf32> -> vector<10x16x128xf32>
    %c0_11 = arith.constant 0 : index
    %c0_12 = arith.constant 0 : index
    %c0_13 = arith.constant 0 : index
    %7 = vector.load %arg6[%c0_11, %c0_12, %c0_13] : memref<1x1x128xf32, #tpu.memory_space<vmem>>, vector<1x1x128xf32>
    %8 = vector.shape_cast %7 : vector<1x1x128xf32> to vector<1x128xf32>
    %9 = vector.shape_cast %8 : vector<1x128xf32> to vector<1x1x128xf32>
    %10 = vector.broadcast %9 : vector<1x1x128xf32> to vector<10x16x128xf32>
    %11 = arith.mulf %6, %10 : vector<10x16x128xf32>
    %c0_14 = arith.constant 0 : index
    %c0_15 = arith.constant 0 : index
    %c0_16 = arith.constant 0 : index
    %12 = vector.load %arg7[%c0_14, %c0_15, %c0_16] : memref<1x1x128xf32, #tpu.memory_space<vmem>>, vector<1x1x128xf32>
    %13 = vector.shape_cast %12 : vector<1x1x128xf32> to vector<1x128xf32>
    %14 = vector.shape_cast %13 : vector<1x128xf32> to vector<1x1x128xf32>
    %15 = vector.broadcast %14 : vector<1x1x128xf32> to vector<10x16x128xf32>
    %16 = arith.addf %11, %15 : vector<10x16x128xf32>
    %cst = arith.constant 5.000000e-01 : f32
    %17 = vector.broadcast %cst : f32 to vector<10x16x128xf32>
    %18 = arith.mulf %17, %16 : vector<10x16x128xf32>
    %cst_17 = arith.constant 4.471500e-02 : f32
    %19 = vector.broadcast %cst_17 : f32 to vector<10x16x128xf32>
    %20 = arith.mulf %19, %16 : vector<10x16x128xf32>
    %21 = arith.mulf %20, %16 : vector<10x16x128xf32>
    %22 = arith.mulf %21, %16 : vector<10x16x128xf32>
    %23 = arith.addf %16, %22 : vector<10x16x128xf32>
    %cst_18 = arith.constant 0.797884583 : f32
    %24 = vector.broadcast %cst_18 : f32 to vector<10x16x128xf32>
    %25 = arith.mulf %24, %23 : vector<10x16x128xf32>
    %26 = math.tanh %25 : vector<10x16x128xf32>
    %cst_19 = arith.constant 1.000000e+00 : f32
    %27 = vector.broadcast %cst_19 : f32 to vector<10x16x128xf32>
    %28 = arith.addf %27, %26 : vector<10x16x128xf32>
    %29 = arith.mulf %18, %28 : vector<10x16x128xf32>
    %c0_i32 = arith.constant 0 : i32
    %30 = arith.cmpi eq, %arg1, %c0_i32 : i32
    %cst_20 = arith.constant 0.000000e+00 : f32
    %31 = vector.broadcast %cst_20 : f32 to vector<1x16x128xf32>
    %32 = vector.extract_strided_slice %29 {offsets = [0, 0, 0], sizes = [1, 16, 128], strides = [1, 1, 1]} : vector<10x16x128xf32> to vector<1x16x128xf32>
    %33 = arith.select %30, %31, %32 : vector<1x16x128xf32>
    %c1_i32 = arith.constant 1 : i32
    %34 = arith.cmpi eq, %arg1, %c1_i32 : i32
    %cst_21 = arith.constant 0.000000e+00 : f32
    %35 = vector.broadcast %cst_21 : f32 to vector<1x16x128xf32>
    %36 = vector.extract_strided_slice %29 {offsets = [9, 0, 0], sizes = [1, 16, 128], strides = [1, 1, 1]} : vector<10x16x128xf32> to vector<1x16x128xf32>
    %37 = arith.select %34, %35, %36 : vector<1x16x128xf32>
    %38 = vector.extract_strided_slice %29 {offsets = [1, 0, 0], sizes = [8, 16, 128], strides = [1, 1, 1]} : vector<10x16x128xf32> to vector<8x16x128xf32>
    %39 = tpu.concatenate %33, %38, %37 in 0 : vector<1x16x128xf32>, vector<8x16x128xf32>, vector<1x16x128xf32> -> vector<10x16x128xf32>
    %cst_22 = arith.constant 0.000000e+00 : f32
    %40 = vector.broadcast %cst_22 : f32 to vector<10x1x128xf32>
    %41 = tpu.concatenate %40, %39, %40 in 1 : vector<10x1x128xf32>, vector<10x16x128xf32>, vector<10x1x128xf32> -> vector<10x18x128xf32>
    %c0_23 = arith.constant 0 : index
    %c0_24 = arith.constant 0 : index
    %42 = vector.load %arg5[%c0_23, %c0_24] : memref<1152x128xf32, #tpu.memory_space<vmem>>, vector<1152x128xf32>
    %cst_25 = arith.constant 0.000000e+00 : f32
    %43 = vector.broadcast %cst_25 : f32 to vector<128x128xf32>
    %44 = vector.extract_strided_slice %41 {offsets = [0, 0, 0], sizes = [8, 16, 128], strides = [1, 1, 1]} : vector<10x18x128xf32> to vector<8x16x128xf32>
    %45 = vector.shape_cast %44 : vector<8x16x128xf32> to vector<128x128xf32>
    %46 = vector.extract_strided_slice %42 {offsets = [0, 0], sizes = [128, 128], strides = [1, 1]} : vector<1152x128xf32> to vector<128x128xf32>
    %cst_26 = arith.constant dense<0.000000e+00> : vector<128x128xf32>
    %47 = tpu.matmul %45, %46, %cst_26 {dimension_numbers = #tpu.dot_dimension_numbers<[1], [0], [0], [1], [0, 0, 1, 1], [], []>} : vector<128x128xf32>, vector<128x128xf32>, vector<128x128xf32> -> vector<128x128xf32>
    %48 = arith.addf %43, %47 : vector<128x128xf32>
    %49 = vector.extract_strided_slice %41 {offsets = [0, 1, 0], sizes = [8, 16, 128], strides = [1, 1, 1]} : vector<10x18x128xf32> to vector<8x16x128xf32>
    %50 = vector.shape_cast %49 : vector<8x16x128xf32> to vector<128x128xf32>
    %51 = vector.extract_strided_slice %42 {offsets = [128, 0], sizes = [128, 128], strides = [1, 1]} : vector<1152x128xf32> to vector<128x128xf32>
    %cst_27 = arith.constant dense<0.000000e+00> : vector<128x128xf32>
    %52 = tpu.matmul %50, %51, %cst_27 {dimension_numbers = #tpu.dot_dimension_numbers<[1], [0], [0], [1], [0, 0, 1, 1], [], []>} : vector<128x128xf32>, vector<128x128xf32>, vector<128x128xf32> -> vector<128x128xf32>
    %53 = arith.addf %48, %52 : vector<128x128xf32>
    %54 = vector.extract_strided_slice %41 {offsets = [0, 2, 0], sizes = [8, 16, 128], strides = [1, 1, 1]} : vector<10x18x128xf32> to vector<8x16x128xf32>
    %55 = vector.shape_cast %54 : vector<8x16x128xf32> to vector<128x128xf32>
    %56 = vector.extract_strided_slice %42 {offsets = [256, 0], sizes = [128, 128], strides = [1, 1]} : vector<1152x128xf32> to vector<128x128xf32>
    %cst_28 = arith.constant dense<0.000000e+00> : vector<128x128xf32>
    %57 = tpu.matmul %55, %56, %cst_28 {dimension_numbers = #tpu.dot_dimension_numbers<[1], [0], [0], [1], [0, 0, 1, 1], [], []>} : vector<128x128xf32>, vector<128x128xf32>, vector<128x128xf32> -> vector<128x128xf32>
    %58 = arith.addf %53, %57 : vector<128x128xf32>
    %59 = vector.extract_strided_slice %41 {offsets = [1, 0, 0], sizes = [8, 16, 128], strides = [1, 1, 1]} : vector<10x18x128xf32> to vector<8x16x128xf32>
    %60 = vector.shape_cast %59 : vector<8x16x128xf32> to vector<128x128xf32>
    %61 = vector.extract_strided_slice %42 {offsets = [384, 0], sizes = [128, 128], strides = [1, 1]} : vector<1152x128xf32> to vector<128x128xf32>
    %cst_29 = arith.constant dense<0.000000e+00> : vector<128x128xf32>
    %62 = tpu.matmul %60, %61, %cst_29 {dimension_numbers = #tpu.dot_dimension_numbers<[1], [0], [0], [1], [0, 0, 1, 1], [], []>} : vector<128x128xf32>, vector<128x128xf32>, vector<128x128xf32> -> vector<128x128xf32>
    %63 = arith.addf %58, %62 : vector<128x128xf32>
    %64 = vector.extract_strided_slice %41 {offsets = [1, 1, 0], sizes = [8, 16, 128], strides = [1, 1, 1]} : vector<10x18x128xf32> to vector<8x16x128xf32>
    %65 = vector.shape_cast %64 : vector<8x16x128xf32> to vector<128x128xf32>
    %66 = vector.extract_strided_slice %42 {offsets = [512, 0], sizes = [128, 128], strides = [1, 1]} : vector<1152x128xf32> to vector<128x128xf32>
    %cst_30 = arith.constant dense<0.000000e+00> : vector<128x128xf32>
    %67 = tpu.matmul %65, %66, %cst_30 {dimension_numbers = #tpu.dot_dimension_numbers<[1], [0], [0], [1], [0, 0, 1, 1], [], []>} : vector<128x128xf32>, vector<128x128xf32>, vector<128x128xf32> -> vector<128x128xf32>
    %68 = arith.addf %63, %67 : vector<128x128xf32>
    %69 = vector.extract_strided_slice %41 {offsets = [1, 2, 0], sizes = [8, 16, 128], strides = [1, 1, 1]} : vector<10x18x128xf32> to vector<8x16x128xf32>
    %70 = vector.shape_cast %69 : vector<8x16x128xf32> to vector<128x128xf32>
    %71 = vector.extract_strided_slice %42 {offsets = [640, 0], sizes = [128, 128], strides = [1, 1]} : vector<1152x128xf32> to vector<128x128xf32>
    %cst_31 = arith.constant dense<0.000000e+00> : vector<128x128xf32>
    %72 = tpu.matmul %70, %71, %cst_31 {dimension_numbers = #tpu.dot_dimension_numbers<[1], [0], [0], [1], [0, 0, 1, 1], [], []>} : vector<128x128xf32>, vector<128x128xf32>, vector<128x128xf32> -> vector<128x128xf32>
    %73 = arith.addf %68, %72 : vector<128x128xf32>
    %74 = vector.extract_strided_slice %41 {offsets = [2, 0, 0], sizes = [8, 16, 128], strides = [1, 1, 1]} : vector<10x18x128xf32> to vector<8x16x128xf32>
    %75 = vector.shape_cast %74 : vector<8x16x128xf32> to vector<128x128xf32>
    %76 = vector.extract_strided_slice %42 {offsets = [768, 0], sizes = [128, 128], strides = [1, 1]} : vector<1152x128xf32> to vector<128x128xf32>
    %cst_32 = arith.constant dense<0.000000e+00> : vector<128x128xf32>
    %77 = tpu.matmul %75, %76, %cst_32 {dimension_numbers = #tpu.dot_dimension_numbers<[1], [0], [0], [1], [0, 0, 1, 1], [], []>} : vector<128x128xf32>, vector<128x128xf32>, vector<128x128xf32> -> vector<128x128xf32>
    %78 = arith.addf %73, %77 : vector<128x128xf32>
    %79 = vector.extract_strided_slice %41 {offsets = [2, 1, 0], sizes = [8, 16, 128], strides = [1, 1, 1]} : vector<10x18x128xf32> to vector<8x16x128xf32>
    %80 = vector.shape_cast %79 : vector<8x16x128xf32> to vector<128x128xf32>
    %81 = vector.extract_strided_slice %42 {offsets = [896, 0], sizes = [128, 128], strides = [1, 1]} : vector<1152x128xf32> to vector<128x128xf32>
    %cst_33 = arith.constant dense<0.000000e+00> : vector<128x128xf32>
    %82 = tpu.matmul %80, %81, %cst_33 {dimension_numbers = #tpu.dot_dimension_numbers<[1], [0], [0], [1], [0, 0, 1, 1], [], []>} : vector<128x128xf32>, vector<128x128xf32>, vector<128x128xf32> -> vector<128x128xf32>
    %83 = arith.addf %78, %82 : vector<128x128xf32>
    %84 = vector.extract_strided_slice %41 {offsets = [2, 2, 0], sizes = [8, 16, 128], strides = [1, 1, 1]} : vector<10x18x128xf32> to vector<8x16x128xf32>
    %85 = vector.shape_cast %84 : vector<8x16x128xf32> to vector<128x128xf32>
    %86 = vector.extract_strided_slice %42 {offsets = [1024, 0], sizes = [128, 128], strides = [1, 1]} : vector<1152x128xf32> to vector<128x128xf32>
    %cst_34 = arith.constant dense<0.000000e+00> : vector<128x128xf32>
    %87 = tpu.matmul %85, %86, %cst_34 {dimension_numbers = #tpu.dot_dimension_numbers<[1], [0], [0], [1], [0, 0, 1, 1], [], []>} : vector<128x128xf32>, vector<128x128xf32>, vector<128x128xf32> -> vector<128x128xf32>
    %88 = arith.addf %83, %87 : vector<128x128xf32>
    %89 = vector.shape_cast %88 : vector<128x128xf32> to vector<1x128x128xf32>
    %cst_35 = arith.constant dense<0.000000e+00> : vector<1xf32>
    %90 = vector.multi_reduction <add>, %89, %cst_35 [1, 2] : vector<1x128x128xf32> to vector<1xf32>
    %91 = vector.shape_cast %90 : vector<1xf32> to vector<1x1x1xf32>
    %92 = vector.extract %91[0, 0, 0] : f32 from vector<1x1x1xf32>
    %93 = arith.mulf %88, %88 : vector<128x128xf32>
    %94 = vector.shape_cast %93 : vector<128x128xf32> to vector<1x128x128xf32>
    %cst_36 = arith.constant dense<0.000000e+00> : vector<1xf32>
    %95 = vector.multi_reduction <add>, %94, %cst_36 [1, 2] : vector<1x128x128xf32> to vector<1xf32>
    %96 = vector.shape_cast %95 : vector<1xf32> to vector<1x1x1xf32>
    %97 = vector.extract %96[0, 0, 0] : f32 from vector<1x1x1xf32>
    %98 = vector.broadcast %92 : f32 to vector<1x128xf32>
    %99 = vector.broadcast %97 : f32 to vector<1x128xf32>
    %100 = tpu.concatenate %98, %99 in 0 : vector<1x128xf32>, vector<1x128xf32> -> vector<2x128xf32>
    %c0_37 = arith.constant 0 : index
    %c0_38 = arith.constant 0 : index
    %c0_39 = arith.constant 0 : index
    %c0_40 = arith.constant 0 : index
    %101 = vector.load %arg9[%c0_37, %c0_38, %c0_39, %c0_40] : memref<1x1x2x128xf32, #tpu.memory_space<vmem>>, vector<1x1x2x128xf32>
    %102 = vector.shape_cast %101 : vector<1x1x2x128xf32> to vector<2x128xf32>
    %103 = vector.shape_cast %100 : vector<2x128xf32> to vector<1x1x2x128xf32>
    tpu.vector_store %arg9[%c0_37, %c0_38, %c0_39, %c0_40], %103 {strides = array<i32>} : memref<1x1x2x128xf32, #tpu.memory_space<vmem>>, vector<1x1x2x128xf32>,
    %104 = vector.shape_cast %88 : vector<128x128xf32> to vector<8x16x128xf32>
    %c0_41 = arith.constant 0 : index
    %c0_42 = arith.constant 0 : index
    %c0_43 = arith.constant 0 : index
    %c0_44 = arith.constant 0 : index
    %105 = vector.load %arg8[%c0_41, %c0_42, %c0_43, %c0_44] : memref<1x8x16x128xf32, #tpu.memory_space<vmem>>, vector<1x8x16x128xf32>
    %106 = vector.shape_cast %105 : vector<1x8x16x128xf32> to vector<8x16x128xf32>
    %107 = vector.shape_cast %104 : vector<8x16x128xf32> to vector<1x8x16x128xf32>
    tpu.vector_store %arg8[%c0_41, %c0_42, %c0_43, %c0_44], %107 {strides = array<i32>} : memref<1x8x16x128xf32, #tpu.memory_space<vmem>>, vector<1x8x16x128xf32>,
    return
  }
  func.func @transform_0(%arg0: i32, %arg1: i32) -> (i32, i32, i32, i32) {
    %c8_i32 = arith.constant 8 : i32
    %0 = arith.muli %arg1, %c8_i32 : i32
    %c1_i32 = arith.constant 1 : i32
    %1 = arith.subi %0, %c1_i32 : i32
    %c0_i32 = arith.constant 0 : i32
    %2 = arith.maxsi %1, %c0_i32 : i32
    %c0_i32_0 = arith.constant 0 : i32
    %c0_i32_1 = arith.constant 0 : i32
    %c0_i32_2 = arith.constant 0 : i32
    return %arg0, %2, %c0_i32_0, %c0_i32_1 : i32, i32, i32, i32
  }
  func.func @transform_1(%arg0: i32, %arg1: i32) -> (i32, i32, i32, i32) {
    %c0_i32 = arith.constant 0 : i32
    %c0_i32_0 = arith.constant 0 : i32
    %c0_i32_1 = arith.constant 0 : i32
    return %arg0, %arg1, %c0_i32, %c0_i32_0 : i32, i32, i32, i32
  }
  func.func @transform_2(%arg0: i32, %arg1: i32) -> (i32, i32, i32, i32) {
    %c8_i32 = arith.constant 8 : i32
    %0 = arith.muli %arg1, %c8_i32 : i32
    %c8_i32_0 = arith.constant 8 : i32
    %1 = arith.addi %0, %c8_i32_0 : i32
    %c15_i32 = arith.constant 15 : i32
    %2 = arith.minsi %1, %c15_i32 : i32
    %c0_i32 = arith.constant 0 : i32
    %c0_i32_1 = arith.constant 0 : i32
    %c0_i32_2 = arith.constant 0 : i32
    return %arg0, %2, %c0_i32, %c0_i32_1 : i32, i32, i32, i32
  }
  func.func @transform_3(%arg0: i32, %arg1: i32) -> (i32, i32) {
    %c0_i32 = arith.constant 0 : i32
    %c0_i32_0 = arith.constant 0 : i32
    %c0_i32_1 = arith.constant 0 : i32
    return %c0_i32, %c0_i32_0 : i32, i32
  }
  func.func @transform_4(%arg0: i32, %arg1: i32) -> (i32, i32, i32) {
    %c0_i32 = arith.constant 0 : i32
    %c0_i32_0 = arith.constant 0 : i32
    %c0_i32_1 = arith.constant 0 : i32
    return %arg0, %c0_i32, %c0_i32_0 : i32, i32, i32
  }
  func.func @transform_5(%arg0: i32, %arg1: i32) -> (i32, i32, i32) {
    %c0_i32 = arith.constant 0 : i32
    %c0_i32_0 = arith.constant 0 : i32
    %c0_i32_1 = arith.constant 0 : i32
    return %arg0, %c0_i32, %c0_i32_0 : i32, i32, i32
  }
  func.func @transform_6(%arg0: i32, %arg1: i32) -> (i32, i32, i32, i32) {
    %c0_i32 = arith.constant 0 : i32
    %c0_i32_0 = arith.constant 0 : i32
    %c0_i32_1 = arith.constant 0 : i32
    return %arg0, %arg1, %c0_i32, %c0_i32_0 : i32, i32, i32, i32
  }
  func.func @transform_7(%arg0: i32, %arg1: i32) -> (i32, i32, i32, i32) {
    %c0_i32 = arith.constant 0 : i32
    %c0_i32_0 = arith.constant 0 : i32
    %c0_i32_1 = arith.constant 0 : i32
    return %arg0, %arg1, %c0_i32, %c0_i32_0 : i32, i32, i32, i32
  }
}

module attributes {stable_mosaic.version = 11 : i64} {
  func.func @kernel(%arg0: i32, %arg1: i32, %arg2: memref<1x8x16x128xf32, #tpu.memory_space<vmem>>, %arg3: memref<1x1x8xf32, #tpu.memory_space<vmem>>, %arg4: memref<1x1x8xf32, #tpu.memory_space<vmem>>, %arg5: memref<1x8x16x8xf32, #tpu.memory_space<vmem>>) attributes {dimension_semantics = [#tpu.dimension_semantics<parallel>, #tpu.dimension_semantics<parallel>], iteration_bounds = array<i64: 2, 2>, scalar_prefetch = 0 : i64, scratch_operands = 0 : i64, tpu.core_type = #tpu.core_type<tc>, window_params = [{transform_indices = @transform_0, window_bounds = array<i64: 1, 8, 16, 128>}, {transform_indices = @transform_1, window_bounds = array<i64: 1, 1, 8>}, {transform_indices = @transform_2, window_bounds = array<i64: 1, 1, 8>}, {transform_indices = @transform_3, window_bounds = array<i64: 1, 8, 16, 8>}]} {
    %c0 = arith.constant 0 : index
    %c0_0 = arith.constant 0 : index
    %c0_1 = arith.constant 0 : index
    %c0_2 = arith.constant 0 : index
    %0 = vector.load %arg2[%c0, %c0_0, %c0_1, %c0_2] : memref<1x8x16x128xf32, #tpu.memory_space<vmem>>, vector<1x8x16x128xf32>
    %1 = vector.shape_cast %0 : vector<1x8x16x128xf32> to vector<8x16x128xf32>
    %2 = vector.extract_strided_slice %1 {offsets = [0, 0, 0], sizes = [8, 16, 8], strides = [1, 1, 1]} : vector<8x16x128xf32> to vector<8x16x8xf32>
    %c0_3 = arith.constant 0 : index
    %c0_4 = arith.constant 0 : index
    %c0_5 = arith.constant 0 : index
    %3 = vector.load %arg3[%c0_3, %c0_4, %c0_5] : memref<1x1x8xf32, #tpu.memory_space<vmem>>, vector<1x1x8xf32>
    %4 = vector.shape_cast %3 : vector<1x1x8xf32> to vector<1x8xf32>
    %5 = vector.shape_cast %4 : vector<1x8xf32> to vector<1x1x8xf32>
    %6 = vector.broadcast %5 : vector<1x1x8xf32> to vector<8x16x8xf32>
    %7 = arith.mulf %2, %6 : vector<8x16x8xf32>
    %c0_6 = arith.constant 0 : index
    %c0_7 = arith.constant 0 : index
    %c0_8 = arith.constant 0 : index
    %8 = vector.load %arg4[%c0_6, %c0_7, %c0_8] : memref<1x1x8xf32, #tpu.memory_space<vmem>>, vector<1x1x8xf32>
    %9 = vector.shape_cast %8 : vector<1x1x8xf32> to vector<1x8xf32>
    %10 = vector.shape_cast %9 : vector<1x8xf32> to vector<1x1x8xf32>
    %11 = vector.broadcast %10 : vector<1x1x8xf32> to vector<8x16x8xf32>
    %12 = arith.addf %7, %11 : vector<8x16x8xf32>
    %c0_9 = arith.constant 0 : index
    %c0_10 = arith.constant 0 : index
    %c0_11 = arith.constant 0 : index
    %c0_12 = arith.constant 0 : index
    %13 = vector.load %arg5[%c0_9, %c0_10, %c0_11, %c0_12] : memref<1x8x16x8xf32, #tpu.memory_space<vmem>>, vector<1x8x16x8xf32>
    %14 = vector.shape_cast %13 : vector<1x8x16x8xf32> to vector<8x16x8xf32>
    %15 = vector.shape_cast %12 : vector<8x16x8xf32> to vector<1x8x16x8xf32>
    tpu.vector_store %arg5[%c0_9, %c0_10, %c0_11, %c0_12], %15 {strides = array<i32>} : memref<1x8x16x8xf32, #tpu.memory_space<vmem>>, vector<1x8x16x8xf32>,
    return
  }
  func.func @transform_0(%arg0: i32, %arg1: i32) -> (i32, i32, i32, i32) {
    %c0_i32 = arith.constant 0 : i32
    %c0_i32_0 = arith.constant 0 : i32
    %c0_i32_1 = arith.constant 0 : i32
    return %arg0, %arg1, %c0_i32, %c0_i32_0 : i32, i32, i32, i32
  }
  func.func @transform_1(%arg0: i32, %arg1: i32) -> (i32, i32, i32) {
    %c0_i32 = arith.constant 0 : i32
    %c0_i32_0 = arith.constant 0 : i32
    %c0_i32_1 = arith.constant 0 : i32
    return %arg0, %c0_i32, %c0_i32_0 : i32, i32, i32
  }
  func.func @transform_2(%arg0: i32, %arg1: i32) -> (i32, i32, i32) {
    %c0_i32 = arith.constant 0 : i32
    %c0_i32_0 = arith.constant 0 : i32
    %c0_i32_1 = arith.constant 0 : i32
    return %arg0, %c0_i32, %c0_i32_0 : i32, i32, i32
  }
  func.func @transform_3(%arg0: i32, %arg1: i32) -> (i32, i32, i32, i32) {
    %c0_i32 = arith.constant 0 : i32
    %c0_i32_0 = arith.constant 0 : i32
    %c0_i32_1 = arith.constant 0 : i32
    return %arg0, %arg1, %c0_i32, %c0_i32_0 : i32, i32, i32, i32
  }
}

</mosaic_0001>

<bundles_post_ra>
// kernel: double_conv_forward.5
= control target key start
LH: loop header
LB: loop body
LE: loop exit
PB: predicated region body
PF: predicated region fallthrough
CT: control target
= control target key end

     0   :  { %s1299_s0 = inlined_call_operand.hbm [shape: f32[2,16,16,128], index: 0, kind: input, shape index: {}]   ;;  %s1300_s1 = inlined_call_operand.hbm [shape: f32[2,1,8], index: 1, kind: input, shape index: {}]   ;;  %s1301_s2 = inlined_call_operand.hbm [shape: f32[2,1,8], index: 2, kind: input, shape index: {}]   ;;  %s1302_s3 = inlined_call_operand.hbm [shape: f32[2,16,16,8], index: 3, kind: output, shape index: {}]  }
   0x1   :  { %1319 = sst [smem:[#allocation21_spill]] %s1300_s1 }
   0x2   :  { %1320 = sst [smem:[#allocation22_spill]] %s1302_s3 }
   0x3   :  { %8 = vsyncpa [#allocation3], 0 }
   0x4   :  { %10 = vsyncpa [#allocation3 + $0x1], 0 }
   0x5   :  { %11 = vsyncpa [#allocation6], 0 }
   0x6   :  { %13 = vsyncpa [#allocation6 + $0x1], 0 }
   0x7   :  { %14 = vsyncpa [#allocation4], 0 }
   0x8   :  { %16 = vsyncpa [#allocation4 + $0x1], 0  ;;  %s885_s12 = smov 0   ;;  %s887_s13 = smov 0  }
   0x9   :  { %s889_s14 = smov 0   ;;  %s891_s15 = smov 0  }
   0xa   :  { %s893_s16 = smov 0   ;;  %s895_s17 = smov 0  }
   0xb   :  { %s897_s18 = smov 0   ;;  %s899_s19 = smov 0  }
   0xc   :  { %s901_s20 = smov 0   ;;  %s903_s21 = smov 0  }
   0xd   :  { %s905_s22 = smov 0  }
   0xe LB: > { %1321 = sst [smem:[#allocation12_spill]] %s827_s15  ;;  %s939_s23 = sadd.s32 4294967295, %s855_s22   ;;  %s855_s22 = sphi %s905_s22, %s22_s22   ;;  %s851_s21 = sphi %s903_s21, %s1369_s21   ;;  %s847_s20 = sphi %s901_s20, %s1361_s20   ;;  %s843_s19 = sphi %s899_s19, %s1368_s19   ;;  %s839_s18 = sphi %s897_s18, %s1360_s18   ;;  %s835_s17 = sphi %s895_s17, %s1367_s17   ;;  %s831_s16 = sphi %s893_s16, %s1366_s16   ;;  %s827_s15 = sphi %s891_s15, %s1365_s15   ;;  %s823_s14 = sphi %s889_s14, %s1364_s14   ;;  %s819_s13 = sphi %s887_s13, %s1363_s13   ;;  %s815_s12 = sphi %s885_s12, %s1362_s12  }
   0xf   : > { %1322 = sst [smem:[#allocation13_spill]] %s839_s18  ;;  %s499_s24 = sadd.s32 4294967294, %s855_s22  }
  0x10   : > { %1323 = sst [smem:[#allocation14_spill]] %s843_s19  ;;  %p50_p0 = scmp.ne.s32.totalorder %s835_s17, %s831_s16 }
  0x11   : > { %1324 = sst [smem:[#allocation15_spill]] %s847_s20  ;;  %p51_p1 = scmp.eq.s32.totalorder %s855_s22, 0 }
  0x12   : > { %1325 = sst [smem:[#allocation16_spill]] %s855_s22  ;;  %p56_p2 = scmp.ne.s32.totalorder %s831_s16, %s827_s15 }
  0x13   : > { %p57_p3 = scmp.eq.s32.totalorder %s939_s23, 0  ;;  %p953_p4 = por %p51_p1, %p50_p0 }
  0x14   : > { %p76_p5 = scmp.ne.s32.totalorder %s823_s14, %s819_s13  ;;  %p82_p7 = scmp.ne.s32.totalorder %s819_s13, %s815_s12 }
  0x15   : > { %p959_p6 = por %p57_p3, %p56_p2  ;;  %p134_p9 = scmp.eq.s32.totalorder %s939_s23, 3 }
  0x16   : > { %p964_p8 = por %p76_p5, %p51_p1  ;;  %p969_p10 = por %p82_p7, %p57_p3 }
  0x17   : > { %s1327_s28 = scalar_select %p959_p6, 1, 0 }
  0x18   : > { %s1329_s30 = scalar_select %p969_p10, 1, 0 }
  0x19   : > { %p140_p11 = scmp.eq.s32.totalorder %s499_s24, 3  ;;  %p976_p12 = por %p134_p9, %p50_p0 }
  0x1a   : > { %1330 = sst [smem:[#allocation17_spill]] %s1329_s30  ;;  %p545_p1 = scmp.lt.s32.totalorder %s855_s22, 4 }
  0x1b   : > { %s1331_s4 = scalar_select %p976_p12, 1, 0 }
  0x1c   : > { %p980_p13 = por %p140_p11, %p56_p2  ;;  %s184_s6 = sand.u32 1, %s855_s22  }
  0x1d   : > { %1332 = sst [smem:[#allocation18_spill]] %s1331_s4  ;;  %s1305_s7 = sand.u32 1, %s823_s14  }
  0x1e   : > { %s1333_s5 = scalar_select %p980_p13, 1, 0 }
  0x1f   : > { %p989_p5 = pnand %p545_p1, %p953_p4  ;;  %s507_s9 = sshll.u32 %s851_s21, 4 }
  0x20   : > { %1334 = sst [smem:[#allocation19_spill]] %s1333_s5  ;;  %s1336_s1 = sld [smem:[#allocation21_spill]] }
  0x21   : > { %s187_s24 = scalar_lea.vmem [#allocation5], %s1305_s7  ;;  %p1003_p0 = pnand %p545_p1, %p964_p8 }
  0x22   : > { %s194_s26 = sshll.u32 %s187_s24, 4  ;;  %s1012_s11 = scalar_lea.hbm %s1301_s2, %s507_s9  ;;  %s1007_s26 = int_to_ptr.vmem [resolvable:$true] %s194_s26 }
  0x23   : > { %s1014_s5 = scalar_lea.sflag [#allocation6], %s184_s6  ;;  %p1318_p3 = pneg %p1003_p0 }
  0x26   : > { %s997_s12 = scalar_lea.hbm %s1336_s1, %s507_s9  ;;  %s644_s7 = scalar_lea.hbm %s1336_s1, 32 }
  0x27   : > { %s639_s15 = scalar_lea.hbm %s997_s12, 16  ;;  %p645_p8 = scmp.lt.u32.totalorder %s997_s12, %s1336_s1 }
  0x28   : > { %p640_p2 = scmp.ne.s32.totalorder %s997_s12, %s639_s15  ;;  %p646_p9 = scmp.lt.u32.totalorder %s644_s7, %s639_s15 }
  0x29   : > { %p648_p1 = scmp.lt.u32.totalorder %s639_s15, %s997_s12 }
  0x2a   : > { %p642_p4 = pnand %p1318_p3, %p640_p2  ;;  %p647_p11 = por %p646_p9, %p645_p8 }
  0x2c   : > { %p643_p7 = pneg %p642_p4  ;;  %p649_p13 = por %p648_p1, %p647_p11 }
  0x2e   : > { %p650_p12 = pnand %p649_p13, %p643_p7 }
  0x30   : > { %653 = shalt.err (!%p650_p12)
}
  0x31   : > { %s654_s25 = scalar_lea.vmem %s1007_s26, 16  ;;  %s857_s6 = smov [#allocation5]  }
  0x32   : > { %p655_p2 = scmp.ne.s32.totalorder %s1007_s26, %s654_s25  ;;  %s659_s9 = sshll.u32 %s857_s6, 4  ;;  %s660_s9 = int_to_ptr.vmem [resolvable:$false] %s659_s9 }
  0x33   : > { %s661_s3 = scalar_lea.vmem %s660_s9, 32  ;;  %p662_p6 = scmp.lt.s32.totalorder %s1007_s26, %s660_s9 }
  0x34   : > { %p657_p4 = pnand %p655_p2, %p1318_p3  ;;  %p663_p8 = scmp.lt.s32.totalorder %s661_s3, %s654_s25 }
  0x36   : > { %p658_p10 = pneg %p657_p4  ;;  %p664_p9 = por %p663_p8, %p662_p6 }
  0x38   : > { %p665_p11 = pnand %p664_p9, %p658_p10 }
  0x3a   : > { %668 = shalt.err (!%p665_p11)
}
  0x3b   : > { %537 = dma.hbm_to_vmem [thread:$0]  (!%p1003_p0), %s997_s12, 16, %s1007_s26, %s1014_s5  }
  0x3c   : > { %p509_p12 = scmp.ge.s32.totalorder %s855_s22, 1  ;;  %p216_p6 = scmp.lt.s32.totalorder %s855_s22, 5 }
  0x3d   : > { %s31_s4 = sadd.s32 1, %s847_s20  ;;  %s43_s7 = sadd.s32 1, %s835_s17 }
  0x3e   : > { %p1044_p10 = pnand %p509_p12, %p216_p6  ;;  %p32_p13 = scmp.ge.s32.totalorder %s31_s4, 2 }
  0x3f   : > { %s160_s10 = sand.u32 1, %s835_s17   ;;  %s521_s29 = sshll.u32 %s847_s20, 4 }
  0x40   : > { %s1338_s15 = scalar_select %p1044_p10, 1, 0 }
  0x41   : > { %s1371_s4 = smov (%p32_p13, %s31_s4), 0  ;;  %s1340_s24 = sadd.s32 1, %s851_s21 }
  0x42   : > { %1339 = sst [smem:[#allocation20_spill]] %s1371_s4  ;;  %s1373_s24 = smov (!%p32_p13, %s1340_s24), %s851_s21 }
  0x43   : > { %s39_s26 = ssub.s32 %s847_s20, %s1371_s4  ;;  %p36_p7 = scmp.ge.s32.totalorder %s1373_s24, 2 }
  0x44   : > { %s502_s12 = sshll.u32 %s160_s10, 7  ;;  %s505_s25 = sshll.u32 %s851_s21, 5 }
  0x45   : > { %s1375_s24 = smov (%p36_p7, %s1373_s24), 0  ;;  %s171_s6 = sadd.s32 %s521_s29, %s505_s25 }
  0x46   : > { %s164_s9 = scalar_lea.vmem [#allocation2], %s502_s12  ;;  %s38_s1 = ssub.s32 %s851_s21, %s1375_s24 }
  0x47   : > { %s174_s3 = sshll.u32 %s164_s9, 4  ;;  %s506_s22 = sshll.u32 %s171_s6, 7  ;;  %s1077_s3 = int_to_ptr.vmem [resolvable:$true] %s174_s3 }
  0x48   : > { %s40_s19 = sor.u32 %s39_s26, %s38_s1  ;;  %p67_p1 = scmp.eq.s32.totalorder %s38_s1, 0 }
  0x49   : > { %p41_p2 = scmp.eq.s32.totalorder %s40_s19, 0  ;;  %s1067_s4 = scalar_lea.hbm %s1299_s0, %s506_s22 }
  0x4a   : > { %s1341_s20 = sadd.s32 1, %s823_s14  ;;  %s1342_s25 = sand.u32 1, %s823_s14  }
  0x4b   : > { %s1072_s29 = scalar_select %p67_p1, %s823_s14, %s1341_s20  }
  0x4c   : > { %s1075_s12 = scalar_select %p41_p2, %s835_s17, %s43_s7  }
  0x4d   : > { %s1081_s26 = scalar_lea.vmem [#allocation7], %s1342_s25  ;;  %s1084_s19 = scalar_lea.sflag [#allocation3], %s160_s10 }
  0x4e   : > { %s211_s1 = sshll.u32 %s1081_s26, 4  ;;  %s669_s18 = scalar_lea.hbm %s1067_s4, 2048  ;;  %s212_s1 = int_to_ptr.vmem [resolvable:$true] %s211_s1 }
  0x4f   : > { %p670_p4 = scmp.ne.s32.totalorder %s1067_s4, %s669_s18  ;;  %p671_p8 = pneg %p989_p5 }
  0x50   : > { %s674_s30 = scalar_lea.hbm %s1299_s0, 8192  ;;  %p675_p12 = scmp.lt.u32.totalorder %s1067_s4, %s1299_s0 }
  0x51   : > { %p672_p9 = pnand %p671_p8, %p670_p4  ;;  %p676_p6 = scmp.lt.u32.totalorder %s674_s30, %s669_s18 }
  0x52   : > { %p678_p7 = scmp.lt.u32.totalorder %s669_s18, %s1067_s4 }
  0x53   : > { %p673_p11 = pneg %p672_p9  ;;  %p677_p13 = por %p676_p6, %p675_p12 }
  0x55   : > { %p679_p1 = por %p678_p7, %p677_p13 }
  0x57   : > { %p680_p2 = pnand %p679_p1, %p673_p11 }
  0x59   : > { %683 = shalt.err (!%p680_p2)
}
  0x5a   : > { %s684_s10 = scalar_lea.vmem %s1077_s3, 2048  ;;  %s858_s9 = smov [#allocation2]  }
  0x5b   : > { %p685_p4 = scmp.ne.s32.totalorder %s1077_s3, %s684_s10  ;;  %s689_s25 = sshll.u32 %s858_s9, 4  ;;  %s690_s25 = int_to_ptr.vmem [resolvable:$false] %s689_s25 }
  0x5c   : > { %s691_s20 = scalar_lea.vmem %s690_s25, 4096  ;;  %p692_p10 = scmp.lt.s32.totalorder %s1077_s3, %s690_s25 }
  0x5d   : > { %p687_p9 = pnand %p685_p4, %p671_p8  ;;  %p693_p12 = scmp.lt.s32.totalorder %s691_s20, %s684_s10 }
  0x5f   : > { %p688_p3 = pneg %p687_p9  ;;  %p694_p6 = por %p693_p12, %p692_p10 }
  0x61   : > { %p695_p13 = pnand %p694_p6, %p688_p3 }
  0x63   : > { %698 = shalt.err (!%p695_p13)
}
  0x64   : > { %s859_s18 = smov 128   ;;  %s860_s22 = smov 8  }
  0x65   : > { %534 = dma.hbm_to_vmem [thread:$0]  (!%p989_p5), %s1067_s4, 2048, %s1077_s3, %s1084_s19, %s859_s18, %s859_s18, %s860_s22  }
  0x66   : > { %s699_s30 = scalar_lea.hbm %s1012_s11, 16  ;;  %p1343_p3 = pneg %p1003_p0 }
  0x67   : > { %p700_p10 = scmp.ne.s32.totalorder %s1012_s11, %s699_s30  ;;  %s704_s10 = scalar_lea.hbm %s1301_s2, 32 }
  0x68   : > { %p705_p7 = scmp.lt.u32.totalorder %s1012_s11, %s1301_s2  ;;  %p706_p1 = scmp.lt.u32.totalorder %s704_s10, %s699_s30 }
  0x69   : > { %p702_p8 = pnand %p700_p10, %p1343_p3  ;;  %p708_p4 = scmp.lt.u32.totalorder %s699_s30, %s1012_s11 }
  0x6a   : > { %p707_p2 = por %p706_p1, %p705_p7 }
  0x6b   : > { %p703_p11 = pneg %p702_p8 }
  0x6c   : > { %p709_p5 = por %p708_p4, %p707_p2 }
  0x6e   : > { %p710_p9 = pnand %p709_p5, %p703_p11 }
  0x70   : > { %713 = shalt.err (!%p710_p9)
}
  0x71   : > { %s714_s8 = scalar_lea.vmem %s212_s1, 16  ;;  %p1344_p6 = pmov %p1343_p3 }
  0x72   : > { %p715_p12 = scmp.ne.s32.totalorder %s212_s1, %s714_s8  ;;  %s861_s4 = smov [#allocation7]  }
  0x73   : > { %s719_s3 = sshll.u32 %s861_s4, 4  ;;  %s720_s3 = int_to_ptr.vmem [resolvable:$false] %s719_s3 }
  0x74   : > { %p717_p13 = pnand %p715_p12, %p1344_p6  ;;  %s721_s26 = scalar_lea.vmem %s720_s3, 32 }
  0x75   : > { %p722_p3 = scmp.lt.s32.totalorder %s212_s1, %s720_s3  ;;  %p723_p8 = scmp.lt.s32.totalorder %s721_s26, %s714_s8 }
  0x76   : > { %p718_p10 = pneg %p717_p13 }
  0x77   : > { %p724_p1 = por %p723_p8, %p722_p3 }
  0x79   : > { %p725_p7 = pnand %p724_p1, %p718_p10 }
  0x7b   : > { %728 = shalt.err (!%p725_p7)
}
  0x7c   : > { %540 = dma.hbm_to_vmem [thread:$0]  (!%p1003_p0), %s1012_s11, 16, %s212_s1, %s1014_s5  }
  0x7d   : > { %p1345_p11 = scmp.ne.s32.totalorder %s1338_s15, 0 }
  0x7e   : > { %s1137_s19 = sand.u32 (!%p1345_p11), 1, %s831_s16   ;;  %p1346_p2 = scmp.ne.s32.totalorder (!%p1345_p11), %s1327_s28, 0 }
  0x7f   : > { %220 = sbr.rel (%p1345_p11) target bundleno = 175 (0xaf), region = 32  ;;  %s510_s20 = sshll.u32 (!%p1345_p11), %s1137_s19, 7 }
  0x80   : > { %s223_s18 = scalar_lea.sflag (!%p1345_p11), [#allocation3], %s1137_s19  ;;  %s1143_s22 = scalar_lea.vmem (!%p1345_p11), [#allocation2], %s510_s20 }
  0x86   : > { %802 = dma.done.wait (%p1346_p2), %s223_s18, 2048  }
  0x87   : > { %804 = vsyncadd (%p1346_p2), %s223_s18, 4294965248  ;;  %s1347_s5 = sld [smem:[#allocation17_spill]]  ;;  %s231_s27 = sand.u32 1, %s939_s23  }
  0x88   : > { %s233_s11 = sand.u32 1, %s819_s13   ;;  %s232_s15 = scalar_lea.sflag [#allocation6], %s231_s27 }
  0x89   : > { %s234_s1 = scalar_lea.vmem [#allocation5], %s233_s11 }
  0x8d   : > { %p1348_p0 = scmp.ne.s32.totalorder %s1347_s5, 0 }
  0x8f   : > { %806 = dma.done.wait (%p1348_p0), %s232_s15, 32  }
  0x90   : > { %808 = vsyncadd (%p1348_p0), %s232_s15, 4294967264  ;;  %s1349_s30 = sld [smem:[#allocation13_spill]]  ;;  %s1350_s7 = sld [smem:[#allocation14_spill]]  ;;  %v275_v0 = vld [vmem:[%s1143_s22] sm:$0xff]  ;;  %v276_v4 = vld [vmem:[%s1143_s22 + $0x8] sm:$0xff]  ;;  %vm337_vm0 = vcmask 64512  }
  0x91   : > { %v512_v1 = vld [vmem:[%s234_s1] ss:$0 sm:$0xff]  ;;  %s242_s23 = scalar_lea.vmem [#allocation7], %s233_s11  ;;  %v277_v5 = vld [vmem:[%s1143_s22 + $0x10] sm:$0xff]  ;;  %v278_v6 = vld [vmem:[%s1143_s22 + $0x18] sm:$0xff]  ;;  %s1180_s9 = scalar_lea.vmem [#allocation8], %s510_s20 }
  0x92   : > { %v1156_v2 = vld [vmem:[%s242_s23] ss:$0 sm:$0xff]  ;;  %v298_v3 = vmul.f32 %v512_v1, %v275_v0  ;;  %v299_v7 = vmul.f32 %v512_v1, %v276_v4  ;;  %v300_v8 = vmul.f32 %v512_v1, %v277_v5  ;;  %v301_v9 = vmul.f32 %v512_v1, %v278_v6  ;;  %v280_v11 = vld [vmem:[%s1143_s22 + $0x28] sm:$0xff]  ;;  %v281_v12 = vld [vmem:[%s1143_s22 + $0x30] sm:$0xff]  ;;  %s371_s25 = sshll.u32 %s1180_s9, 4  ;;  %s1351_s4 = sld [smem:[#allocation18_spill]]  ;;  %s1216_s25 = int_to_ptr.vmem [resolvable:$true] %s371_s25 }
  0x93   : > { %v279_v10 = vld [vmem:[%s1143_s22 + $0x20] sm:$0xff]  ;;  %v303_v15 = vmul.f32 %v512_v1, %v280_v11  ;;  %v304_v16 = vmul.f32 %v512_v1, %v281_v12  ;;  %v282_v17 = vld [vmem:[%s1143_s22 + $0x38] sm:$0xff]  ;;  %v284_v19 = vld [vmem:[%s1143_s22 + $0x48] sm:$0xff]  ;;  %s1352_s20 = sld [smem:[#allocation22_spill]]  ;;  %s729_s27 = scalar_lea.vmem %s1216_s25, 2048 }
  0x94   : > { %v321_v13 = vadd.f32 %v1156_v2, %v298_v3  ;;  %v302_v14 = vmul.f32 %v512_v1, %v279_v10  ;;  %v283_v18 = vld [vmem:[%s1143_s22 + $0x40] sm:$0xff]  ;;  %v322_v20 = vadd.f32 %v1156_v2, %v299_v7  ;;  %v323_v21 = vadd.f32 %v1156_v2, %v300_v8  ;;  %v285_v24 = vld [vmem:[%s1143_s22 + $0x50] sm:$0xff]  ;;  %v286_v25 = vld [vmem:[%s1143_s22 + $0x58] sm:$0xff]  ;;  %p730_p4 = scmp.ne.s32.totalorder %s1216_s25, %s729_s27  ;;  %s862_s11 = smov [#allocation8]  }
  0x95   : > { %v324_v22 = vadd.f32 %v1156_v2, %v301_v9  ;;  %v305_v23 = vmul.f32 %v512_v1, %v282_v17  ;;  %v287_v26 = vld [vmem:[%s1143_s22 + $0x60] sm:$0xff]  ;;  %v326_v28 = vadd.f32 %v1156_v2, %v303_v15  ;;  %v327_v29 = vadd.f32 %v1156_v2, %v304_v16  ;;  %v288_v31 = vld [vmem:[%s1143_s22 + $0x68] sm:$0xff]  ;;  %v289_v32 = vld [vmem:[%s1143_s22 + $0x70] sm:$0xff]  ;;  %s733_s15 = sshll.u32 %s862_s11, 4  ;;  %s734_s15 = int_to_ptr.vmem [resolvable:$false] %s733_s15 }
  0x96   : > { %s522_s28 = sshll.u32 %s1349_s30, 4  ;;  %s517_s6 = sshll.u32 %s1350_s7, 5  ;;  %338 = vst.msk [vmem:[%s1180_s9] sm:$0xff] %vm337_vm0, %v321_v13  ;;  %v325_v27 = vadd.f32 %v1156_v2, %v302_v14  ;;  %v306_v30 = vmul.f32 %v512_v1, %v283_v18  ;;  %v290_v33 = vld [vmem:[%s1143_s22 + $0x78] sm:$0xff]  ;;  %339 = vst.msk [vmem:[%s1180_s9 + $0x8] sm:$0xff] %vm337_vm0, %v322_v20  ;;  %v307_v35 = vmul.f32 %v512_v1, %v284_v19 }
  0x97   : > { %s1176_s10 = sadd.s32 %s522_s28, %s517_s6  ;;  %340 = vst.msk [vmem:[%s1180_s9 + $0x10] sm:$0xff] %vm337_vm0, %v323_v21  ;;  %341 = vst.msk [vmem:[%s1180_s9 + $0x18] sm:$0xff] %vm337_vm0, %v324_v22  ;;  %v328_v34 = vadd.f32 %v1156_v2, %v305_v23  ;;  %v308_v36 = vmul.f32 %v512_v1, %v285_v24  ;;  %v309_v37 = vmul.f32 %v512_v1, %v286_v25  ;;  %s355_s22 = scalar_lea.sflag [#allocation4], %s1137_s19 }
  0x98   : > { %342 = vst.msk [vmem:[%s1180_s9 + $0x20] sm:$0xff] %vm337_vm0, %v325_v27  ;;  %343 = vst.msk [vmem:[%s1180_s9 + $0x28] sm:$0xff] %vm337_vm0, %v326_v28  ;;  %v329_v38 = vadd.f32 %v1156_v2, %v306_v30  ;;  %v310_v39 = vmul.f32 %v512_v1, %v287_v26  ;;  %v311_v40 = vmul.f32 %v512_v1, %v288_v31  ;;  %s518_s8 = sshll.u32 %s1176_s10, 7  ;;  %p1354_p5 = scmp.ne.s32.totalorder %s1351_s4, 0 }
  0x99   : > { %344 = vst.msk [vmem:[%s1180_s9 + $0x30] sm:$0xff] %vm337_vm0, %v327_v29  ;;  %v312_v41 = vmul.f32 %v512_v1, %v289_v32  ;;  %345 = vst.msk [vmem:[%s1180_s9 + $0x38] sm:$0xff] %vm337_vm0, %v328_v34  ;;  %v330_v42 = vadd.f32 %v1156_v2, %v307_v35  ;;  %v331_v43 = vadd.f32 %v1156_v2, %v308_v36  ;;  %s1353_s5 = smov %s1352_s20  ;;  %s1228_s18 = scalar_lea.hbm %s1352_s20, %s518_s8 }
  0x9a   : > { %v332_v44 = vadd.f32 %v1156_v2, %v309_v37  ;;  %v313_v45 = vmul.f32 %v512_v1, %v290_v33  ;;  %346 = vst.msk [vmem:[%s1180_s9 + $0x40] sm:$0xff] %vm337_vm0, %v329_v38  ;;  %v333_v46 = vadd.f32 %v1156_v2, %v310_v39  ;;  %v334_v47 = vadd.f32 %v1156_v2, %v311_v40  ;;  %p731_p9 = pnand %p730_p4, %p1354_p5  ;;  %s735_s1 = scalar_lea.vmem %s734_s15, 4096 }
  0x9b   : > { %v335_v48 = vadd.f32 %v1156_v2, %v312_v41  ;;  %347 = vst.msk [vmem:[%s1180_s9 + $0x48] sm:$0xff] %vm337_vm0, %v330_v42  ;;  %348 = vst.msk [vmem:[%s1180_s9 + $0x50] sm:$0xff] %vm337_vm0, %v331_v43  ;;  %p736_p6 = scmp.lt.s32.totalorder %s1216_s25, %s734_s15  ;;  %p737_p13 = scmp.lt.s32.totalorder %s735_s1, %s729_s27 }
  0x9c   : > { %349 = vst.msk [vmem:[%s1180_s9 + $0x58] sm:$0xff] %vm337_vm0, %v332_v44  ;;  %v336_v49 = vadd.f32 %v1156_v2, %v313_v45  ;;  %350 = vst.msk [vmem:[%s1180_s9 + $0x60] sm:$0xff] %vm337_vm0, %v333_v46  ;;  %p732_p12 = pneg %p731_p9 }
  0x9d   : > { %351 = vst.msk [vmem:[%s1180_s9 + $0x68] sm:$0xff] %vm337_vm0, %v334_v47  ;;  %352 = vst.msk [vmem:[%s1180_s9 + $0x70] sm:$0xff] %vm337_vm0, %v335_v48  ;;  %p738_p10 = por %p737_p13, %p736_p6 }
  0x9e   : > { %353 = vst.msk [vmem:[%s1180_s9 + $0x78] sm:$0xff] %vm337_vm0, %v336_v49 }
  0x9f   : > { %p739_p3 = pnand %p738_p10, %p732_p12 }
  0xa1   : > { %742 = shalt.err (!%p739_p3)
}
  0xa2   : > { %s743_s30 = scalar_lea.hbm %s1228_s18, 2048  ;;  %s747_s28 = scalar_lea.hbm %s1353_s5, 8192 }
  0xa3   : > { %p744_p8 = scmp.ne.s32.totalorder %s1228_s18, %s743_s30  ;;  %p748_p11 = scmp.lt.u32.totalorder %s1228_s18, %s1353_s5 }
  0xa4   : > { %p749_p2 = scmp.lt.u32.totalorder %s747_s28, %s743_s30  ;;  %p751_p4 = scmp.lt.u32.totalorder %s743_s30, %s1228_s18 }
  0xa5   : > { %p745_p1 = pnand %p744_p8, %p1354_p5 }
  0xa6   : > { %p750_p0 = por %p749_p2, %p748_p11 }
  0xa7   : > { %p746_p7 = pneg %p745_p1 }
  0xa8   : > { %p752_p9 = por %p751_p4, %p750_p0 }
  0xaa   : > { %p753_p12 = pnand %p752_p9, %p746_p7 }
  0xac   : > { %756 = shalt.err (!%p753_p12)
}
  0xad   : > { %s863_s9 = smov 128   ;;  %s864_s8 = smov 8  }
  0xae   : > { %529 = dma.vmem_to_hbm [thread:$0]  (%p1354_p5), %s1216_s25, 2048, %s1228_s18, %s355_s22, %s863_s9, %s863_s9, %s864_s8  }
  0xaf PF: > { %s1355_s3 = sld [smem:[#allocation16_spill]]  ;;  %s1356_s26 = sld [smem:[#allocation12_spill]] }
  0xb0   : > { %s1357_s20 = sld [smem:[#allocation19_spill]] }
  0xb5   : > { %p546_p6 = scmp.ge.s32.totalorder %s1355_s3, 2  ;;  %s386_s27 = sand.u32 1, %s1356_s26  }
  0xb6   : > { %p1358_p13 = scmp.ne.s32.totalorder %s1357_s20, 0  ;;  %s387_s11 = scalar_lea.sflag [#allocation4], %s386_s27 }
  0xb8   : > { %p542_p10 = pnand %p546_p6, %p1358_p13 }
  0xba   : > { %810 = dma.done.wait (!%p542_p10), %s387_s11, 2048  }
  0xbb   : > { %812 = vsyncadd (!%p542_p10), %s387_s11, 4294965248  ;;  %s22_s22 = sadd.s32 1, %s1355_s3   ;;  %s1359_s19 = smov %s1075_s12 }
  0xbc   : > { %p19_p3 = scmp.ge.s32.totalorder %s22_s22, 6   ;;  %s1360_s18 = sld [smem:[#allocation15_spill]] }
  0xbd   : > { %s1361_s20 = sld [smem:[#allocation20_spill]]  ;;  %s1362_s12 = smov %s819_s13 }
  0xbe   : > { %s1363_s13 = smov %s823_s14  ;;  %s1364_s14 = smov %s1072_s29 }
  0xbf   : > { %s1365_s15 = smov %s831_s16  ;;  %s1366_s16 = smov %s835_s17 }
  0xc0   : > { %s1367_s17 = smov %s1359_s19  ;;  %s1368_s19 = smov %s851_s21 }
  0xc1   : > { %s1369_s21 = smov %s1375_s24  ;;  %21 = sbr.rel (!%p19_p3) target bundleno = 14 (0xe), region = 101 }
  0xc8   :  { %392 = vsyncpa [#allocation3], 1 }
  0xc9   :  { %394 = vsyncpa [#allocation3 + $0x1], 1 }
  0xca   :  { %395 = vsyncpa [#allocation6], 1 }
  0xcb   :  { %397 = vsyncpa [#allocation6 + $0x1], 1 }
  0xcc   :  { %398 = vsyncpa [#allocation4], 1 }
  0xcd   :  { %400 = vsyncpa [#allocation4 + $0x1], 1 }

// kernel: double_conv_forward.3
= control target key start
LH: loop header
LB: loop body
LE: loop exit
PB: predicated region body
PF: predicated region fallthrough
CT: control target
= control target key end

     0   :  { %s3467_s0 = inlined_call_operand.hbm [shape: f32[2,16,16,4], index: 0, kind: input, shape index: {}, may-alias: {0,1,2}]   ;;  %s3468_s1 = inlined_call_operand.hbm [shape: f32[2,16,16,4], index: 1, kind: input, shape index: {}, may-alias: {0,1,2}]   ;;  %s3469_s2 = inlined_call_operand.hbm [shape: f32[2,16,16,4], index: 2, kind: input, shape index: {}, may-alias: {0,1,2}]   ;;  %s3470_s3 = inlined_call_operand.hbm [shape: f32[36,128], index: 3, kind: input, shape index: {}]   ;;  %s3471_s4 = inlined_call_operand.hbm [shape: f32[2,16,16,128], index: 4, kind: output, shape index: {0}]   ;;  %s3472_s5 = inlined_call_operand.hbm [shape: f32[2,2,2,128], index: 5, kind: output, shape index: {1}]  }
   0x1   :  { %3505 = sst [smem:[#allocation33_spill]] %s3468_s1 }
   0x2   :  { %3506 = sst [smem:[#allocation34_spill]] %s3469_s2 }
   0x3   :  { %3507 = sst [smem:[#allocation35_spill]] %s3470_s3 }
   0x4   :  { %3508 = sst [smem:[#allocation36_spill]] %s3471_s4 }
   0x5   :  { %3509 = sst [smem:[#allocation37_spill]] %s3472_s5 }
   0x6   :  { %11 = vsyncpa [#allocation3], 0 }
   0x7   :  { %13 = vsyncpa [#allocation3 + $0x1], 0 }
   0x8   :  { %14 = vsyncpa [#allocation6], 0 }
   0x9   :  { %16 = vsyncpa [#allocation6 + $0x1], 0 }
   0xa   :  { %17 = vsyncpa [#allocation9], 0 }
   0xb   :  { %18 = vsyncpa [#allocation4], 0 }
   0xc   :  { %20 = vsyncpa [#allocation4 + $0x1], 0 }
   0xd   :  { %21 = vsyncpa [#allocation12], 0 }
   0xe   :  { %23 = vsyncpa [#allocation12 + $0x1], 0  ;;  %s2357_s18 = smov 0   ;;  %s2359_s19 = smov 0  }
   0xf   :  { %s2361_s20 = smov 0   ;;  %s2363_s21 = smov 0  }
  0x10   :  { %s2365_s22 = smov 0   ;;  %s2367_s23 = smov 0  }
  0x11   :  { %s2369_s24 = smov 0   ;;  %s2371_s25 = smov 0  }
  0x12   :  { %s2373_s26 = smov 0   ;;  %s2375_s27 = smov 0  }
  0x13   :  { %s2377_s28 = smov 0   ;;  %s2379_s29 = smov 0  }
  0x14   :  { %s2381_s30 = smov 0   ;;  %s2383_s6 = smov 0  }
  0x15 LB: > { %3510 = sst [smem:[#allocation19_spill]] %s2268_s21  ;;  %s1690_s7 = sadd.s32 4294967294, %s2308_s6   ;;  %s2308_s6 = sphi %s2383_s6, %s29_s6   ;;  %s2304_s30 = sphi %s2381_s30, %s3580_s30   ;;  %s2300_s29 = sphi %s2379_s29, %s3579_s29   ;;  %s2296_s28 = sphi %s2377_s28, %s3590_s28   ;;  %s2292_s27 = sphi %s2375_s27, %s3589_s27   ;;  %s2288_s26 = sphi %s2373_s26, %s3588_s26   ;;  %s2284_s25 = sphi %s2371_s25, %s3587_s25   ;;  %s2280_s24 = sphi %s2369_s24, %s3575_s24   ;;  %s2276_s23 = sphi %s2367_s23, %s3586_s23   ;;  %s2272_s22 = sphi %s2365_s22, %s3585_s22   ;;  %s2268_s21 = sphi %s2363_s21, %s3574_s21   ;;  %s2264_s20 = sphi %s2361_s20, %s3584_s20   ;;  %s2260_s19 = sphi %s2359_s19, %s3583_s19   ;;  %s2256_s18 = sphi %s2357_s18, %s3582_s18  }
  0x16   : > { %3511 = sst [smem:[#allocation20_spill]] %s2272_s22  ;;  %s38_s8 = sadd.s32 1, %s2300_s29 }
  0x17   : > { %3512 = sst [smem:[#allocation21_spill]] %s2284_s25  ;;  %p39_p0 = scmp.ge.s32.totalorder %s38_s8, 2 }
  0x18   : > { %3513 = sst [smem:[#allocation22_spill]] %s2292_s27  ;;  %s41_s9 = sadd.s32 1, %s2304_s30 }
  0x19   : > { %3514 = sst [smem:[#allocation23_spill]] %s2296_s28  ;;  %p3479_p1 = scmp.eq.s32.totalorder %s2308_s6, 0 }
  0x1a   : > { %3515 = sst [smem:[#allocation24_spill]] %s2300_s29  ;;  %s3592_s8 = smov (%p39_p0, %s38_s8), 0 }
  0x1b   : > { %3516 = sst [smem:[#allocation25_spill]] %s2304_s30  ;;  %s3594_s9 = smov (!%p39_p0, %s41_s9), %s2304_s30 }
  0x1c   : > { %3517 = sst [smem:[#allocation26_spill]] %s3592_s8  ;;  %p3480_p2 = scmp.ne.s32.totalorder %s2276_s23, %s2272_s22 }
  0x1d   : > { %p3481_p3 = scmp.ne.s32.totalorder %s2272_s22, %s2268_s21  ;;  %p188_p4 = scmp.eq.s32.totalorder %s1690_s7, 3 }
  0x1e   : > { %p2448_p5 = por %p3480_p2, %p3479_p1  ;;  %p3478_p7 = scmp.lt.s32.totalorder %s2308_s6, 4 }
  0x1f   : > { %p2455_p6 = por %p188_p4, %p3481_p3  ;;  %s2461_s14 = sshll.u32 %s2304_s30, 5 }
  0x20   : > { %s276_s15 = sand.u32 1, %s2308_s6   ;;  %s278_s16 = sand.u32 1, %s2276_s23  }
  0x21   : > { %s3519_s13 = scalar_select %p2455_p6, 1, 0 }
  0x22   : > { %s1706_s17 = sshll.u32 %s278_s16, 7  ;;  %s1750_s7 = sshll.u32 %s2300_s29, 4 }
  0x23   : > { %3520 = sst [smem:[#allocation27_spill]] %s3519_s13  ;;  %s287_s10 = sadd.s32 %s1750_s7, %s2461_s14 }
  0x24   : > { %s1710_s11 = sshll.u32 %s287_s10, 7  ;;  %s280_s5 = scalar_lea.vmem [#allocation5], %s1706_s17 }
  0x25   : > { %s290_s4 = sshll.u32 %s280_s5, 4  ;;  %s3521_s1 = sld [smem:[#allocation33_spill]]  ;;  %s2472_s4 = int_to_ptr.vmem [resolvable:$true] %s290_s4 }
  0x26   : > { %p2478_p8 = pnand %p3478_p7, %p2448_p5  ;;  %s2482_s5 = scalar_lea.sflag [#allocation6], %s276_s15 }
  0x28   : > { %p2002_p10 = pneg %p2478_p8 }
  0x2b   : > { %s2470_s2 = scalar_lea.hbm %s3521_s1, %s1710_s11  ;;  %s2005_s11 = scalar_lea.hbm %s3521_s1, 8192 }
  0x2c   : > { %s2000_s10 = scalar_lea.hbm %s2470_s2, 2048  ;;  %p2006_p13 = scmp.lt.u32.totalorder %s2470_s2, %s3521_s1 }
  0x2d   : > { %p2001_p9 = scmp.ne.s32.totalorder %s2470_s2, %s2000_s10  ;;  %p2007_p0 = scmp.lt.u32.totalorder %s2005_s11, %s2000_s10 }
  0x2e   : > { %p2009_p5 = scmp.lt.u32.totalorder %s2000_s10, %s2470_s2 }
  0x2f   : > { %p2003_p11 = pnand %p2002_p10, %p2001_p9  ;;  %p2008_p4 = por %p2007_p0, %p2006_p13 }
  0x31   : > { %p2004_p12 = pneg %p2003_p11  ;;  %p2010_p7 = por %p2009_p5, %p2008_p4 }
  0x33   : > { %p2011_p1 = pnand %p2010_p7, %p2004_p12 }
  0x35   : > { %2014 = shalt.err (!%p2011_p1)
}
  0x36   : > { %s2015_s15 = scalar_lea.vmem %s2472_s4, 2048  ;;  %s2310_s7 = smov [#allocation5]  }
  0x37   : > { %p2016_p9 = scmp.ne.s32.totalorder %s2472_s4, %s2015_s15  ;;  %s2020_s27 = sshll.u32 %s2310_s7, 4  ;;  %s2021_s27 = int_to_ptr.vmem [resolvable:$false] %s2020_s27 }
  0x38   : > { %s2022_s28 = scalar_lea.vmem %s2021_s27, 4096  ;;  %p2023_p3 = scmp.lt.s32.totalorder %s2472_s4, %s2021_s27 }
  0x39   : > { %p2018_p11 = pnand %p2016_p9, %p2002_p10  ;;  %p2024_p13 = scmp.lt.s32.totalorder %s2022_s28, %s2015_s15 }
  0x3b   : > { %p2019_p2 = pneg %p2018_p11  ;;  %p2025_p0 = por %p2024_p13, %p2023_p3 }
  0x3d   : > { %p2026_p4 = pnand %p2025_p0, %p2019_p2 }
  0x3f   : > { %2029 = shalt.err (!%p2026_p4)
}
  0x40   : > { %s3482_s10 = smov 128   ;;  %s3484_s11 = smov 8  }
  0x41   : > { %1849 = dma.hbm_to_vmem [thread:$0]  (!%p2478_p8), %s2470_s2, 2048, %s2472_s4, %s2482_s5, %s3482_s10, %s3482_s10, %s3484_s11  }
  0x42   : > { %s2514_s12 = sadd.s32 4294967295, %s2308_s6   ;;  %p1697_p1 = scmp.ge.s32.totalorder %s2308_s6, 1 }
  0x43   : > { %p3488_p2 = scmp.eq.s32.totalorder %s2514_s12, 0  ;;  %p182_p3 = scmp.eq.s32.totalorder %s2514_s12, 3 }
  0x44   : > { %p223_p7 = scmp.lt.s32.totalorder %s2308_s6, 5  ;;  %p3523_p10 = scmp.ne.s32.totalorder %s2272_s22, %s2268_s21 }
  0x45   : > { %p3526_p5 = scmp.ne.s32.totalorder %s2276_s23, %s2272_s22  ;;  %s2313_s4 = smov [#allocation8]  }
  0x46   : > { %p2525_p12 = por %p3523_p10, %p3488_p2  ;;  %p2536_p8 = pnand %p1697_p1, %p223_p7 }
  0x47   : > { %p2532_p9 = por %p182_p3, %p3526_p5  ;;  %s235_s15 = sshll.u32 %s2313_s4, 4  ;;  %s236_s15 = int_to_ptr.vmem [resolvable:$true] %s235_s15 }
  0x48   : > { %s3524_s17 = scalar_select %p2525_p12, 1, 0 }
  0x49   : > { %s3527_s16 = scalar_select %p2532_p9, 1, 0 }
  0x4a   : > { %3525 = sst [smem:[#allocation28_spill]] %s3524_s17  ;;  %p1839_p11 = pneg %p2536_p8 }
  0x4b   : > { %3528 = sst [smem:[#allocation29_spill]] %s3527_s16  ;;  %s3531_s3 = sld [smem:[#allocation35_spill]] }
  0x4c   : > { %s3529_s2 = scalar_select %p2536_p8, 1, 0 }
  0x4d   : > { %p2544_p13 = pnand %p1839_p11, %p3488_p2 }
  0x4f   : > { %p2032_p1 = pneg %p2544_p13 }
  0x51   : > { %s2030_s10 = scalar_lea.hbm %s3531_s3, 640 }
  0x52   : > { %p2031_p4 = scmp.ne.s32.totalorder %s3531_s3, %s2030_s10  ;;  %p2037_p10 = scmp.lt.u32.totalorder %s2030_s10, %s3531_s3 }
  0x54   : > { %p2033_p3 = pnand %p2032_p1, %p2031_p4 }
  0x56   : > { %p2034_p7 = pneg %p2033_p3 }
  0x58   : > { %p2039_p5 = pnand %p2037_p10, %p2034_p7 }
  0x5a   : > { %2042 = shalt.err (!%p2039_p5)
}
  0x5b   : > { %s2043_s21 = scalar_lea.vmem %s236_s15, 640  ;;  %p2051_p6 = scmp.lt.s32.totalorder %s236_s15, %s236_s15 }
  0x5c   : > { %p2044_p11 = scmp.ne.s32.totalorder %s236_s15, %s2043_s21  ;;  %p2052_p9 = scmp.lt.s32.totalorder %s2043_s21, %s2043_s21 }
  0x5e   : > { %p2046_p2 = pnand %p2044_p11, %p2032_p1  ;;  %p2053_p12 = por %p2052_p9, %p2051_p6 }
  0x60   : > { %p2047_p0 = pneg %p2046_p2 }
  0x62   : > { %p2054_p8 = pnand %p2053_p12, %p2047_p0 }
  0x64   : > { %2057 = shalt.err (!%p2054_p8)
}
  0x65   : > { %s3532_s1 = smov 8   ;;  %s3533_s11 = smov 128  }
  0x66   : > { %1842 = dma.hbm_to_vmem [thread:$0]  (!%p2544_p13), %s3531_s3, 640, %s236_s15, [#allocation9], %s3533_s11, %s3533_s11, %s3532_s1  }
  0x67   : > { %p3534_p6 = scmp.ge.s32.totalorder %s3594_s9, 2  ;;  %s1691_s21 = sshll.u32 %s2300_s29, 3 }
  0x68   : > { %s1693_s13 = sshll.u32 %s3592_s8, 3  ;;  %s1692_s10 = sadd.s32 4294967295, %s1691_s21 }
  0x69   : > { %s3596_s9 = smov (%p3534_p6, %s3594_s9), 0  ;;  %s1694_s7 = sadd.s32 4294967295, %s1693_s13 }
  0x6a   : > { %3535 = sst [smem:[#allocation30_spill]] %s3596_s9  ;;  %p47_p2 = scmp.gt.s32.totalorder %s1692_s10, 0 }
  0x6b   : > { %p51_p12 = scmp.gt.s32.totalorder %s1694_s7, 0  ;;  %s2577_s4 = ssub.s32 %s2304_s30, %s3596_s9 }
  0x6c   : > { %s58_s15 = sadd.s32 1, %s2288_s26  ;;  %s3598_s10 = smov (!%p47_p2, %s1692_s10), 0 }
  0x6d   : > { %s3600_s7 = smov (!%p51_p12, %s1694_s7), 0  ;;  %p65_p9 = scmp.ne.s32.totalorder %s2288_s26, %s2284_s25 }
  0x6e   : > { %p71_p8 = scmp.ne.s32.totalorder %s2284_s25, %s2280_s24  ;;  %s54_s27 = ssub.s32 %s3598_s10, %s3600_s7 }
  0x6f   : > { %s3536_s28 = ssub.s32 %s2300_s29, %s3592_s8  ;;  %s55_s16 = sor.u32 %s54_s27, %s2577_s4 }
  0x70   : > { %s83_s3 = sor.u32 %s3536_s28, %s2577_s4  ;;  %p3537_p13 = scmp.eq.s32.totalorder %s2308_s6, 0 }
  0x71   : > { %p56_p4 = scmp.eq.s32.totalorder %s55_s16, 0  ;;  %p3539_p1 = scmp.eq.s32.totalorder %s2514_s12, 0 }
  0x72   : > { %p2591_p0 = por %p3537_p13, %p65_p9  ;;  %p84_p7 = scmp.eq.s32.totalorder %s83_s3, 0 }
  0x73   : > { %p2597_p3 = por %p3539_p1, %p71_p8  ;;  %s2601_s24 = sadd.s32 8, %s1691_s21 }
  0x74   : > { %s2604_s7 = scalar_select %p56_p4, %s2288_s26, %s58_s15  }
  0x75   : > { %s3540_s9 = scalar_select %p2597_p3, 1, 0 }
  0x76   : > { %3542 = sst [smem:[#allocation32_spill]] %s2604_s7  ;;  %s3543_s27 = sadd.s32 1, %s2276_s23 }
  0x77   : > { %3541 = sst [smem:[#allocation31_spill]] %s3540_s9  ;;  %s2612_s8 = sadd.s32 8, %s1693_s13 }
  0x78   : > { %s2609_s28 = scalar_select %p84_p7, %s2276_s23, %s3543_s27  }
  0x79   : > { %s249_s16 = sand.u32 1, %s2288_s26   ;;  %s1703_s29 = sshll.u32 %s3598_s10, 1 }
  0x7a   : > { %s1700_s30 = sshll.u32 %s249_s16, 4  ;;  %s263_s22 = sadd.s32 %s2461_s14, %s1703_s29 }
  0x7b   : > { %s253_s3 = scalar_lea.vmem [#allocation2], %s1700_s30  ;;  %s1705_s25 = sshll.u32 %s263_s22, 7 }
  0x7c   : > { %s266_s9 = sshll.u32 %s253_s3, 4  ;;  %s2622_s7 = scalar_lea.hbm %s3467_s0, %s1705_s25  ;;  %s2617_s9 = int_to_ptr.vmem [resolvable:$true] %s266_s9 }
  0x7d   : > { %p3544_p11 = scmp.lt.s32.totalorder %s2308_s6, 4  ;;  %s2632_s22 = scalar_lea.sflag [#allocation3], %s249_s16 }
  0x7e   : > { %s2058_s29 = scalar_lea.hbm %s2622_s7, 256  ;;  %s2063_s17 = scalar_lea.hbm %s3467_s0, 8192 }
  0x7f   : > { %p2628_p6 = pnand %p3544_p11, %p2591_p0  ;;  %p2059_p2 = scmp.ne.s32.totalorder %s2622_s7, %s2058_s29 }
  0x80   : > { %p2064_p13 = scmp.lt.u32.totalorder %s2622_s7, %s3467_s0  ;;  %p2065_p0 = scmp.lt.u32.totalorder %s2063_s17, %s2058_s29 }
  0x81   : > { %p2060_p12 = pneg %p2628_p6  ;;  %p2067_p1 = scmp.lt.u32.totalorder %s2058_s29, %s2622_s7 }
  0x82   : > { %p2066_p4 = por %p2065_p0, %p2064_p13 }
  0x83   : > { %p2061_p9 = pnand %p2060_p12, %p2059_p2 }
  0x84   : > { %p2068_p7 = por %p2067_p1, %p2066_p4 }
  0x85   : > { %p2062_p8 = pneg %p2061_p9 }
  0x87   : > { %p2069_p11 = pnand %p2068_p7, %p2062_p8 }
  0x89   : > { %2072 = shalt.err (!%p2069_p11)
}
  0x8a   : > { %s2073_s16 = scalar_lea.vmem %s2617_s9, 256  ;;  %s2314_s3 = smov [#allocation2]  }
  0x8b   : > { %p2074_p2 = scmp.ne.s32.totalorder %s2617_s9, %s2073_s16  ;;  %s2078_s21 = sshll.u32 %s2314_s3, 4  ;;  %s2079_s21 = int_to_ptr.vmem [resolvable:$false] %s2078_s21 }
  0x8c   : > { %s2080_s15 = scalar_lea.vmem %s2079_s21, 512  ;;  %p2081_p10 = scmp.lt.s32.totalorder %s2617_s9, %s2079_s21 }
  0x8d   : > { %p2076_p9 = pnand %p2074_p2, %p2060_p12  ;;  %p2082_p13 = scmp.lt.s32.totalorder %s2080_s15, %s2073_s16 }
  0x8f   : > { %p2077_p5 = pneg %p2076_p9  ;;  %p2083_p0 = por %p2082_p13, %p2081_p10 }
  0x91   : > { %p2084_p4 = pnand %p2083_p0, %p2077_p5 }
  0x93   : > { %2087 = shalt.err (!%p2084_p4)
}
  0x94   : > { %1846 = dma.hbm_to_vmem [thread:$0]  (!%p2628_p6), %s2622_s7, 256, %s2617_s9, %s2632_s22, %s3533_s11, %s3533_s11, %s3532_s1  }
  0x95   : > { %s122_s13 = sadd.s32 1, %s2264_s20  ;;  %p3546_p10 = scmp.lt.s32.totalorder %s2601_s24, 15 }
  0x96   : > { %p3547_p5 = scmp.lt.s32.totalorder %s2612_s8, 15  ;;  %p129_p12 = scmp.ne.s32.totalorder %s2264_s20, %s2260_s19 }
  0x97   : > { %s3602_s24 = smov (!%p3546_p10, %s2601_s24), 15  ;;  %p135_p8 = scmp.ne.s32.totalorder %s2260_s19, %s2256_s18 }
  0x98   : > { %s3604_s8 = smov (!%p3547_p5, %s2612_s8), 15  ;;  %s302_s25 = sand.u32 1, %s2264_s20  }
  0x99   : > { %s118_s29 = ssub.s32 %s3602_s24, %s3604_s8  ;;  %p3548_p1 = scmp.eq.s32.totalorder %s2308_s6, 0 }
  0x9a   : > { %s119_s30 = sor.u32 %s118_s29, %s2577_s4  ;;  %p3549_p2 = scmp.eq.s32.totalorder %s2514_s12, 0 }
  0x9b   : > { %p131_p7 = por %p129_p12, %p3548_p1  ;;  %p120_p11 = scmp.eq.s32.totalorder %s119_s30, 0 }
  0x9c   : > { %p2680_p9 = por %p135_p8, %p3549_p2  ;;  %s1711_s9 = sshll.u32 %s302_s25, 4 }
  0x9d   : > { %s1713_s7 = sshll.u32 %s3602_s24, 1  ;;  %s304_s16 = scalar_lea.vmem [#allocation7], %s1711_s9 }
  0x9e   : > { %s3550_s17 = scalar_select %p2680_p9, 1, 0 }
  0x9f   : > { %s2685_s22 = scalar_select %p120_p11, %s2264_s20, %s122_s13  }
  0xa0   : > { %s314_s10 = sadd.s32 %s1713_s7, %s2461_s14  ;;  %s317_s18 = sshll.u32 %s304_s16, 4  ;;  %s2693_s18 = int_to_ptr.vmem [resolvable:$true] %s317_s18 }
  0xa1   : > { %s1715_s27 = sshll.u32 %s314_s10, 7  ;;  %s3551_s21 = sld [smem:[#allocation34_spill]] }
  0xa2   : > { %p3553_p6 = scmp.lt.s32.totalorder %s2308_s6, 4 }
  0xa4   : > { %p2697_p13 = pnand %p3553_p6, %p131_p7 }
  0xa6   : > { %p2090_p4 = pneg %p2697_p13 }
  0xa7   : > { %s3552_s15 = smov %s3551_s21  ;;  %s2691_s4 = scalar_lea.hbm %s3551_s21, %s1715_s27 }
  0xa8   : > { %s2088_s14 = scalar_lea.hbm %s2691_s4, 256  ;;  %s2093_s25 = scalar_lea.hbm %s3552_s15, 8192 }
  0xa9   : > { %p2089_p0 = scmp.ne.s32.totalorder %s2691_s4, %s2088_s14  ;;  %p2094_p12 = scmp.lt.u32.totalorder %s2691_s4, %s3552_s15 }
  0xaa   : > { %p2095_p8 = scmp.lt.u32.totalorder %s2093_s25, %s2088_s14  ;;  %p2097_p7 = scmp.lt.u32.totalorder %s2088_s14, %s2691_s4 }
  0xab   : > { %p2091_p10 = pnand %p2090_p4, %p2089_p0 }
  0xac   : > { %p2096_p1 = por %p2095_p8, %p2094_p12 }
  0xad   : > { %p2092_p5 = pneg %p2091_p10 }
  0xae   : > { %p2098_p11 = por %p2097_p7, %p2096_p1 }
  0xb0   : > { %p2099_p2 = pnand %p2098_p11, %p2092_p5 }
  0xb2   : > { %2102 = shalt.err (!%p2099_p2)
}
  0xb3   : > { %s2103_s7 = scalar_lea.vmem %s2693_s18, 256  ;;  %s2315_s10 = smov [#allocation7]  }
  0xb4   : > { %p2104_p6 = scmp.ne.s32.totalorder %s2693_s18, %s2103_s7  ;;  %s2108_s27 = sshll.u32 %s2315_s10, 4  ;;  %s2109_s27 = int_to_ptr.vmem [resolvable:$false] %s2108_s27 }
  0xb5   : > { %s2110_s16 = scalar_lea.vmem %s2109_s27, 512  ;;  %p2111_p9 = scmp.lt.s32.totalorder %s2693_s18, %s2109_s27 }
  0xb6   : > { %p2106_p0 = pnand %p2104_p6, %p2090_p4  ;;  %p2112_p12 = scmp.lt.s32.totalorder %s2110_s16, %s2103_s7 }
  0xb8   : > { %p2107_p10 = pneg %p2106_p0  ;;  %p2113_p8 = por %p2112_p12, %p2111_p9 }
  0xba   : > { %p2114_p1 = pnand %p2113_p8, %p2107_p10 }
  0xbc   : > { %2117 = shalt.err (!%p2114_p1)
}
  0xbd   : > { %1852 = dma.hbm_to_vmem [thread:$0]  (!%p2697_p13), %s2691_s4, 256, %s2693_s18, %s2482_s5, %s3533_s11, %s3533_s11, %s3532_s1  }
  0xbe   : > { %p3555_p4 = scmp.ne.s32.totalorder %s3529_s2, 0 }
  0xbf   : > { %s3556_s3 = sld [smem:[#allocation21_spill]] (!%p3555_p4) }
  0xc0   : > { %329 = sbr.rel (%p3555_p4) target bundleno = 1035 (0x40b), region = 36 }
  0xc5   : > { %s331_s21 = sand.u32 (!%p3555_p4), 1, %s3556_s3  }
  0xc6   : > { %s2733_s14 = sshll.u32 (!%p3555_p4), %s331_s21, 4  ;;  %s332_s13 = scalar_lea.sflag (!%p3555_p4), [#allocation3], %s331_s21 }
  0xc7   : > { %s335_s29 = scalar_lea.vmem [#allocation2], %s2733_s14 }
  0xc8   : > { %2231 = dma.done.wait (%p2597_p3), %s332_s13, 256  }
  0xc9   : > { %2233 = vsyncadd (%p2597_p3), %s332_s13, 4294967040  ;;  %s3558_s24 = sld [smem:[#allocation20_spill]]  ;;  %s3559_s25 = sld [smem:[#allocation28_spill]] }
  0xca   : > { %s340_s5 = sand.u32 1, %s2514_s12  }
  0xcb   : > { %s341_s11 = scalar_lea.sflag [#allocation6], %s340_s5 }
  0xcf   : > { %s2742_s1 = sand.u32 1, %s3558_s24   ;;  %p3560_p9 = scmp.ne.s32.totalorder %s3559_s25, 0 }
  0xd0   : > { %s1718_s2 = sshll.u32 %s2742_s1, 7 }
  0xd1   : > { %s2747_s18 = scalar_lea.vmem [#allocation5], %s1718_s2 }
  0xd2   : > { %2235 = dma.done.wait (%p3560_p9), %s341_s11, 2048  }
  0xd3   : > { %2237 = vsyncadd (%p3560_p9), %s341_s11, 4294965248  ;;  %s351_s4 = sand.u32 1, %s2260_s19   ;;  %p3561_p3 = scmp.ne.s32.totalorder %s3550_s17, 0 }
  0xd4   : > { %s2754_s30 = sshll.u32 %s351_s4, 4 }
  0xd5   : > { %s353_s9 = scalar_lea.vmem [#allocation7], %s2754_s30 }
  0xd6   : > { %2239 = dma.done.wait (%p3561_p3), %s341_s11, 256  }
  0xd7   : > { %2241 = vsyncadd (%p3561_p3), %s341_s11, 4294967040  ;;  %p3562_p13 = scmp.eq.s32.totalorder %s2514_s12, 0 }
  0xd9   : > { %2243 = dma.done.wait (%p3562_p13), [#allocation9], 640   ;;  %p3563_p5 = pmov %p3562_p13 }
  0xda   : > { %s3564_s7 = sld [smem:[#allocation22_spill]]  ;;  %v411_v0 = vld [vmem:[%s2747_s18] sm:$0xff]  ;;  %vm461_vm0 = vcmask 1040384   ;;  %v412_v1 = vld [vmem:[%s2747_s18 + $0x8] sm:$0xff]  ;;  %vm561_vm1 = vcmask 1046528   ;;  %s2316_s12 = smov 12  }
  0xdb   : > { %2245 = vsyncadd (%p3563_p5), [#allocation9], 4294966656  ;;  %v465_v2 = vrot.slane %v411_v0, 7  ;;  %v466_v3 = vrot.slane %v412_v1, 7  ;;  %vm650_vm2 = vcmask 1045504   ;;  %s2317_s17 = smov 4  }
  0xdc   : > { %s2318_s27 = smov 16   ;;  %s2319_s16 = smov 8   ;;  %v413_v32 = vld [vmem:[%s2747_s18 + $0x10] sm:$0xff]  ;;  %v414_v33 = vld [vmem:[%s2747_s18 + $0x18] sm:$0xff]  ;;  %v540_v40 = vld [vmem:[#allocation8] sm:$0xff]  ;;  %vm1236_vm3 = vcmask 1043456  }
  0xdd   : > { %v2769_v5 = vsel %vm461_vm0, 0.0, %v465_v2  ;;  %v2772_v6 = vsel %vm461_vm0, %v465_v2, %v466_v3  ;;  %v531_v24 = vsel %vm461_vm0, %v466_v3, 0.0  ;;  %s2320_s3 = smov 20   ;;  %v468_v34 = vrot.slane %v413_v32, 7  ;;  %v541_v41 = vld [vmem:[#allocation8 + $0x8] sm:$0xff]  ;;  %s2321_s8 = smov 24  }
  0xde   : > { %740 = vrot.lane.b32.xlu0 %v2769_v5, %s2316_s12  ;;  %742 = vrot.lane.b32.xlu1 %v2772_v6, %s2316_s12  ;;  %v567_v9 = vrot.slane %v2769_v5, 1  ;;  %v568_v10 = vrot.slane %v2772_v6, 1  ;;  %v656_v25 = vrot.slane %v2769_v5, 2  ;;  %v657_v28 = vrot.slane %v2772_v6, 2  ;;  %v542_v45 = vld [vmem:[#allocation8 + $0x10] sm:$0xff]  ;;  %v543_v46 = vld [vmem:[#allocation8 + $0x18] sm:$0xff] }
  0xdf   : > { %v570_v29 = vrot.slane %v531_v24, 1  ;;  %v659_v35 = vrot.slane %v531_v24, 2  ;;  %v469_v36 = vrot.slane %v414_v33, 7  ;;  %v2814_v37 = vsel %vm461_vm0, 0.0, %v468_v34  ;;  %s2322_s21 = smov 28   ;;  %s2323_s14 = smov 32  }
  0xe0   : > { %p429_p7 = scmp.eq.s32.totalorder %s3564_s7, 0  ;;  %v569_v13 = vsel %vm561_vm1, %v567_v9, %v568_v10  ;;  %v658_v30 = vsel %vm650_vm2, %v656_v25, %v657_v28  ;;  %v1807_v42 = vpack.c.bf16 %v541_v41, %v540_v40  ;;  %v572_v43 = vrot.slane %v2814_v37, 1  ;;  %v544_v50 = vld [vmem:[#allocation8 + $0x20] sm:$0xf]  ;;  %v416_v59 = vld [vmem:[%s2747_s18 + $0x28] sm:$0xff]  ;;  %p435_p11 = scmp.eq.s32.totalorder %s3564_s7, 1 }
  0xe1   : > { %v571_v31 = vsel %vm561_vm1, %v568_v10, %v570_v29  ;;  %v660_v38 = vsel %vm650_vm2, %v657_v28, %v659_v35  ;;  %v2818_v39 = vsel %vm461_vm0, %v468_v34, %v469_v36  ;;  %v1811_v48 = vpack.c.bf16 %v543_v46, %v542_v45  ;;  %v415_v58 = vld [vmem:[%s2747_s18 + $0x20] sm:$0xff]  ;;  %v420_v33 = vld [vmem:[%s2747_s18 + $0x48] sm:$0xff]  ;;  %s3565_s24 = sld [smem:[#allocation23_spill]]  ;;  %s3566_s25 = sld [smem:[#allocation29_spill]] }
  0xe2   : > { %s1989_s10 = scalar_select %p429_p7, 0, 255  ;;  %606 = vrot.lane.b32.xlu1 %v569_v13, %s2317_s17  ;;  %794 = vrot.lane.b32.xlu0 %v569_v13, %s2318_s27  ;;  %v573_v44 = vrot.slane %v2818_v39, 1  ;;  %v532_v49 = vsel %vm461_vm0, %v469_v36, 0.0  ;;  %v661_v51 = vrot.slane %v2814_v37, 2  ;;  %v662_v52 = vrot.slane %v2818_v39, 2 }
  0xe3   : > { %1808 = vmatprep.subr.bf16.mxu0 %v1807_v42  ;;  %1815 = vmatprep.subr.bf16.mxu1 %v1807_v42  ;;  %v575_v53 = vrot.slane %v532_v49, 1  ;;  %v664_v56 = vrot.slane %v532_v49, 2  ;;  %v471_v60 = vrot.slane %v415_v58, 7  ;;  %v472_v61 = vrot.slane %v416_v59, 7  ;;  %v419_v32 = vld [vmem:[%s2747_s18 + $0x40] sm:$0xff]  ;;  %s1751_s5 = sshll.u32 %s3564_s7, 4 }
  0xe4   : > { %v1990_v4 = vld [vmem:[%s335_s29] sm:%s1989_s10]  ;;  %v1993_v7 = vld [vmem:[%s335_s29 + $0x8] sm:%s1989_s10]  ;;  %1810 = vmatpush3.bf16.msra.mxu0 %v1807_v42  ;;  %1818 = vmatpush3.bf16.msra.mxu1 %v1807_v42  ;;  %v574_v47 = vsel %vm561_vm1, %v572_v43, %v573_v44  ;;  %v663_v54 = vsel %vm650_vm2, %v661_v51, %v662_v52  ;;  %v477_v34 = vrot.slane %v419_v32, 7  ;;  %vm1051_vm4 = vcmask 31744   ;;  %s1995_s13 = scalar_select %p435_p11, 0, 255 }
  0xe5   : > { %v462_v8 = vrot.slane %v1990_v4, 7  ;;  %v463_v11 = vrot.slane %v1993_v7, 7  ;;  %1812 = vmatprep.subr.bf16.mxu0 %v1811_v48  ;;  %1816 = vmatprep.subr.bf16.mxu1 %v1811_v48  ;;  %v576_v55 = vsel %vm561_vm1, %v573_v44, %v575_v53  ;;  %v665_v57 = vsel %vm650_vm2, %v662_v52, %v664_v56  ;;  %s3329_s29 = scalar_lea.vmem [#allocation10], %s1718_s2 }
  0xe6   : > { %v2852_v62 = vsel %vm461_vm0, 0.0, %v471_v60  ;;  %v2855_v63 = vsel %vm461_vm0, %v471_v60, %v472_v61  ;;  %v533_v3 = vsel %vm461_vm0, %v472_v61, 0.0  ;;  %v2929_v40 = vsel %vm461_vm0, 0.0, %v477_v34 }
  0xe7   : > { %v2781_v12 = vsel %vm461_vm0, 0.0, %v462_v8  ;;  %v2785_v14 = vsel %vm461_vm0, %v462_v8, %v463_v11  ;;  %v530_v19 = vsel %vm461_vm0, %v463_v11, 0.0  ;;  %v577_v0 = vrot.slane %v2852_v62, 1  ;;  %s1744_s2 = sshll.u32 %s3565_s24, 5  ;;  %p3568_p6 = scmp.ne.s32.totalorder %s3566_s25, 0 }
  0xe8   : > { %v651_v15 = vrot.slane %v2781_v12, 2  ;;  %v562_v16 = vrot.slane %v2781_v12, 1  ;;  %v652_v17 = vrot.slane %v2785_v14, 2  ;;  %v563_v18 = vrot.slane %v2785_v14, 1  ;;  %1814 = vmatpush3.bf16.msra.mxu0 %v1811_v48  ;;  %1819 = vmatpush3.bf16.msra.mxu1 %v1811_v48  ;;  %s1488_s11 = sadd.s32 %s1751_s5, %s1744_s2 }
  0xe9   : > { %v654_v22 = vrot.slane %v530_v19, 2  ;;  %v565_v23 = vrot.slane %v530_v19, 1  ;;  %1781 = vmatprep.subr.msk.mxu0 %vm1236_vm3, %v544_v50  ;;  %1817 = vmatprep.subr.msk.mxu1 %vm1236_vm3, %v544_v50  ;;  %v578_v1 = vrot.slane %v2855_v63, 1  ;;  %v666_v4 = vrot.slane %v2852_v62, 2 }
  0xea   : > { %v653_v20 = vsel %vm650_vm2, %v651_v15, %v652_v17  ;;  %v564_v21 = vsel %vm561_vm1, %v562_v16, %v563_v18  ;;  %v667_v7 = vrot.slane %v2855_v63, 2  ;;  %v580_v8 = vrot.slane %v533_v3, 1  ;;  %v417_v15 = vld [vmem:[%s2747_s18 + $0x30] sm:$0xff]  ;;  %v418_v16 = vld [vmem:[%s2747_s18 + $0x38] sm:$0xff] }
  0xeb   : > { %691 = vrot.lane.b32.xlu1 %v653_v20, %s2319_s16  ;;  %602 = vrot.lane.b32.xlu0 %v564_v21, %s2317_s17  ;;  %v655_v26 = vsel %vm650_vm2, %v652_v17, %v654_v22  ;;  %v566_v27 = vsel %vm561_vm1, %v563_v18, %v565_v23  ;;  %v579_v2 = vsel %vm561_vm1, %v577_v0, %v578_v1  ;;  %v669_v11 = vrot.slane %v533_v3, 2 }
  0xec   : > { %1782 = vmatpush3.msk.msra.mxu0 %vm1236_vm3, %v544_v50  ;;  %1820 = vmatpush3.msk.msra.mxu1 %vm1236_vm3, %v544_v50  ;;  %v668_v9 = vsel %vm650_vm2, %v666_v4, %v667_v7  ;;  %v581_v10 = vsel %vm561_vm1, %v578_v1, %v580_v8  ;;  %v474_v17 = vrot.slane %v417_v15, 7  ;;  %v475_v18 = vrot.slane %v418_v16, 7  ;;  %v421_v8 = vld [vmem:[%s2747_s18 + $0x50] sm:$0xff] }
  0xed   : > { %v670_v13 = vsel %vm650_vm2, %v667_v7, %v669_v11  ;;  %v587_v44 = vrot.slane %v2929_v40, 1  ;;  %v676_v52 = vrot.slane %v2929_v40, 2  ;;  %vm1068_vm5 = vcmask 64512  }
  0xee   : > { %v2889_v19 = vsel %vm461_vm0, 0.0, %v474_v17  ;;  %v2892_v20 = vsel %vm461_vm0, %v474_v17, %v475_v18  ;;  %v534_v24 = vsel %vm461_vm0, %v475_v18, 0.0  ;;  %vm1085_vm6 = vcmask 97280  }
  0xef   : > { %693 = vrot.lane.b32.xlu1 %v655_v26, %s2319_s16  ;;  %604 = vrot.lane.b32.xlu0 %v566_v27, %s2317_s17  ;;  %v582_v21 = vrot.slane %v2889_v19, 1  ;;  %v583_v22 = vrot.slane %v2892_v20, 1  ;;  %v671_v25 = vrot.slane %v2889_v19, 2  ;;  %v672_v26 = vrot.slane %v2892_v20, 2 }
  0xf0   : > { %v585_v27 = vrot.slane %v534_v24, 1  ;;  %v480_v11 = vrot.slane %v421_v8, 7  ;;  %vm1102_vm7 = vcmask 130048   ;;  %vm1119_vm8 = vcmask 162816   ;;  %v424_v8 = vld [vmem:[%s2747_s18 + $0x68] sm:$0xff] }
  0xf1   : > { %v584_v23 = vsel %vm561_vm1, %v582_v21, %v583_v22  ;;  %v673_v28 = vsel %vm650_vm2, %v671_v25, %v672_v26  ;;  %vm1136_vm9 = vcmask 195584   ;;  %vm1153_vm10 = vcmask 228352  }
  0xf2   : > { %v586_v29 = vsel %vm561_vm1, %v583_v22, %v585_v27  ;;  %v2982_v17 = vsel %vm461_vm0, 0.0, %v480_v11  ;;  %vm1170_vm11 = vcmask 261120   ;;  %vm1187_vm12 = vcmask 293888  }
  0xf3   : > { %847 = vrot.lane.b32.xlu1 %v658_v30, %s2320_s3  ;;  %796 = vrot.lane.b32.xlu0 %v571_v31, %s2318_s27  ;;  %v592_v27 = vrot.slane %v2982_v17, 1 }
  0xf7   : > { %695 = vrot.lane.b32.xlu1 %v658_v30, %s2319_s16  ;;  %608 = vrot.lane.b32.xlu0 %v571_v31, %s2317_s17  ;;  %v674_v30 = vrot.slane %v534_v24, 2 }
  0xf9   : > { %v675_v31 = vsel %vm650_vm2, %v672_v26, %v674_v30 }
  0xfb   : > { %896 = vrot.lane.b32.xlu1 %v2814_v37, %s2321_s8  ;;  %849 = vrot.lane.b32.xlu0 %v660_v38, %s2320_s3 }
  0xff   : > { %744 = vrot.lane.b32.xlu1 %v2814_v37, %s2316_s12  ;;  %697 = vrot.lane.b32.xlu0 %v660_v38, %s2319_s16  ;;  %v478_v38 = vrot.slane %v420_v33, 7 }
 0x101   : > { %v2934_v43 = vsel %vm461_vm0, %v477_v34, %v478_v38  ;;  %v535_v51 = vsel %vm461_vm0, %v478_v38, 0.0 }
 0x102   : > { %v588_v45 = vrot.slane %v2934_v43, 1  ;;  %v677_v53 = vrot.slane %v2934_v43, 2  ;;  %v679_v61 = vrot.slane %v535_v51, 2 }
 0x103   : > { %950 = vrot.lane.b32.xlu1 %v574_v47, %s2322_s21  ;;  %898 = vrot.lane.b32.xlu0 %v2818_v39, %s2321_s8 }
 0x104   : > { %v589_v48 = vsel %vm561_vm1, %v587_v44, %v588_v45 }
 0x107   : > { %798 = vrot.lane.b32.xlu1 %v574_v47, %s2318_s27  ;;  %746 = vrot.lane.b32.xlu0 %v2818_v39, %s2316_s12 }
 0x10b   : > { %1003 = vrot.lane.b32.xlu1 %v663_v54, %s2323_s14  ;;  %952 = vrot.lane.b32.xlu0 %v576_v55, %s2322_s21 }
 0x10f   : > { %800 = vrot.lane.b32.xlu1 %v576_v55, %s2318_s27  ;;  %610 = vrot.lane.b32.xlu0 %v574_v47, %s2317_s17 }
 0x113   : > { %1005 = vrot.lane.b32.xlu1 %v665_v57, %s2323_s14  ;;  %851 = vrot.lane.b32.xlu0 %v663_v54, %s2320_s3 }
 0x117   : > { %699 = vrot.lane.b32.xlu1 %v663_v54, %s2319_s16  ;;  %612 = vrot.lane.b32.xlu0 %v576_v55, %s2317_s17  ;;  %v590_v54 = vrot.slane %v535_v51, 1 }
 0x119   : > { %v591_v58 = vsel %vm561_vm1, %v588_v45, %v590_v54 }
 0x11b   : > { %900 = vrot.lane.b32.xlu1 %v2852_v62, %s2321_s8  ;;  %853 = vrot.lane.b32.xlu0 %v665_v57, %s2320_s3 }
 0x11f   : > { %748 = vrot.lane.b32.xlu1 %v2852_v62, %s2316_s12  ;;  %701 = vrot.lane.b32.xlu0 %v665_v57, %s2319_s16  ;;  %v678_v57 = vsel %vm650_vm2, %v676_v52, %v677_v53 }
 0x123   : > { %954 = vrot.lane.b32.xlu1 %v579_v2, %s2322_s21  ;;  %902 = vrot.lane.b32.xlu0 %v2855_v63, %s2321_s8 }
 0x127   : > { %802 = vrot.lane.b32.xlu1 %v579_v2, %s2318_s27  ;;  %750 = vrot.lane.b32.xlu0 %v2855_v63, %s2316_s12 }
 0x12b   : > { %1007 = vrot.lane.b32.xlu1 %v668_v9, %s2323_s14  ;;  %956 = vrot.lane.b32.xlu0 %v581_v10, %s2322_s21 }
 0x12f   : > { %804 = vrot.lane.b32.xlu1 %v581_v10, %s2318_s27  ;;  %614 = vrot.lane.b32.xlu0 %v579_v2, %s2317_s17  ;;  %v680_v2 = vsel %vm650_vm2, %v677_v53, %v679_v61 }
 0x133   : > { %1009 = vrot.lane.b32.xlu1 %v670_v13, %s2323_s14  ;;  %855 = vrot.lane.b32.xlu0 %v668_v9, %s2320_s3 }
 0x137   : > { %703 = vrot.lane.b32.xlu1 %v668_v9, %s2319_s16  ;;  %616 = vrot.lane.b32.xlu0 %v581_v10, %s2317_s17  ;;  %v422_v9 = vld [vmem:[%s2747_s18 + $0x58] sm:$0xff] }
 0x138   : > { %v481_v16 = vrot.slane %v422_v9, 7 }
 0x13b   : > { %904 = vrot.lane.b32.xlu1 %v2889_v19, %s2321_s8  ;;  %857 = vrot.lane.b32.xlu0 %v670_v13, %s2320_s3 }
 0x13f   : > { %752 = vrot.lane.b32.xlu1 %v2889_v19, %s2316_s12  ;;  %705 = vrot.lane.b32.xlu0 %v670_v13, %s2319_s16 }
 0x143   : > { %958 = vrot.lane.b32.xlu1 %v584_v23, %s2322_s21  ;;  %906 = vrot.lane.b32.xlu0 %v2892_v20, %s2321_s8 }
 0x147   : > { %806 = vrot.lane.b32.xlu1 %v584_v23, %s2318_s27  ;;  %754 = vrot.lane.b32.xlu0 %v2892_v20, %s2316_s12 }
 0x14b   : > { %1011 = vrot.lane.b32.xlu1 %v673_v28, %s2323_s14  ;;  %960 = vrot.lane.b32.xlu0 %v586_v29, %s2322_s21 }
 0x14f   : > { %808 = vrot.lane.b32.xlu1 %v586_v29, %s2318_s27  ;;  %618 = vrot.lane.b32.xlu0 %v584_v23, %s2317_s17  ;;  %v2991_v23 = vsel %vm461_vm0, %v480_v11, %v481_v16 }
 0x150   : > { %v741_v35 = vpop.permute.xlu0 %740  ;;  %v2924_v36 = vpop.permute.xlu1 %742 }
 0x153   : > { %1013 = vrot.lane.b32.xlu1 %v675_v31, %s2323_s14  ;;  %859 = vrot.lane.b32.xlu0 %v673_v28, %s2320_s3 }
 0x154   : > { %v2931_v41 = vpop.permute.xlu1 %606  ;;  %v795_v42 = vpop.permute.xlu0 %794 }
 0x157   : > { %707 = vrot.lane.b32.xlu1 %v673_v28, %s2319_s16  ;;  %620 = vrot.lane.b32.xlu0 %v586_v29, %s2317_s17  ;;  %v593_v28 = vrot.slane %v2991_v23, 1 }
 0x159   : > { %v594_v34 = vsel %vm561_vm1, %v592_v27, %v593_v28 }
 0x15b   : > { %908 = vrot.lane.b32.xlu1 %v2929_v40, %s2321_s8  ;;  %861 = vrot.lane.b32.xlu0 %v675_v31, %s2320_s3 }
 0x15d   : > { %v692_v46 = vpop.permute.xlu1 %691  ;;  %v603_v47 = vpop.permute.xlu0 %602 }
 0x15e   : > { %v1052_v3 = vsel %vm1051_vm4, %v2781_v12, %v603_v47  ;;  %v682_v47 = vrot.slane %v2991_v23, 2 }
 0x15f   : > { %756 = vrot.lane.b32.xlu1 %v2929_v40, %s2316_s12  ;;  %709 = vrot.lane.b32.xlu0 %v675_v31, %s2319_s16  ;;  %v1069_v10 = vsel %vm1068_vm5, %v1052_v3, %v692_v46  ;;  %v681_v46 = vrot.slane %v2982_v17, 2  ;;  %v423_v3 = vld [vmem:[%s2747_s18 + $0x60] sm:$0xff] }
 0x160   : > { %v1086_v12 = vsel %vm1085_vm6, %v1069_v10, %v741_v35  ;;  %v483_v9 = vrot.slane %v423_v3, 7  ;;  %v425_v3 = vld [vmem:[%s2747_s18 + $0x70] sm:$0xff] }
 0x161   : > { %v694_v49 = vpop.permute.xlu1 %693  ;;  %v605_v50 = vpop.permute.xlu0 %604  ;;  %v1103_v24 = vsel %vm1102_vm7, %v1086_v12, %v795_v42  ;;  %v536_v42 = vsel %vm461_vm0, %v481_v16, 0.0  ;;  %v683_v53 = vsel %vm650_vm2, %v681_v46, %v682_v47 }
 0x162   : > { %v1053_v18 = vsel %vm1051_vm4, %v2785_v14, %v605_v50  ;;  %v3058_v12 = vsel %vm461_vm0, 0.0, %v483_v9 }
 0x163   : > { %962 = vrot.lane.b32.xlu1 %v589_v48, %s2322_s21  ;;  %910 = vrot.lane.b32.xlu0 %v2934_v43, %s2321_s8  ;;  %v1070_v14 = vsel %vm1068_vm5, %v1053_v18, %v694_v49 }
 0x164   : > { %v1087_v33 = vsel %vm1085_vm6, %v1070_v14, %v2924_v36 }
 0x165   : > { %v848_v55 = vpop.permute.xlu1 %847  ;;  %v2951_v56 = vpop.permute.xlu0 %796 }
 0x166   : > { %v1120_v25 = vsel %vm1119_vm8, %v1103_v24, %v848_v55  ;;  %v1104_v44 = vsel %vm1102_vm7, %v1087_v33, %v2951_v56 }
 0x167   : > { %810 = vrot.lane.b32.xlu1 %v589_v48, %s2318_s27  ;;  %758 = vrot.lane.b32.xlu0 %v2934_v43, %s2316_s12 }
 0x169   : > { %v2958_v59 = vpop.permute.xlu1 %695  ;;  %v2960_v60 = vpop.permute.xlu0 %608 }
 0x16b   : > { %1015 = vrot.lane.b32.xlu1 %v678_v57, %s2323_s14  ;;  %964 = vrot.lane.b32.xlu0 %v591_v58, %s2322_s21 }
 0x16d   : > { %v897_v0 = vpop.permute.xlu1 %896  ;;  %v850_v1 = vpop.permute.xlu0 %849 }
 0x16e   : > { %v1137_v26 = vsel %vm1136_vm9, %v1120_v25, %v897_v0  ;;  %v1121_v36 = vsel %vm1119_vm8, %v1104_v44, %v850_v1 }
 0x16f   : > { %812 = vrot.lane.b32.xlu1 %v591_v58, %s2318_s27  ;;  %622 = vrot.lane.b32.xlu0 %v589_v48, %s2317_s17  ;;  %v595_v48 = vrot.slane %v536_v42, 1 }
 0x171   : > { %v2969_v4 = vpop.permute.xlu1 %744  ;;  %v2971_v7 = vpop.permute.xlu0 %697  ;;  %v596_v54 = vsel %vm561_vm1, %v593_v28, %v595_v48 }
 0x173   : > { %1017 = vrot.lane.b32.xlu1 %v680_v2, %s2323_s14  ;;  %863 = vrot.lane.b32.xlu0 %v678_v57, %s2320_s3 }
 0x175   : > { %v951_v13 = vpop.permute.xlu1 %950  ;;  %v899_v15 = vpop.permute.xlu0 %898 }
 0x176   : > { %v1154_v29 = vsel %vm1153_vm10, %v1137_v26, %v951_v13  ;;  %v1138_v45 = vsel %vm1136_vm9, %v1121_v36, %v899_v15  ;;  %v484_v13 = vrot.slane %v424_v8, 7  ;;  %v1054_v15 = vsel %vm1051_vm4, %v2769_v5, %v2931_v41  ;;  %v426_v8 = vld [vmem:[%s2747_s18 + $0x78] sm:$0xff]  ;;  %s1745_s18 = sshll.u32 %s1488_s11, 7 }
 0x177   : > { %711 = vrot.lane.b32.xlu1 %v678_v57, %s2319_s16  ;;  %624 = vrot.lane.b32.xlu0 %v591_v58, %s2317_s17  ;;  %v684_v57 = vrot.slane %v536_v42, 2  ;;  %v1071_v16 = vsel %vm1068_vm5, %v1054_v15, %v2958_v59 }
 0x178   : > { %v1088_v18 = vsel %vm1085_vm6, %v1071_v16, %v2969_v4  ;;  %v3067_v14 = vsel %vm461_vm0, %v483_v9, %v484_v13  ;;  %v597_v4 = vrot.slane %v3058_v12, 1  ;;  %v486_v9 = vrot.slane %v425_v3, 7 }
 0x179   : > { %v2986_v21 = vpop.permute.xlu1 %798  ;;  %v2988_v22 = vpop.permute.xlu0 %746  ;;  %v685_v0 = vsel %vm650_vm2, %v682_v47, %v684_v57  ;;  %v598_v26 = vrot.slane %v3067_v14, 1  ;;  %v687_v36 = vrot.slane %v3067_v14, 2 }
 0x17a   : > { %v1105_v5 = vsel %vm1102_vm7, %v1088_v18, %v2986_v21  ;;  %v1055_v21 = vsel %vm1051_vm4, %v2772_v6, %v2960_v60  ;;  %v537_v6 = vsel %vm461_vm0, %v484_v13, 0.0  ;;  %v487_v13 = vrot.slane %v426_v8, 7 }
 0x17b   : > { %912 = vrot.lane.b32.xlu1 %v2982_v17, %s2321_s8  ;;  %865 = vrot.lane.b32.xlu0 %v680_v2, %s2320_s3  ;;  %v528_v18 = vsel %vm461_vm0, 0.0, %v486_v9 }
 0x17d   : > { %v1004_v30 = vpop.permute.xlu1 %1003  ;;  %v953_v31 = vpop.permute.xlu0 %952 }
 0x17e   : > { %v1171_v32 = vsel %vm1170_vm11, %v1154_v29, %v1004_v30  ;;  %v1155_v49 = vsel %vm1153_vm10, %v1138_v45, %v953_v31  ;;  %v1072_v31 = vsel %vm1068_vm5, %v1055_v21, %v2971_v7  ;;  %v600_v45 = vrot.slane %v537_v6, 1 }
 0x17f   : > { %760 = vrot.lane.b32.xlu1 %v2982_v17, %s2316_s12  ;;  %713 = vrot.lane.b32.xlu0 %v680_v2, %s2319_s16  ;;  %v1089_v33 = vsel %vm1085_vm6, %v1072_v31, %v2988_v22  ;;  %v686_v22 = vrot.slane %v3058_v12, 2 }
 0x180   : > { %1783 = vmatprep.mubr.msk.f32.mxu0 %vm1187_vm12, %v1171_v32  ;;  %v599_v32 = vsel %vm561_vm1, %v597_v4, %v598_v26  ;;  %v488_v4 = vsel %vm461_vm0, %v486_v9, %v487_v13 }
 0x181   : > { %v3011_v35 = vpop.permute.xlu1 %800  ;;  %v3013_v38 = vpop.permute.xlu0 %610 }
 0x182   : > { %v1106_v60 = vsel %vm1102_vm7, %v1089_v33, %v3011_v35  ;;  %v1056_v15 = vsel %vm1051_vm4, %v2814_v37, %v3013_v38 }
 0x183   : > { %966 = vrot.lane.b32.xlu1 %v594_v34, %s2322_s21  ;;  %914 = vrot.lane.b32.xlu0 %v2991_v23, %s2321_s8 }
 0x185   : > { %v1006_v50 = vpop.permute.xlu1 %1005  ;;  %v852_v51 = vpop.permute.xlu0 %851 }
 0x186   : > { %v1172_v52 = vsel %vm1170_vm11, %v1155_v49, %v1006_v50  ;;  %v1122_v41 = vsel %vm1119_vm8, %v1105_v5, %v852_v51  ;;  %v688_v49 = vsel %vm650_vm2, %v686_v22, %v687_v36  ;;  %v601_v50 = vsel %vm561_vm1, %v598_v26, %v600_v45 }
 0x187   : > { %814 = vrot.lane.b32.xlu1 %v594_v34, %s2318_s27  ;;  %762 = vrot.lane.b32.xlu0 %v2991_v23, %s2316_s12  ;;  %v789_v26 = vrot.slane %v528_v18, 1 }
 0x188   : > { %1784 = vmatmul.mubr.msk.f32.vlgmr.msra.gmra.mrb[0].mxu0 %vm1187_vm12, %v1172_v52 }
 0x189   : > { %v3033_v55 = vpop.permute.xlu1 %699  ;;  %v3035_v56 = vpop.permute.xlu0 %612 }
 0x18a   : > { %v1073_v16 = vsel %vm1068_vm5, %v1056_v15, %v3033_v55 }
 0x18b   : > { %1019 = vrot.lane.b32.xlu1 %v683_v53, %s2323_s14  ;;  %968 = vrot.lane.b32.xlu0 %v596_v54, %s2322_s21 }
 0x18d   : > { %v901_v58 = vpop.permute.xlu1 %900  ;;  %v854_v61 = vpop.permute.xlu0 %853 }
 0x18e   : > { %v1139_v59 = vsel %vm1136_vm9, %v1122_v41, %v901_v58  ;;  %v1123_v44 = vsel %vm1119_vm8, %v1106_v60, %v854_v61 }
 0x18f   : > { %816 = vrot.lane.b32.xlu1 %v596_v54, %s2318_s27  ;;  %626 = vrot.lane.b32.xlu0 %v594_v34, %s2317_s17 }
 0x191   : > { %v3042_v1 = vpop.permute.xlu1 %748  ;;  %v3044_v2 = vpop.permute.xlu0 %701 }
 0x192   : > { %v1090_v5 = vsel %vm1085_vm6, %v1073_v16, %v3042_v1 }
 0x193   : > { %1021 = vrot.lane.b32.xlu1 %v685_v0, %s2323_s14  ;;  %867 = vrot.lane.b32.xlu0 %v683_v53, %s2320_s3 }
 0x195   : > { %v955_v10 = vpop.permute.xlu1 %954  ;;  %v903_v11 = vpop.permute.xlu0 %902 }
 0x196   : > { %v1156_v27 = vsel %vm1153_vm10, %v1139_v59, %v955_v10  ;;  %v1140_v7 = vsel %vm1136_vm9, %v1123_v44, %v903_v11  ;;  %v842_v44 = vrot.slane %v528_v18, 2 }
 0x197   : > { %715 = vrot.lane.b32.xlu1 %v683_v53, %s2319_s16  ;;  %628 = vrot.lane.b32.xlu0 %v596_v54, %s2317_s17  ;;  %v689_v53 = vrot.slane %v537_v6, 2 }
 0x199   : > { %v3062_v24 = vpop.permute.xlu1 %802  ;;  %v3064_v25 = vpop.permute.xlu0 %750  ;;  %v690_v58 = vsel %vm650_vm2, %v687_v36, %v689_v53 }
 0x19a   : > { %v1107_v37 = vsel %vm1102_vm7, %v1090_v5, %v3062_v24  ;;  %v1057_v24 = vsel %vm1051_vm4, %v2818_v39, %v3035_v56  ;;  %v538_v39 = vsel %vm461_vm0, %v487_v13, 0.0 }
 0x19b   : > { %916 = vrot.lane.b32.xlu1 %v3058_v12, %s2321_s8  ;;  %869 = vrot.lane.b32.xlu0 %v685_v0, %s2320_s3  ;;  %v1074_v21 = vsel %vm1068_vm5, %v1057_v24, %v3044_v2  ;;  %v845_v53 = vrot.slane %v538_v39, 2 }
 0x19d   : > { %v1008_v28 = vpop.permute.xlu1 %1007  ;;  %v957_v29 = vpop.permute.xlu0 %956 }
 0x19e   : > { %v1173_v30 = vsel %vm1170_vm11, %v1156_v27, %v1008_v28  ;;  %v1157_v46 = vsel %vm1153_vm10, %v1140_v7, %v957_v29  ;;  %v790_v27 = vrot.slane %v488_v4, 1  ;;  %v792_v7 = vrot.slane %v538_v39, 1 }
 0x19f   : > { %764 = vrot.lane.b32.xlu1 %v3058_v12, %s2316_s12  ;;  %717 = vrot.lane.b32.xlu0 %v685_v0, %s2319_s16 }
 0x1a0   : > { %1786 = vmatprep.mubr.msk.f32.mxu0 %vm1187_vm12, %v1173_v30  ;;  %v791_v31 = vsel %vm561_vm1, %v789_v26, %v790_v27 }
 0x1a1   : > { %v3092_v34 = vpop.permute.xlu1 %804  ;;  %v3094_v42 = vpop.permute.xlu0 %614 }
 0x1a3   : > { %970 = vrot.lane.b32.xlu1 %v599_v32, %s2322_s21  ;;  %918 = vrot.lane.b32.xlu0 %v3067_v14, %s2321_s8 }
 0x1a5   : > { %v1010_v47 = vpop.permute.xlu1 %1009  ;;  %v856_v48 = vpop.permute.xlu0 %855 }
 0x1a6   : > { %v1174_v35 = vsel %vm1170_vm11, %v1157_v46, %v1010_v47  ;;  %v1124_v38 = vsel %vm1119_vm8, %v1107_v37, %v856_v48  ;;  %v793_v47 = vsel %vm561_vm1, %v790_v27, %v792_v7 }
 0x1a7   : > { %818 = vrot.lane.b32.xlu1 %v599_v32, %s2318_s27  ;;  %766 = vrot.lane.b32.xlu0 %v3067_v14, %s2316_s12 }
 0x1a8   : > { %1787 = vmatmul.mubr.msk.f32.gmra.mrb[2].mxu0 %vm1187_vm12, %v1174_v35 }
 0x1a9   : > { %v3114_v51 = vpop.permute.xlu1 %703  ;;  %v3116_v52 = vpop.permute.xlu0 %616 }
 0x1ab   : > { %1023 = vrot.lane.b32.xlu1 %v688_v49, %s2323_s14  ;;  %972 = vrot.lane.b32.xlu0 %v601_v50, %s2322_s21 }
 0x1ad   : > { %v905_v54 = vpop.permute.xlu1 %904  ;;  %v858_v57 = vpop.permute.xlu0 %857 }
 0x1ae   : > { %v1141_v55 = vsel %vm1136_vm9, %v1124_v38, %v905_v54  ;;  %v1058_v38 = vsel %vm1051_vm4, %v2852_v62, %v3094_v42 }
 0x1af   : > { %820 = vrot.lane.b32.xlu1 %v601_v50, %s2318_s27  ;;  %630 = vrot.lane.b32.xlu0 %v599_v32, %s2317_s17  ;;  %v1091_v32 = vsel %vm1085_vm6, %v1074_v21, %v3064_v25  ;;  %v843_v25 = vrot.slane %v488_v4, 2  ;;  %v1075_v27 = vsel %vm1068_vm5, %v1058_v38, %v3114_v51 }
 0x1b0   : > { %v1108_v56 = vsel %vm1102_vm7, %v1091_v32, %v3092_v34 }
 0x1b1   : > { %v3123_v61 = vpop.permute.xlu1 %752  ;;  %v3125_v0 = vpop.permute.xlu0 %705  ;;  %v1125_v60 = vsel %vm1119_vm8, %v1108_v56, %v858_v57  ;;  %v844_v46 = vsel %vm650_vm2, %v842_v44, %v843_v25  ;;  %v846_v8 = vsel %vm650_vm2, %v843_v25, %v845_v53 }
 0x1b3   : > { %1025 = vrot.lane.b32.xlu1 %v690_v58, %s2323_s14  ;;  %871 = vrot.lane.b32.xlu0 %v688_v49, %s2320_s3 }
 0x1b5   : > { %v959_v10 = vpop.permute.xlu1 %958  ;;  %v907_v11 = vpop.permute.xlu0 %906 }
 0x1b6   : > { %v1158_v1 = vsel %vm1153_vm10, %v1141_v55, %v959_v10  ;;  %v1142_v2 = vsel %vm1136_vm9, %v1125_v60, %v907_v11 }
 0x1b7   : > { %719 = vrot.lane.b32.xlu1 %v688_v49, %s2319_s16  ;;  %632 = vrot.lane.b32.xlu0 %v601_v50, %s2317_s17  ;;  %v1996_v49 = vld [vmem:[%s353_s9] sm:%s1995_s13]  ;;  %s1470_s17 = scalar_lea.sflag [#allocation4], %s2742_s1 }
 0x1b8   : > { %v1999_v50 = vld [vmem:[%s353_s9 + $0x8] sm:%s1995_s13]  ;;  %s3567_s9 = sld [smem:[#allocation36_spill]] }
 0x1b9   : > { %v3141_v41 = vpop.permute.xlu1 %806  ;;  %v3143_v59 = vpop.permute.xlu0 %754  ;;  %v490_v3 = vrot.slane %v1999_v50, 7 }
 0x1bb   : > { %920 = vrot.lane.b32.xlu1 %v528_v18, %s2321_s8  ;;  %873 = vrot.lane.b32.xlu0 %v690_v58, %s2320_s3  ;;  %v539_v15 = vsel %vm461_vm0, %v490_v3, 0.0 }
 0x1bc   : > { %v948_v5 = vrot.slane %v539_v15, 1 }
 0x1bd   : > { %v1012_v28 = vpop.permute.xlu1 %1011  ;;  %v961_v29 = vpop.permute.xlu0 %960 }
 0x1be   : > { %v1175_v30 = vsel %vm1170_vm11, %v1158_v1, %v1012_v28  ;;  %v1159_v22 = vsel %vm1153_vm10, %v1142_v2, %v961_v29  ;;  %v1001_v29 = vrot.slane %v539_v15, 2  ;;  %s3352_s10 = scalar_lea.hbm %s3567_s9, %s1745_s18 }
 0x1bf   : > { %768 = vrot.lane.b32.xlu1 %v528_v18, %s2316_s12  ;;  %721 = vrot.lane.b32.xlu0 %v690_v58, %s2319_s16  ;;  %v489_v58 = vrot.slane %v1996_v49, 7 }
 0x1c0   : > { %1789 = vmatprep.mubr.msk.f32.mxu0 %vm1187_vm12, %v1175_v30  ;;  %v1092_v30 = vsel %vm1085_vm6, %v1075_v27, %v3123_v61 }
 0x1c1   : > { %v3165_v33 = vpop.permute.xlu1 %808  ;;  %v3167_v6 = vpop.permute.xlu0 %618  ;;  %v491_v11 = vsel %vm461_vm0, %v489_v58, %v490_v3  ;;  %v529_v13 = vsel %vm461_vm0, 0.0, %v489_v58  ;;  %v1109_v62 = vsel %vm1102_vm7, %v1092_v30, %v3141_v41  ;;  %v1059_v41 = vsel %vm1051_vm4, %v2855_v63, %v3116_v52 }
 0x1c2   : > { %v946_v16 = vrot.slane %v491_v11, 1  ;;  %v945_v18 = vrot.slane %v529_v13, 1  ;;  %v999_v55 = vrot.slane %v491_v11, 2  ;;  %v998_v26 = vrot.slane %v529_v13, 2 }
 0x1c3   : > { %974 = vrot.lane.b32.xlu1 %v791_v31, %s2322_s21  ;;  %922 = vrot.lane.b32.xlu0 %v488_v4, %s2321_s8  ;;  %v1076_v2 = vsel %vm1068_vm5, %v1059_v41, %v3125_v0 }
 0x1c4   : > { %v949_v1 = vsel %vm561_vm1, %v946_v16, %v948_v5  ;;  %v947_v28 = vsel %vm561_vm1, %v945_v18, %v946_v16  ;;  %v1000_v32 = vsel %vm650_vm2, %v998_v26, %v999_v55  ;;  %v1093_v44 = vsel %vm1085_vm6, %v1076_v2, %v3143_v59 }
 0x1c5   : > { %v1014_v36 = vpop.permute.xlu1 %1013  ;;  %v860_v45 = vpop.permute.xlu0 %859 }
 0x1c6   : > { %v1176_v34 = vsel %vm1170_vm11, %v1159_v22, %v1014_v36  ;;  %v1126_v42 = vsel %vm1119_vm8, %v1109_v62, %v860_v45  ;;  %v1110_v22 = vsel %vm1102_vm7, %v1093_v44, %v3165_v33 }
 0x1c7   : > { %822 = vrot.lane.b32.xlu1 %v791_v31, %s2318_s27  ;;  %770 = vrot.lane.b32.xlu0 %v488_v4, %s2316_s12  ;;  %v1002_v31 = vsel %vm650_vm2, %v999_v55, %v1001_v29  ;;  %s1491_s12 = sshll.u32 %s3329_s29, 4  ;;  %s3355_s12 = int_to_ptr.vmem [resolvable:$true] %s1491_s12 }
 0x1c8   : > { %1790 = vmatmul.mubr.msk.f32.gmra.mrb[4].mxu0 %vm1187_vm12, %v1176_v34 }
 0x1c9   : > { %v3185_v48 = vpop.permute.xlu1 %707  ;;  %v3187_v35 = vpop.permute.xlu0 %620 }
 0x1cb   : > { %1027 = vrot.lane.b32.xlu1 %v844_v46, %s2323_s14  ;;  %976 = vrot.lane.b32.xlu0 %v793_v47, %s2322_s21 }
 0x1cd   : > { %v909_v54 = vpop.permute.xlu1 %908  ;;  %v862_v57 = vpop.permute.xlu0 %861 }
 0x1ce   : > { %v1143_v51 = vsel %vm1136_vm9, %v1126_v42, %v909_v54  ;;  %v1127_v36 = vsel %vm1119_vm8, %v1110_v22, %v862_v57  ;;  %v1060_v57 = vsel %vm1051_vm4, %v2889_v19, %v3167_v6  ;;  %v1061_v19 = vsel %vm1051_vm4, %v2892_v20, %v3187_v35 }
 0x1cf   : > { %875 = vrot.lane.b32.xlu1 %v844_v46, %s2320_s3  ;;  %824 = vrot.lane.b32.xlu0 %v793_v47, %s2318_s27  ;;  %v1077_v58 = vsel %vm1068_vm5, %v1060_v57, %v3185_v48  ;;  %s2118_s27 = scalar_lea.vmem %s3355_s12, 2048 }
 0x1d0   : > { %p2119_p2 = scmp.ne.s32.totalorder %s3355_s12, %s2118_s27 }
 0x1d1   : > { %v757_v9 = vpop.permute.xlu1 %756  ;;  %v3198_v10 = vpop.permute.xlu0 %709 }
 0x1d2   : > { %v1094_v3 = vsel %vm1085_vm6, %v1077_v58, %v757_v9  ;;  %v1078_v6 = vsel %vm1068_vm5, %v1061_v19, %v3198_v10  ;;  %p2120_p0 = pnand %p2119_p2, %p3568_p6 }
 0x1d3   : > { %877 = vrot.lane.b32.xlu1 %v846_v8, %s2320_s3  ;;  %1029 = vrot.lane.b32.xlu0 %v846_v8, %s2323_s14  ;;  %s2324_s3 = smov [#allocation10]  }
 0x1d4   : > { %p2121_p10 = pneg %p2120_p0 }
 0x1d5   : > { %v963_v4 = vpop.permute.xlu1 %962  ;;  %v911_v37 = vpop.permute.xlu0 %910 }
 0x1d6   : > { %v1160_v39 = vsel %vm1153_vm10, %v1143_v51, %v963_v4  ;;  %v1144_v63 = vsel %vm1136_vm9, %v1127_v36, %v911_v37 }
 0x1d7   : > { %926 = vrot.lane.b32.xlu1 %v491_v11, %s2321_s8  ;;  %924 = vrot.lane.b32.xlu0 %v529_v13, %s2321_s8  ;;  %s2122_s8 = sshll.u32 %s2324_s3, 4  ;;  %s2123_s8 = int_to_ptr.vmem [resolvable:$false] %s2122_s8 }
 0x1d8   : > { %p2125_p12 = scmp.lt.s32.totalorder %s3355_s12, %s2123_s8 }
 0x1d9   : > { %v811_v24 = vpop.permute.xlu1 %810  ;;  %v759_v21 = vpop.permute.xlu0 %758 }
 0x1da   : > { %v1111_v13 = vsel %vm1102_vm7, %v1094_v3, %v811_v24  ;;  %v1095_v48 = vsel %vm1085_vm6, %v1078_v6, %v759_v21 }
 0x1db   : > { %980 = vrot.lane.b32.xlu1 %v949_v1, %s2322_s21  ;;  %978 = vrot.lane.b32.xlu0 %v947_v28, %s2322_s21  ;;  %s2124_s21 = scalar_lea.vmem %s2123_s8, 4096 }
 0x1dc   : > { %p2126_p8 = scmp.lt.s32.totalorder %s2124_s21, %s2118_s27 }
 0x1dd   : > { %v1016_v61 = vpop.permute.xlu1 %1015  ;;  %v965_v56 = vpop.permute.xlu0 %964 }
 0x1de   : > { %v1177_v60 = vsel %vm1170_vm11, %v1160_v39, %v1016_v61  ;;  %v1161_v52 = vsel %vm1153_vm10, %v1144_v63, %v965_v56  ;;  %p2127_p1 = por %p2126_p8, %p2125_p12 }
 0x1df   : > { %1033 = vrot.lane.b32.xlu1 %v1002_v31, %s2323_s14  ;;  %1031 = vrot.lane.b32.xlu0 %v1000_v32, %s2323_s14 }
 0x1e0   : > { %1792 = vmatprep.mubr.msk.f32.mxu0 %vm1187_vm12, %v1177_v60  ;;  %p2128_p4 = pnand %p2127_p1, %p2121_p10 }
 0x1e1   : > { %v813_v25 = vpop.permute.xlu1 %812  ;;  %v623_v7 = vpop.permute.xlu0 %622 }
 0x1e2   : > { %v1112_v55 = vsel %vm1102_vm7, %v1095_v48, %v813_v25  ;;  %v1062_v31 = vsel %vm1051_vm4, %v2929_v40, %v623_v7 }
 0x1e5   : > { %v1018_v45 = vpop.permute.xlu1 %1017  ;;  %v864_v34 = vpop.permute.xlu0 %863 }
 0x1e6   : > { %v1178_v0 = vsel %vm1170_vm11, %v1161_v52, %v1018_v45  ;;  %v1128_v15 = vsel %vm1119_vm8, %v1111_v13, %v864_v34 }
 0x1e7   : > { %1793 = vmatmul.mubr.msk.f32.gmra.mrb[6].mxu0 %vm1187_vm12, %v1178_v0 }
 0x1e9   : > { %v712_v46 = vpop.permute.xlu1 %711  ;;  %v625_v47 = vpop.permute.xlu0 %624 }
 0x1ea   : > { %v1079_v32 = vsel %vm1068_vm5, %v1062_v31, %v712_v46  ;;  %v1063_v40 = vsel %vm1051_vm4, %v2934_v43, %v625_v47 }
 0x1ed   : > { %v913_v59 = vpop.permute.xlu1 %912  ;;  %v866_v49 = vpop.permute.xlu0 %865 }
 0x1ee   : > { %v1145_v16 = vsel %vm1136_vm9, %v1128_v15, %v913_v59  ;;  %v1129_v26 = vsel %vm1119_vm8, %v1112_v55, %v866_v49 }
 0x1f1   : > { %v761_v50 = vpop.permute.xlu1 %760  ;;  %v714_v53 = vpop.permute.xlu0 %713 }
 0x1f2   : > { %v1096_v39 = vsel %vm1085_vm6, %v1079_v32, %v761_v50  ;;  %v1080_v7 = vsel %vm1068_vm5, %v1063_v40, %v714_v53 }
 0x1f5   : > { %v967_v54 = vpop.permute.xlu1 %966  ;;  %v915_v33 = vpop.permute.xlu0 %914 }
 0x1f6   : > { %v1162_v18 = vsel %vm1153_vm10, %v1145_v16, %v967_v54  ;;  %v1146_v27 = vsel %vm1136_vm9, %v1129_v26, %v915_v33 }
 0x1f9   : > { %v815_v8 = vpop.permute.xlu1 %814  ;;  %v763_v11 = vpop.permute.xlu0 %762 }
 0x1fa   : > { %v1113_v60 = vsel %vm1102_vm7, %v1096_v39, %v815_v8  ;;  %v1097_v63 = vsel %vm1085_vm6, %v1080_v7, %v763_v11 }
 0x1fd   : > { %v1020_v5 = vpop.permute.xlu1 %1019  ;;  %v969_v4 = vpop.permute.xlu0 %968 }
 0x1fe   : > { %v1179_v37 = vsel %vm1170_vm11, %v1162_v18, %v1020_v5  ;;  %v1163_v1 = vsel %vm1153_vm10, %v1146_v27, %v969_v4 }
 0x1ff   : > { %1795 = vmatprep.mubr.msk.f32.mxu1 %vm1187_vm12, %v1179_v37 }
 0x201   : > { %v817_v9 = vpop.permute.xlu1 %816  ;;  %v627_v38 = vpop.permute.xlu0 %626 }
 0x202   : > { %v1114_v34 = vsel %vm1102_vm7, %v1097_v63, %v817_v9  ;;  %v1064_v11 = vsel %vm1051_vm4, %v2982_v17, %v627_v38 }
 0x205   : > { %v1022_v28 = vpop.permute.xlu1 %1021  ;;  %v868_v29 = vpop.permute.xlu0 %867 }
 0x206   : > { %v1180_v20 = vsel %vm1170_vm11, %v1163_v1, %v1022_v28  ;;  %v1130_v41 = vsel %vm1119_vm8, %v1113_v60, %v868_v29 }
 0x207   : > { %1796 = vmatmul.mubr.msk.f32.vlgmr.msra.gmra.mrb[0].mxu1 %vm1187_vm12, %v1180_v20 }
 0x209   : > { %v716_v35 = vpop.permute.xlu1 %715  ;;  %v629_v10 = vpop.permute.xlu0 %628 }
 0x20a   : > { %v1081_v13 = vsel %vm1068_vm5, %v1064_v11, %v716_v35  ;;  %v1065_v17 = vsel %vm1051_vm4, %v2991_v23, %v629_v10 }
 0x20d   : > { %v917_v30 = vpop.permute.xlu1 %916  ;;  %v870_v24 = vpop.permute.xlu0 %869 }
 0x20e   : > { %v1147_v2 = vsel %vm1136_vm9, %v1130_v41, %v917_v30  ;;  %v1131_v0 = vsel %vm1119_vm8, %v1114_v34, %v870_v24 }
 0x211   : > { %v765_v21 = vpop.permute.xlu1 %764  ;;  %v718_v62 = vpop.permute.xlu0 %717 }
 0x212   : > { %v1098_v15 = vsel %vm1085_vm6, %v1081_v13, %v765_v21  ;;  %v1082_v38 = vsel %vm1068_vm5, %v1065_v17, %v718_v62 }
 0x215   : > { %v971_v42 = vpop.permute.xlu1 %970  ;;  %v919_v51 = vpop.permute.xlu0 %918 }
 0x216   : > { %v1164_v44 = vsel %vm1153_vm10, %v1147_v2, %v971_v42  ;;  %v1148_v46 = vsel %vm1136_vm9, %v1131_v0, %v919_v51 }
 0x219   : > { %v819_v61 = vpop.permute.xlu1 %818  ;;  %v767_v56 = vpop.permute.xlu0 %766 }
 0x21a   : > { %v1115_v5 = vsel %vm1102_vm7, %v1098_v15, %v819_v61  ;;  %v1099_v55 = vsel %vm1085_vm6, %v1082_v38, %v767_v56 }
 0x21d   : > { %v1024_v25 = vpop.permute.xlu1 %1023  ;;  %v973_v22 = vpop.permute.xlu0 %972 }
 0x21e   : > { %v1181_v36 = vsel %vm1170_vm11, %v1164_v44, %v1024_v25  ;;  %v1165_v59 = vsel %vm1153_vm10, %v1148_v46, %v973_v22 }
 0x21f   : > { %1798 = vmatprep.mubr.msk.f32.mxu1 %vm1187_vm12, %v1181_v36 }
 0x221   : > { %v821_v52 = vpop.permute.xlu1 %820  ;;  %v631_v45 = vpop.permute.xlu0 %630 }
 0x222   : > { %v1116_v1 = vsel %vm1102_vm7, %v1099_v55, %v821_v52  ;;  %v1066_v21 = vsel %vm1051_vm4, %v3058_v12, %v631_v45 }
 0x225   : > { %v1026_v49 = vpop.permute.xlu1 %1025  ;;  %v872_v50 = vpop.permute.xlu0 %871 }
 0x226   : > { %v1182_v43 = vsel %vm1170_vm11, %v1165_v59, %v1026_v49  ;;  %v1132_v4 = vsel %vm1119_vm8, %v1115_v5, %v872_v50 }
 0x227   : > { %1799 = vmatmul.mubr.msk.f32.gmra.mrb[2].mxu1 %vm1187_vm12, %v1182_v43 }
 0x229   : > { %v720_v47 = vpop.permute.xlu1 %719  ;;  %v633_v53 = vpop.permute.xlu0 %632 }
 0x22a   : > { %v1067_v62 = vsel %vm1051_vm4, %v3067_v14, %v633_v53  ;;  %v1083_v42 = vsel %vm1068_vm5, %v1066_v21, %v720_v47 }
 0x22d   : > { %v921_v54 = vpop.permute.xlu1 %920  ;;  %v874_v33 = vpop.permute.xlu0 %873 }
 0x22e   : > { %v1149_v37 = vsel %vm1136_vm9, %v1132_v4, %v921_v54  ;;  %v1133_v28 = vsel %vm1119_vm8, %v1116_v1, %v874_v33 }
 0x231   : > { %v769_v57 = vpop.permute.xlu1 %768  ;;  %v722_v58 = vpop.permute.xlu0 %721 }
 0x232   : > { %v1084_v51 = vsel %vm1068_vm5, %v1067_v62, %v722_v58  ;;  %v1100_v31 = vsel %vm1085_vm6, %v1083_v42, %v769_v57 }
 0x235   : > { %v975_v3 = vpop.permute.xlu1 %974  ;;  %v923_v8 = vpop.permute.xlu0 %922 }
 0x236   : > { %v1166_v19 = vsel %vm1153_vm10, %v1149_v37, %v975_v3  ;;  %v1150_v29 = vsel %vm1136_vm9, %v1133_v28, %v923_v8 }
 0x239   : > { %v823_v16 = vpop.permute.xlu1 %822  ;;  %v771_v18 = vpop.permute.xlu0 %770 }
 0x23a   : > { %v1101_v32 = vsel %vm1085_vm6, %v1084_v51, %v771_v18  ;;  %v1117_v56 = vsel %vm1102_vm7, %v1100_v31, %v823_v16 }
 0x23d   : > { %v1028_v6 = vpop.permute.xlu1 %1027  ;;  %v977_v48 = vpop.permute.xlu0 %976 }
 0x23e   : > { %v1183_v9 = vsel %vm1170_vm11, %v1166_v19, %v1028_v6  ;;  %v1167_v20 = vsel %vm1153_vm10, %v1150_v29, %v977_v48 }
 0x23f   : > { %1801 = vmatprep.mubr.msk.f32.mxu1 %vm1187_vm12, %v1183_v9 }
 0x241   : > { %v876_v26 = vpop.permute.xlu1 %875  ;;  %v825_v27 = vpop.permute.xlu0 %824 }
 0x242   : > { %v1118_v60 = vsel %vm1102_vm7, %v1101_v32, %v825_v27  ;;  %v1134_v12 = vsel %vm1119_vm8, %v1117_v56, %v876_v26 }
 0x245   : > { %v878_v35 = vpop.permute.xlu1 %877  ;;  %v1030_v30 = vpop.permute.xlu0 %1029 }
 0x246   : > { %v1184_v23 = vsel %vm1170_vm11, %v1167_v20, %v1030_v30  ;;  %v1135_v41 = vsel %vm1119_vm8, %v1118_v60, %v878_v35 }
 0x247   : > { %1802 = vmatmul.mubr.msk.f32.gmra.mrb[4].mxu1 %vm1187_vm12, %v1184_v23 }
 0x249   : > { %v927_v10 = vpop.permute.xlu1 %926  ;;  %v925_v24 = vpop.permute.xlu0 %924 }
 0x24a   : > { %v1152_v14 = vsel %vm1136_vm9, %v1135_v41, %v927_v10  ;;  %v1151_v2 = vsel %vm1136_vm9, %v1134_v12, %v925_v24 }
 0x24d   : > { %v981_v39 = vpop.permute.xlu1 %980  ;;  %v979_v61 = vpop.permute.xlu0 %978 }
 0x24e   : > { %v1169_v44 = vsel %vm1153_vm10, %v1152_v14, %v981_v39  ;;  %v1168_v25 = vsel %vm1153_vm10, %v1151_v2, %v979_v61 }
 0x251   : > { %v1034_v22 = vpop.permute.xlu1 %1033  ;;  %v1032_v36 = vpop.permute.xlu0 %1031 }
 0x252   : > { %v1186_v40 = vsel %vm1170_vm11, %v1169_v44, %v1034_v22  ;;  %v1185_v7 = vsel %vm1170_vm11, %v1168_v25, %v1032_v36 }
 0x253   : > { %1804 = vmatprep.mubr.msk.f32.mxu1 %vm1187_vm12, %v1185_v7 }
 0x254   : > { %1805 = vmatmul.mubr.msk.f32.gmra.mrb[6].mxu1 %vm1187_vm12, %v1186_v40 }
 0x25b   : > { %v1785_v63 = vpop.f32.mrb[0].mxu0 }
 0x25c   : > { %v1410_v52 = vmul.f32 %v1785_v63, %v1785_v63  ;;  %1454 = vst [vmem:[%s3329_s29 + $0x8] sm:$0xff] %v1785_v63  ;;  %v1306_v45 = vpop.f32.mrb[1].mxu0 }
 0x25d   : > { %v1385_v34 = vadd.f32 %v1785_v63, %v1306_v45  ;;  %v1409_v0 = vmul.f32 %v1306_v45, %v1306_v45  ;;  %1453 = vst [vmem:[%s3329_s29] sm:$0xff] %v1306_v45 }
 0x25f   : > { %v1425_v46 = vadd.f32 %v1410_v52, %v1409_v0 }
 0x27b   : > { %v1788_v59 = vpop.f32.mrb[2].mxu0 }
 0x27c   : > { %1456 = vst [vmem:[%s3329_s29 + $0x18] sm:$0xff] %v1788_v59  ;;  %v1316_v49 = vpop.f32.mrb[3].mxu0  ;;  %v1412_v47 = vmul.f32 %v1788_v59, %v1788_v59 }
 0x27d   : > { %v1386_v50 = vadd.f32 %v1385_v34, %v1316_v49  ;;  %v1411_v43 = vmul.f32 %v1316_v49, %v1316_v49  ;;  %1455 = vst [vmem:[%s3329_s29 + $0x10] sm:$0xff] %v1316_v49 }
 0x27f   : > { %v1426_v53 = vadd.f32 %v1425_v46, %v1411_v43  ;;  %v1387_v54 = vadd.f32 %v1788_v59, %v1386_v50 }
 0x281   : > { %v1427_v33 = vadd.f32 %v1426_v53, %v1412_v47 }
 0x29b   : > { %v1791_v57 = vpop.f32.mrb[4].mxu0 }
 0x29c   : > { %1458 = vst [vmem:[%s3329_s29 + $0x28] sm:$0xff] %v1791_v57  ;;  %v1326_v58 = vpop.f32.mrb[5].mxu0  ;;  %v1414_v11 = vmul.f32 %v1791_v57, %v1791_v57 }
 0x29d   : > { %v1388_v3 = vadd.f32 %v1387_v54, %v1326_v58  ;;  %v1413_v8 = vmul.f32 %v1326_v58, %v1326_v58  ;;  %1457 = vst [vmem:[%s3329_s29 + $0x20] sm:$0xff] %v1326_v58 }
 0x29f   : > { %v1428_v13 = vadd.f32 %v1427_v33, %v1413_v8  ;;  %v1389_v15 = vadd.f32 %v1791_v57, %v1388_v3 }
 0x2a1   : > { %v1429_v16 = vadd.f32 %v1428_v13, %v1414_v11 }
 0x2ba   : > { %v1794_v18 = vpop.f32.mrb[6].mxu0 }
 0x2bb   : > { %1460 = vst [vmem:[%s3329_s29 + $0x38] sm:$0xff] %v1794_v18  ;;  %v1336_v5 = vpop.f32.mrb[7].mxu0  ;;  %v1416_v19 = vmul.f32 %v1794_v18, %v1794_v18 }
 0x2bc   : > { %v1390_v4 = vadd.f32 %v1389_v15, %v1336_v5  ;;  %v1415_v37 = vmul.f32 %v1336_v5, %v1336_v5  ;;  %1459 = vst [vmem:[%s3329_s29 + $0x30] sm:$0xff] %v1336_v5 }
 0x2be   : > { %v1391_v6 = vadd.f32 %v1794_v18, %v1390_v4  ;;  %v1430_v48 = vadd.f32 %v1429_v16, %v1415_v37 }
 0x2c0   : > { %v1431_v9 = vadd.f32 %v1430_v48, %v1416_v19 }
 0x2da   : > { %v1797_v17 = vpop.f32.mrb[0].mxu1 }
 0x2db   : > { %1462 = vst [vmem:[%s3329_s29 + $0x48] sm:$0xff] %v1797_v17  ;;  %v1346_v38 = vpop.f32.mrb[1].mxu1  ;;  %v1418_v27 = vmul.f32 %v1797_v17, %v1797_v17 }
 0x2dc   : > { %v1392_v55 = vadd.f32 %v1391_v6, %v1346_v38  ;;  %v1417_v26 = vmul.f32 %v1346_v38, %v1346_v38  ;;  %1461 = vst [vmem:[%s3329_s29 + $0x40] sm:$0xff] %v1346_v38 }
 0x2de   : > { %v1432_v1 = vadd.f32 %v1431_v9, %v1417_v26  ;;  %v1393_v28 = vadd.f32 %v1797_v17, %v1392_v55 }
 0x2e0   : > { %v1433_v29 = vadd.f32 %v1432_v1, %v1418_v27 }
 0x2fa   : > { %v1800_v20 = vpop.f32.mrb[2].mxu1 }
 0x2fb   : > { %1464 = vst [vmem:[%s3329_s29 + $0x58] sm:$0xff] %v1800_v20  ;;  %v1356_v35 = vpop.f32.mrb[3].mxu1  ;;  %v1420_v10 = vmul.f32 %v1800_v20, %v1800_v20 }
 0x2fc   : > { %v1394_v30 = vadd.f32 %v1393_v28, %v1356_v35  ;;  %v1419_v23 = vmul.f32 %v1356_v35, %v1356_v35  ;;  %1463 = vst [vmem:[%s3329_s29 + $0x50] sm:$0xff] %v1356_v35 }
 0x2fe   : > { %v1434_v24 = vadd.f32 %v1433_v29, %v1419_v23  ;;  %v1395_v21 = vadd.f32 %v1800_v20, %v1394_v30 }
 0x300   : > { %v1435_v62 = vadd.f32 %v1434_v24, %v1420_v10 }
 0x31a   : > { %v1803_v42 = vpop.f32.mrb[4].mxu1 }
 0x31b   : > { %1466 = vst [vmem:[%s3329_s29 + $0x68] sm:$0xff] %v1803_v42  ;;  %v1366_v51 = vpop.f32.mrb[5].mxu1  ;;  %v1422_v39 = vmul.f32 %v1803_v42, %v1803_v42 }
 0x31c   : > { %v1396_v31 = vadd.f32 %v1395_v21, %v1366_v51  ;;  %v1421_v32 = vmul.f32 %v1366_v51, %v1366_v51  ;;  %1465 = vst [vmem:[%s3329_s29 + $0x60] sm:$0xff] %v1366_v51 }
 0x31e   : > { %v1436_v61 = vadd.f32 %v1435_v62, %v1421_v32  ;;  %v1397_v56 = vadd.f32 %v1803_v42, %v1396_v31 }
 0x320   : > { %v1437_v60 = vadd.f32 %v1436_v61, %v1422_v39 }
 0x327   : > { %v1806_v12 = vpop.f32.mrb[6].mxu1 }
 0x328   : > { %1468 = vst [vmem:[%s3329_s29 + $0x78] sm:$0xff] %v1806_v12  ;;  %v1376_v41 = vpop.f32.mrb[7].mxu1  ;;  %v1424_v44 = vmul.f32 %v1806_v12, %v1806_v12 }
 0x329   : > { %v1398_v14 = vadd.f32 %v1397_v56, %v1376_v41  ;;  %v1423_v2 = vmul.f32 %v1376_v41, %v1376_v41  ;;  %1467 = vst [vmem:[%s3329_s29 + $0x70] sm:$0xff] %v1376_v41 }
 0x32b   : > { %v1399_v25 = vadd.f32 %v1806_v12, %v1398_v14  ;;  %v1438_v22 = vadd.f32 %v1437_v60, %v1423_v2 }
 0x32d   : > { %1400 = vadd.xlane.f32.xlu0 %v1399_v25  ;;  %v1439_v36 = vadd.f32 %v1438_v22, %v1424_v44 }
 0x32f   : > { %1440 = vadd.xlane.f32.xlu1 %v1439_v36 }
 0x330   : > { %2131 = shalt.err (!%p2128_p4)
}
 0x331   : > { %s2132_s14 = scalar_lea.hbm %s3352_s10, 2048  ;;  %s2136_s5 = scalar_lea.hbm %s3567_s9, 8192 }
 0x332   : > { %p2133_p9 = scmp.ne.s32.totalorder %s3352_s10, %s2132_s14  ;;  %p2137_p5 = scmp.lt.u32.totalorder %s3352_s10, %s3567_s9 }
 0x333   : > { %p2138_p7 = scmp.lt.u32.totalorder %s2136_s5, %s2132_s14  ;;  %p2140_p2 = scmp.lt.u32.totalorder %s2132_s14, %s3352_s10 }
 0x334   : > { %p2134_p3 = pnand %p2133_p9, %p3568_p6 }
 0x335   : > { %p2139_p11 = por %p2138_p7, %p2137_p5 }
 0x336   : > { %p2135_p13 = pneg %p2134_p3 }
 0x337   : > { %p2141_p0 = por %p2140_p2, %p2139_p11 }
 0x339   : > { %p2142_p10 = pnand %p2141_p0, %p2135_p13 }
 0x33b   : > { %2145 = shalt.err (!%p2142_p10)
}
 0x33c   : > { %s2325_s18 = smov 128   ;;  %s1722_s4 = sshll.u32 %s2742_s1, 1 }
 0x33d   : > { %1835 = dma.vmem_to_hbm [thread:$0]  (%p3568_p6), %s3355_s12, 2048, %s3352_s10, %s1470_s17, %s2325_s18, %s2325_s18, %s2319_s16  }
 0x33e   : > { %s1746_s16 = sshll.u32 %s3565_s24, 1  ;;  %s398_s17 = scalar_lea.vmem [#allocation11], %s1722_s4 }
 0x33f   : > { %s1505_s30 = sadd.s32 %s3564_s7, %s1746_s16  ;;  %s1509_s27 = sshll.u32 %s398_s17, 4  ;;  %s3390_s27 = int_to_ptr.vmem [resolvable:$true] %s1509_s27 }
 0x340   : > { %s1747_s10 = sshll.u32 %s1505_s30, 5  ;;  %s3569_s14 = sld [smem:[#allocation37_spill]] }
 0x341   : > { %s1475_s7 = scalar_lea.sflag [#allocation12], %s2742_s1  ;;  %s2146_s24 = scalar_lea.vmem %s3390_s27, 32 }
 0x342   : > { %p2147_p12 = scmp.ne.s32.totalorder %s3390_s27, %s2146_s24  ;;  %s2326_s29 = smov [#allocation11]  }
 0x343   : > { %s2150_s5 = sshll.u32 %s2326_s29, 4  ;;  %s2151_s5 = int_to_ptr.vmem [resolvable:$false] %s2150_s5 }
 0x344   : > { %p2148_p8 = pnand %p2147_p12, %p3568_p6  ;;  %s2152_s2 = scalar_lea.vmem %s2151_s5, 64 }
 0x345   : > { %p2153_p4 = scmp.lt.s32.totalorder %s3390_s27, %s2151_s5  ;;  %p2154_p9 = scmp.lt.s32.totalorder %s2152_s2, %s2146_s24 }
 0x346   : > { %s3388_s13 = scalar_lea.hbm %s3569_s14, %s1747_s10  ;;  %p2149_p1 = pneg %p2148_p8 }
 0x347   : > { %p2155_p3 = por %p2154_p9, %p2153_p4 }
 0x349   : > { %p2156_p13 = pnand %p2155_p3, %p2149_p1 }
 0x3ba   : > { %v1401_v40 = vpop.xlane.xlu0 %1400 }
 0x3bb   : > { %v1402_v7 = vrot.slane %v1401_v40, 4 }
 0x3bc   : > { %v1441_v63 = vpop.xlane.xlu1 %1440 }
 0x3bd   : > { %v1403_v52 = vadd.f32 %v1402_v7, %v1401_v40  ;;  %v1442_v45 = vrot.slane %v1441_v63, 4 }
 0x3bf   : > { %v1404_v34 = vrot.slane %v1403_v52, 2  ;;  %v1443_v0 = vadd.f32 %v1442_v45, %v1441_v63 }
 0x3c1   : > { %v1444_v46 = vrot.slane %v1443_v0, 2  ;;  %v1405_v59 = vadd.f32 %v1404_v34, %v1403_v52 }
 0x3c3   : > { %v1445_v49 = vadd.f32 %v1444_v46, %v1443_v0  ;;  %v1406_v50 = vrot.slane %v1405_v59, 1 }
 0x3c5   : > { %v1407_v43 = vadd.f32 %v1406_v50, %v1405_v59  ;;  %v1446_v47 = vrot.slane %v1445_v49, 1 }
 0x3c7   : > { %1821 = vpush %v1407_v43  ;;  %v1447_v53 = vadd.f32 %v1446_v47, %v1445_v49 }
 0x3c9   : > { %1823 = vpush %v1447_v53 }
 0x3f8   : > { %s1822_s12 = spop %1821 }
 0x3f9   : > { %v1449_v54 = vstv %s1822_s12 }
 0x3fa   : > { %s1824_s3 = spop %1823 }
 0x3fb   : > { %v1450_v33 = vstv %s1824_s3 }
 0x3fc   : > { %v1451_v57 = vsel %vm461_vm0, %v1449_v54, %v1450_v33 }
 0x3fd   : > { %1452 = vst [vmem:[%s398_s17] sm:$0x3] %v1451_v57 }
 0x3fe   : > { %2159 = shalt.err (!%p2156_p13)
}
 0x3ff   : > { %s2160_s1 = scalar_lea.hbm %s3388_s13, 32  ;;  %s2164_s16 = scalar_lea.hbm %s3569_s14, 128 }
 0x400   : > { %p2161_p5 = scmp.ne.s32.totalorder %s3388_s13, %s2160_s1  ;;  %p2165_p2 = scmp.lt.u32.totalorder %s3388_s13, %s3569_s14 }
 0x401   : > { %p2166_p0 = scmp.lt.u32.totalorder %s2164_s16, %s2160_s1  ;;  %p2168_p12 = scmp.lt.u32.totalorder %s2160_s1, %s3388_s13 }
 0x402   : > { %p2162_p7 = pnand %p2161_p5, %p3568_p6 }
 0x403   : > { %p2167_p10 = por %p2166_p0, %p2165_p2 }
 0x404   : > { %p2163_p11 = pneg %p2162_p7 }
 0x405   : > { %p2169_p8 = por %p2168_p12, %p2167_p10 }
 0x407   : > { %p2170_p1 = pnand %p2169_p8, %p2163_p11 }
 0x409   : > { %2173 = shalt.err (!%p2170_p1)
}
 0x40a   : > { %1836 = dma.vmem_to_hbm [thread:$0]  (%p3568_p6), %s3390_s27, 32, %s3388_s13, %s1475_s7  }
 0x40b PF: > { %s3570_s10 = sld [smem:[#allocation19_spill]]  ;;  %s3571_s12 = sld [smem:[#allocation27_spill]] }
 0x40c   : > { %p1863_p4 = scmp.ge.s32.totalorder %s2308_s6, 2 }
 0x411   : > { %s1521_s17 = sand.u32 1, %s3570_s10   ;;  %p3572_p9 = scmp.ne.s32.totalorder %s3571_s12, 0 }
 0x412   : > { %s1522_s3 = scalar_lea.sflag [#allocation4], %s1521_s17 }
 0x413   : > { %p1854_p3 = pnand %p1863_p4, %p3572_p9 }
 0x415   : > { %2247 = dma.done.wait (!%p1854_p3), %s1522_s3, 2048  }
 0x416   : > { %2249 = vsyncadd (!%p1854_p3), %s1522_s3, 4294965248  ;;  %s1531_s8 = scalar_lea.sflag [#allocation12], %s1521_s17 }
 0x417   : > { %2251 = dma.done.wait (!%p1854_p3), %s1531_s8, 32  }
 0x418   : > { %2253 = vsyncadd (!%p1854_p3), %s1531_s8, 4294967264  ;;  %s29_s6 = sadd.s32 1, %s2308_s6   ;;  %s3574_s21 = sld [smem:[#allocation20_spill]] }
 0x419   : > { %p3420_p13 = scmp.ge.s32.totalorder %s29_s6, 6   ;;  %s3575_s24 = sld [smem:[#allocation21_spill]] }
 0x41a   : > { %s3576_s27 = sld [smem:[#allocation32_spill]]  ;;  %s3577_s13 = sld [smem:[#allocation24_spill]] }
 0x41b   : > { %s3578_s7 = sld [smem:[#allocation25_spill]]  ;;  %s3579_s29 = sld [smem:[#allocation26_spill]] }
 0x41c   : > { %s3580_s30 = sld [smem:[#allocation30_spill]]  ;;  %s3582_s18 = smov %s2260_s19 }
 0x41d   : > { %s3583_s19 = smov %s2264_s20  ;;  %s3584_s20 = smov %s2685_s22 }
 0x41e   : > { %s3585_s22 = smov %s2276_s23  ;;  %s3586_s23 = smov %s2609_s28 }
 0x41f   : > { %s3587_s25 = smov %s2288_s26  ;;  %28 = sbr.rel (!%p3420_p13) target bundleno = 21 (0x15), region = 126 }
 0x420   : > { %s3588_s26 = smov %s3576_s27  ;;  %s3589_s27 = smov %s3577_s13 }
 0x421   : > { %s3590_s28 = smov %s3578_s7 }
 0x426   :  { %1536 = vsyncpa [#allocation3], 1 }
 0x427   :  { %1538 = vsyncpa [#allocation3 + $0x1], 1 }
 0x428   :  { %1539 = vsyncpa [#allocation6], 1 }
 0x429   :  { %1541 = vsyncpa [#allocation6 + $0x1], 1 }
 0x42a   :  { %1542 = vsyncpa [#allocation9], 1 }
 0x42b   :  { %1543 = vsyncpa [#allocation4], 1 }
 0x42c   :  { %1545 = vsyncpa [#allocation4 + $0x1], 1 }
 0x42d   :  { %1546 = vsyncpa [#allocation12], 1 }
 0x42e   :  { %1548 = vsyncpa [#allocation12 + $0x1], 1 }

// kernel: double_conv_forward.4
= control target key start
LH: loop header
LB: loop body
LE: loop exit
PB: predicated region body
PF: predicated region fallthrough
CT: control target
= control target key end

     0   :  { %s6478_s0 = inlined_call_operand.hbm [shape: f32[2,16,16,128], index: 0, kind: input, shape index: {}, may-alias: {0,1,2}]   ;;  %s6479_s1 = inlined_call_operand.hbm [shape: f32[2,16,16,128], index: 1, kind: input, shape index: {}, may-alias: {0,1,2}]   ;;  %s6480_s2 = inlined_call_operand.hbm [shape: f32[2,16,16,128], index: 2, kind: input, shape index: {}, may-alias: {0,1,2}]   ;;  %s6481_s3 = inlined_call_operand.hbm [shape: f32[1152,128], index: 3, kind: input, shape index: {}]   ;;  %s6482_s4 = inlined_call_operand.hbm [shape: f32[2,1,128], index: 4, kind: input, shape index: {}]   ;;  %s6483_s5 = inlined_call_operand.hbm [shape: f32[2,1,128], index: 5, kind: input, shape index: {}]   ;;  %s6484_s6 = inlined_call_operand.hbm [shape: f32[2,16,16,128], index: 6, kind: output, shape index: {0}]   ;;  %s6485_s7 = inlined_call_operand.hbm [shape: f32[2,2,2,128], index: 7, kind: output, shape index: {1}]  }
   0x1   :  { %6532 = sst [smem:[#allocation47_spill]] %s6478_s0 }
   0x2   :  { %6533 = sst [smem:[#allocation48_spill]] %s6479_s1 }
   0x3   :  { %6534 = sst [smem:[#allocation49_spill]] %s6480_s2 }
   0x4   :  { %6535 = sst [smem:[#allocation50_spill]] %s6481_s3 }
   0x5   :  { %6536 = sst [smem:[#allocation51_spill]] %s6482_s4 }
   0x6   :  { %6537 = sst [smem:[#allocation52_spill]] %s6483_s5 }
   0x7   :  { %6538 = sst [smem:[#allocation53_spill]] %s6484_s6 }
   0x8   :  { %6539 = sst [smem:[#allocation54_spill]] %s6485_s7 }
   0x9   :  { %13 = vsyncpa [#allocation3], 0 }
   0xa   :  { %15 = vsyncpa [#allocation3 + $0x1], 0 }
   0xb   :  { %16 = vsyncpa [#allocation6], 0 }
   0xc   :  { %18 = vsyncpa [#allocation6 + $0x1], 0 }
   0xd   :  { %19 = vsyncpa [#allocation9], 0 }
   0xe   :  { %20 = vsyncpa [#allocation4], 0 }
   0xf   :  { %22 = vsyncpa [#allocation4 + $0x1], 0 }
  0x10   :  { %23 = vsyncpa [#allocation14], 0 }
  0x11   :  { %25 = vsyncpa [#allocation14 + $0x1], 0  ;;  %s4965_s24 = smov 0   ;;  %s4967_s25 = smov 0  }
  0x12   :  { %s4969_s26 = smov 0   ;;  %s4971_s27 = smov 0  }
  0x13   :  { %s4973_s28 = smov 0   ;;  %s4975_s29 = smov 0  }
  0x14   :  { %s4977_s30 = smov 0   ;;  %s4979_s8 = smov 0  }
  0x15   :  { %s4981_s9 = smov 0   ;;  %s4983_s10 = smov 0  }
  0x16   :  { %s4985_s11 = smov 0   ;;  %s4987_s12 = smov 0  }
  0x17   :  { %s4989_s13 = smov 0   ;;  %s4991_s14 = smov 0  }
  0x18   :  { %s4993_s15 = smov 0   ;;  %s4995_s16 = smov 0  }
  0x19   :  { %s4997_s17 = smov 0  }
  0x1a LB: > { %6540 = sst [smem:[#allocation23_spill]] %s4847_s24  ;;  %s5051_s18 = sadd.s32 4294967295, %s4911_s17   ;;  %s4911_s17 = sphi %s4997_s17, %s31_s17   ;;  %s4907_s16 = sphi %s4995_s16, %s6661_s16   ;;  %s4903_s15 = sphi %s4993_s15, %s6660_s15   ;;  %s4899_s14 = sphi %s4991_s14, %s6659_s14   ;;  %s4895_s13 = sphi %s4989_s13, %s6650_s13   ;;  %s4891_s12 = sphi %s4987_s12, %s6649_s12   ;;  %s4887_s11 = sphi %s4985_s11, %s6658_s11   ;;  %s4883_s10 = sphi %s4983_s10, %s6657_s10   ;;  %s4879_s9 = sphi %s4981_s9, %s6647_s9   ;;  %s4875_s8 = sphi %s4979_s8, %s6646_s8   ;;  %s4871_s30 = sphi %s4977_s30, %s6645_s30   ;;  %s4867_s29 = sphi %s4975_s29, %s6656_s29   ;;  %s4863_s28 = sphi %s4973_s28, %s6655_s28   ;;  %s4859_s27 = sphi %s4971_s27, %s6654_s27   ;;  %s4855_s26 = sphi %s4969_s26, %s6653_s26   ;;  %s4851_s25 = sphi %s4967_s25, %s6643_s25   ;;  %s4847_s24 = sphi %s4965_s24, %s6642_s24  }
  0x1b   : > { %6541 = sst [smem:[#allocation24_spill]] %s4851_s25  ;;  %s2954_s19 = sadd.s32 4294967294, %s4911_s17  }
  0x1c   : > { %6542 = sst [smem:[#allocation25_spill]] %s4855_s26  ;;  %s40_s20 = sadd.s32 1, %s4903_s15 }
  0x1d   : > { %6543 = sst [smem:[#allocation26_spill]] %s4871_s30  ;;  %s43_s21 = sadd.s32 1, %s4907_s16 }
  0x1e   : > { %6544 = sst [smem:[#allocation27_spill]] %s4875_s8  ;;  %p41_p0 = scmp.ge.s32.totalorder %s40_s20, 2 }
  0x1f   : > { %6545 = sst [smem:[#allocation28_spill]] %s4879_s9  ;;  %p6506_p1 = scmp.eq.s32.totalorder %s4911_s17, 0 }
  0x20   : > { %6546 = sst [smem:[#allocation29_spill]] %s4891_s12  ;;  %s88_s22 = sadd.s32 1, %s4879_s9 }
  0x21   : > { %6547 = sst [smem:[#allocation30_spill]] %s4895_s13  ;;  %p95_p2 = scmp.ne.s32.totalorder %s4879_s9, %s4875_s8 }
  0x22   : > { %6548 = sst [smem:[#allocation31_spill]] %s4899_s14  ;;  %s6663_s20 = smov (%p41_p0, %s40_s20), 0 }
  0x23   : > { %6549 = sst [smem:[#allocation32_spill]] %s4903_s15  ;;  %s6665_s21 = smov (!%p41_p0, %s43_s21), %s4907_s16 }
  0x24   : > { %6550 = sst [smem:[#allocation33_spill]] %s5051_s18  ;;  %s84_s23 = ssub.s32 %s4903_s15, %s6663_s20 }
  0x25   : > { %6551 = sst [smem:[#allocation34_spill]] %s6663_s20  ;;  %p5067_p3 = por %p95_p2, %p6506_p1 }
  0x26   : > { %p45_p4 = scmp.ge.s32.totalorder %s6665_s21, 2  ;;  %p6504_p5 = scmp.ne.s32.totalorder %s4875_s8, %s4871_s30 }
  0x27   : > { %p236_p6 = scmp.eq.s32.totalorder %s5051_s18, 3  ;;  %p242_p7 = scmp.eq.s32.totalorder %s2954_s19, 3 }
  0x28   : > { %s6667_s21 = smov (%p45_p4, %s6665_s21), 0  ;;  %p6505_p11 = scmp.lt.s32.totalorder %s4911_s17, 4 }
  0x29   : > { %6553 = sst [smem:[#allocation35_spill]] %s6667_s21  ;;  %p5076_p8 = por %p236_p6, %p95_p2 }
  0x2a   : > { %p5083_p9 = por %p242_p7, %p6504_p5  ;;  %s5089_s13 = ssub.s32 %s4907_s16, %s6667_s21 }
  0x2b   : > { %s6554_s6 = scalar_select %p5076_p8, 1, 0 }
  0x2c   : > { %s6556_s14 = scalar_select %p5083_p9, 1, 0 }
  0x2d   : > { %6555 = sst [smem:[#allocation36_spill]] %s6554_s6  ;;  %s85_s5 = sor.u32 %s84_s23, %s5089_s13 }
  0x2e   : > { %6557 = sst [smem:[#allocation37_spill]] %s6556_s14  ;;  %p86_p10 = scmp.eq.s32.totalorder %s85_s5, 0 }
  0x2f   : > { %s6511_s4 = sand.u32 1, %s4911_s17   ;;  %s5098_s24 = sshll.u32 %s4907_s16, 5 }
  0x30   : > { %s5094_s19 = scalar_select %p86_p10, %s4879_s9, %s88_s22  }
  0x31   : > { %s332_s6 = sand.u32 1, %s4879_s9   ;;  %s3049_s26 = sshll.u32 %s4903_s15, 4 }
  0x32   : > { %6558 = sst [smem:[#allocation38_spill]] %s5094_s19  ;;  %s2970_s25 = sshll.u32 %s332_s6, 7 }
  0x33   : > { %s341_s3 = sadd.s32 %s3049_s26, %s5098_s24  ;;  %s334_s21 = scalar_lea.vmem [#allocation5], %s2970_s25 }
  0x34   : > { %s2974_s14 = sshll.u32 %s341_s3, 7  ;;  %s344_s30 = sshll.u32 %s334_s21, 4  ;;  %s5108_s30 = int_to_ptr.vmem [resolvable:$true] %s344_s30 }
  0x35   : > { %s6559_s1 = sld [smem:[#allocation48_spill]]  ;;  %p5114_p12 = pnand %p6505_p11, %p5067_p3 }
  0x36   : > { %s5120_s3 = scalar_lea.sflag [#allocation6], %s6511_s4 }
  0x37   : > { %p4513_p0 = pneg %p5114_p12 }
  0x3b   : > { %s5106_s23 = scalar_lea.hbm %s6559_s1, %s2974_s14  ;;  %s4516_s26 = scalar_lea.hbm %s6559_s1, 8192 }
  0x3c   : > { %s4511_s6 = scalar_lea.hbm %s5106_s23, 2048  ;;  %p4517_p3 = scmp.lt.u32.totalorder %s5106_s23, %s6559_s1 }
  0x3d   : > { %p4512_p13 = scmp.ne.s32.totalorder %s5106_s23, %s4511_s6  ;;  %p4518_p6 = scmp.lt.u32.totalorder %s4516_s26, %s4511_s6 }
  0x3e   : > { %p4520_p10 = scmp.lt.u32.totalorder %s4511_s6, %s5106_s23 }
  0x3f   : > { %p4514_p2 = pnand %p4513_p0, %p4512_p13  ;;  %p4519_p7 = por %p4518_p6, %p4517_p3 }
  0x41   : > { %p4515_p4 = pneg %p4514_p2  ;;  %p4521_p5 = por %p4520_p10, %p4519_p7 }
  0x43   : > { %p4522_p11 = pnand %p4521_p5, %p4515_p4 }
  0x45   : > { %4525 = shalt.err (!%p4522_p11)
}
  0x46   : > { %s4526_s18 = scalar_lea.vmem %s5108_s30, 2048  ;;  %s4913_s21 = smov [#allocation5]  }
  0x47   : > { %p4527_p13 = scmp.ne.s32.totalorder %s5108_s30, %s4526_s18  ;;  %s4531_s22 = sshll.u32 %s4913_s21, 4  ;;  %s4532_s22 = int_to_ptr.vmem [resolvable:$false] %s4531_s22 }
  0x48   : > { %s4533_s25 = scalar_lea.vmem %s4532_s22, 4096  ;;  %p4534_p9 = scmp.lt.s32.totalorder %s5108_s30, %s4532_s22 }
  0x49   : > { %p4529_p2 = pnand %p4527_p13, %p4513_p0  ;;  %p4535_p3 = scmp.lt.s32.totalorder %s4533_s25, %s4526_s18 }
  0x4b   : > { %p4530_p1 = pneg %p4529_p2  ;;  %p4536_p6 = por %p4535_p3, %p4534_p9 }
  0x4d   : > { %p4537_p7 = pnand %p4536_p6, %p4530_p1 }
  0x4f   : > { %4540 = shalt.err (!%p4537_p7)
}
  0x50   : > { %s6507_s6 = smov 128   ;;  %s6509_s7 = smov 8  }
  0x51   : > { %4307 = dma.hbm_to_vmem [thread:$0]  (!%p5114_p12), %s5106_s23, 2048, %s5108_s30, %s5120_s3, %s6507_s6, %s6507_s6, %s6509_s7  }
  0x52   : > { %s2955_s26 = sshll.u32 %s4903_s15, 3  ;;  %s2957_s8 = sshll.u32 %s6663_s20, 3 }
  0x53   : > { %s2956_s14 = sadd.s32 4294967295, %s2955_s26  ;;  %s2958_s18 = sadd.s32 4294967295, %s2957_s8 }
  0x54   : > { %p49_p1 = scmp.gt.s32.totalorder %s2956_s14, 0  ;;  %p53_p5 = scmp.gt.s32.totalorder %s2958_s18, 0 }
  0x55   : > { %s60_s21 = sadd.s32 1, %s4891_s12  ;;  %p67_p9 = scmp.ne.s32.totalorder %s4891_s12, %s4887_s11 }
  0x56   : > { %s6669_s14 = smov (!%p49_p1, %s2956_s14), 0  ;;  %s6671_s18 = smov (!%p53_p5, %s2958_s18), 0 }
  0x57   : > { %p6561_p11 = scmp.eq.s32.totalorder %s4911_s17, 0  ;;  %s56_s30 = ssub.s32 %s6669_s14, %s6671_s18 }
  0x58   : > { %s5164_s23 = sadd.s32 8, %s2955_s26  ;;  %s57_s22 = sor.u32 %s56_s30, %s5089_s13 }
  0x59   : > { %p5158_p0 = por %p6561_p11, %p67_p9  ;;  %p58_p10 = scmp.eq.s32.totalorder %s57_s22, 0 }
  0x5a   : > { %s5168_s25 = sadd.s32 8, %s2957_s8  ;;  %s305_s7 = sand.u32 1, %s4891_s12  }
  0x5b   : > { %s5172_s6 = scalar_select %p58_p10, %s4891_s12, %s60_s21  }
  0x5c   : > { %s2967_s4 = sshll.u32 %s6669_s14, 1  ;;  %s2964_s1 = sshll.u32 %s305_s7, 4 }
  0x5d   : > { %6563 = sst [smem:[#allocation39_spill]] %s5172_s6  ;;  %s317_s20 = sadd.s32 %s5098_s24, %s2967_s4 }
  0x5e   : > { %s2969_s18 = sshll.u32 %s317_s20, 7  ;;  %s6564_s0 = sld [smem:[#allocation47_spill]] }
  0x5f   : > { %s307_s8 = scalar_lea.vmem [#allocation2], %s2964_s1  ;;  %p6565_p2 = scmp.lt.s32.totalorder %s4911_s17, 4 }
  0x60   : > { %s320_s30 = sshll.u32 %s307_s8, 4  ;;  %s6567_s4 = sand.u32 1, %s4911_s17   ;;  %s5181_s30 = int_to_ptr.vmem [resolvable:$true] %s320_s30 }
  0x61   : > { %p5187_p3 = pnand %p6565_p2, %p5158_p0  ;;  %s5193_s15 = scalar_lea.sflag [#allocation3], %s6567_s4 }
  0x63   : > { %p4543_p7 = pneg %p5187_p3 }
  0x64   : > { %s5179_s19 = scalar_lea.hbm %s6564_s0, %s2969_s18  ;;  %s4546_s21 = scalar_lea.hbm %s6564_s0, 8192 }
  0x65   : > { %s4541_s20 = scalar_lea.hbm %s5179_s19, 256  ;;  %p4547_p9 = scmp.lt.u32.totalorder %s5179_s19, %s6564_s0 }
  0x66   : > { %p4542_p6 = scmp.ne.s32.totalorder %s5179_s19, %s4541_s20  ;;  %p4548_p11 = scmp.lt.u32.totalorder %s4546_s21, %s4541_s20 }
  0x67   : > { %p4550_p10 = scmp.lt.u32.totalorder %s4541_s20, %s5179_s19 }
  0x68   : > { %p4544_p1 = pnand %p4543_p7, %p4542_p6  ;;  %p4549_p0 = por %p4548_p11, %p4547_p9 }
  0x6a   : > { %p4545_p5 = pneg %p4544_p1  ;;  %p4551_p2 = por %p4550_p10, %p4549_p0 }
  0x6c   : > { %p4552_p4 = pnand %p4551_p2, %p4545_p5 }
  0x6e   : > { %4555 = shalt.err (!%p4552_p4)
}
  0x6f   : > { %s4556_s18 = scalar_lea.vmem %s5181_s30, 256  ;;  %s4916_s26 = smov [#allocation2]  }
  0x70   : > { %p4557_p6 = scmp.ne.s32.totalorder %s5181_s30, %s4556_s18  ;;  %s4561_s8 = sshll.u32 %s4916_s26, 4  ;;  %s4562_s8 = int_to_ptr.vmem [resolvable:$false] %s4561_s8 }
  0x71   : > { %s4563_s4 = scalar_lea.vmem %s4562_s8, 512  ;;  %p4564_p12 = scmp.lt.s32.totalorder %s5181_s30, %s4562_s8 }
  0x72   : > { %p4559_p1 = pnand %p4557_p6, %p4543_p7  ;;  %p4565_p9 = scmp.lt.s32.totalorder %s4563_s4, %s4556_s18 }
  0x74   : > { %p4560_p13 = pneg %p4559_p1  ;;  %p4566_p11 = por %p4565_p9, %p4564_p12 }
  0x76   : > { %p4567_p0 = pnand %p4566_p11, %p4560_p13 }
  0x78   : > { %4570 = shalt.err (!%p4567_p0)
}
  0x79   : > { %s6568_s20 = smov 8   ;;  %s6569_s1 = smov 128  }
  0x7a   : > { %4304 = dma.hbm_to_vmem [thread:$0]  (!%p5187_p3), %s5179_s19, 256, %s5181_s30, %s5193_s15, %s6569_s1, %s6569_s1, %s6568_s20  }
  0x7b   : > { %s124_s14 = sadd.s32 1, %s4867_s29  ;;  %p6570_p4 = scmp.lt.s32.totalorder %s5164_s23, 15 }
  0x7c   : > { %p6571_p12 = scmp.lt.s32.totalorder %s5168_s25, 15  ;;  %p131_p13 = scmp.ne.s32.totalorder %s4867_s29, %s4863_s28 }
  0x7d   : > { %s6673_s23 = smov (!%p6570_p4, %s5164_s23), 15  ;;  %s356_s21 = sand.u32 1, %s4867_s29  }
  0x7e   : > { %s6675_s25 = smov (!%p6571_p12, %s5168_s25), 15  ;;  %p6572_p5 = scmp.eq.s32.totalorder %s4911_s17, 0 }
  0x7f   : > { %s120_s7 = ssub.s32 %s6673_s23, %s6675_s25  ;;  %s2975_s22 = sshll.u32 %s356_s21, 4 }
  0x80   : > { %s121_s5 = sor.u32 %s120_s7, %s5089_s13  ;;  %p133_p10 = por %p131_p13, %p6572_p5 }
  0x81   : > { %p122_p2 = scmp.eq.s32.totalorder %s121_s5, 0  ;;  %s2977_s18 = sshll.u32 %s6673_s23, 1 }
  0x82   : > { %s368_s8 = sadd.s32 %s2977_s18, %s5098_s24  ;;  %s358_s19 = scalar_lea.vmem [#allocation7], %s2975_s22 }
  0x83   : > { %s5240_s26 = scalar_select %p122_p2, %s4867_s29, %s124_s14  }
  0x84   : > { %s371_s30 = sshll.u32 %s358_s19, 4  ;;  %s2979_s4 = sshll.u32 %s368_s8, 7  ;;  %s5243_s30 = int_to_ptr.vmem [resolvable:$true] %s371_s30 }
  0x85   : > { %s6573_s2 = sld [smem:[#allocation49_spill]]  ;;  %p6574_p3 = scmp.lt.s32.totalorder %s4911_s17, 4 }
  0x87   : > { %p5252_p6 = pnand %p6574_p3, %p133_p10 }
  0x89   : > { %p4573_p9 = pneg %p5252_p6 }
  0x8b   : > { %s5248_s12 = scalar_lea.hbm %s6573_s2, %s2979_s4  ;;  %s4576_s25 = scalar_lea.hbm %s6573_s2, 8192 }
  0x8c   : > { %s4571_s24 = scalar_lea.hbm %s5248_s12, 256  ;;  %p4577_p4 = scmp.lt.u32.totalorder %s5248_s12, %s6573_s2 }
  0x8d   : > { %p4572_p1 = scmp.ne.s32.totalorder %s5248_s12, %s4571_s24  ;;  %p4578_p12 = scmp.lt.u32.totalorder %s4576_s25, %s4571_s24 }
  0x8e   : > { %p4580_p5 = scmp.lt.u32.totalorder %s4571_s24, %s5248_s12 }
  0x8f   : > { %p4574_p11 = pnand %p4573_p9, %p4572_p1  ;;  %p4579_p13 = por %p4578_p12, %p4577_p4 }
  0x91   : > { %p4575_p0 = pneg %p4574_p11  ;;  %p4581_p10 = por %p4580_p5, %p4579_p13 }
  0x93   : > { %p4582_p2 = pnand %p4581_p10, %p4575_p0 }
  0x95   : > { %4585 = shalt.err (!%p4582_p2)
}
  0x96   : > { %s4586_s21 = scalar_lea.vmem %s5243_s30, 256  ;;  %s4917_s5 = smov [#allocation7]  }
  0x97   : > { %p4587_p3 = scmp.ne.s32.totalorder %s5243_s30, %s4586_s21  ;;  %s4591_s22 = sshll.u32 %s4917_s5, 4  ;;  %s4592_s22 = int_to_ptr.vmem [resolvable:$false] %s4591_s22 }
  0x98   : > { %s4593_s18 = scalar_lea.vmem %s4592_s22, 512  ;;  %p4594_p7 = scmp.lt.s32.totalorder %s5243_s30, %s4592_s22 }
  0x99   : > { %p4589_p1 = pnand %p4587_p3, %p4573_p9  ;;  %p4595_p4 = scmp.lt.s32.totalorder %s4593_s18, %s4586_s21 }
  0x9b   : > { %p4590_p11 = pneg %p4589_p1  ;;  %p4596_p12 = por %p4595_p4, %p4594_p7 }
  0x9d   : > { %p4597_p13 = pnand %p4596_p12, %p4590_p11 }
  0x9f   : > { %4600 = shalt.err (!%p4597_p13)
}
  0xa0   : > { %s6576_s8 = sld [smem:[#allocation33_spill]]  ;;  %s6577_s19 = sld [smem:[#allocation27_spill]] }
  0xa1   : > { %s6578_s4 = sld [smem:[#allocation26_spill]]  ;;  %p2961_p9 = scmp.ge.s32.totalorder %s4911_s17, 1 }
  0xa2   : > { %4310 = dma.hbm_to_vmem [thread:$0]  (!%p5252_p6), %s5248_s12, 256, %s5243_s30, %s5120_s3, %s6569_s1, %s6569_s1, %s6568_s20  }
  0xa3   : > { %p277_p0 = scmp.lt.s32.totalorder %s4911_s17, 5  ;;  %p6579_p5 = scmp.ne.s32.totalorder %s4887_s11, %s4883_s10 }
  0xa4   : > { %p6583_p1 = scmp.ne.s32.totalorder %s4863_s28, %s4859_s27  ;;  %s4918_s10 = smov [#allocation8]  }
  0xa5   : > { %p5315_p6 = pnand %p2961_p9, %p277_p0  ;;  %s289_s30 = sshll.u32 %s4918_s10, 4  ;;  %s290_s30 = int_to_ptr.vmem [resolvable:$true] %s289_s30 }
  0xa6   : > { %p6515_p7 = scmp.eq.s32.totalorder %s6576_s8, 0  ;;  %s6587_s14 = sld [smem:[#allocation50_spill]] }
  0xa7   : > { %p6581_p2 = scmp.ne.s32.totalorder %s6577_s19, %s6578_s4  ;;  %p4297_p4 = pneg %p5315_p6 }
  0xa8   : > { %p5293_p10 = por %p6515_p7, %p6579_p5  ;;  %p5311_p11 = por %p6583_p1, %p6515_p7 }
  0xa9   : > { %p5302_p3 = por %p6581_p2, %p6515_p7  ;;  %p5323_p12 = pnand %p4297_p4, %p6515_p7 }
  0xaa   : > { %s6580_s23 = scalar_select %p5293_p10, 1, 0 }
  0xab   : > { %s6582_s24 = scalar_select %p5302_p3, 1, 0 }
  0xac   : > { %s6584_s0 = scalar_select %p5311_p11, 1, 0 }
  0xad   : > { %s6585_s12 = scalar_select %p5315_p6, 1, 0 }
  0xae   : > { %s6588_s7 = smov %s6587_s14  ;;  %s4601_s21 = scalar_lea.hbm %s6587_s14, 18432 }
  0xaf   : > { %p4602_p13 = scmp.ne.s32.totalorder %s6588_s7, %s4601_s21  ;;  %p4603_p9 = pneg %p5323_p12 }
  0xb0   : > { %p4608_p2 = scmp.lt.u32.totalorder %s4601_s21, %s6588_s7 }
  0xb1   : > { %p4604_p0 = pnand %p4603_p9, %p4602_p13 }
  0xb3   : > { %p4605_p5 = pneg %p4604_p0 }
  0xb5   : > { %p4610_p1 = pnand %p4608_p2, %p4605_p5 }
  0xb7   : > { %4613 = shalt.err (!%p4610_p1)
}
  0xb8   : > { %s4614_s4 = scalar_lea.vmem %s290_s30, 18432  ;;  %p4622_p11 = scmp.lt.s32.totalorder %s290_s30, %s290_s30 }
  0xb9   : > { %p4615_p4 = scmp.ne.s32.totalorder %s290_s30, %s4614_s4  ;;  %p4623_p3 = scmp.lt.s32.totalorder %s4614_s4, %s4614_s4 }
  0xbb   : > { %p4617_p7 = pnand %p4615_p4, %p4603_p9  ;;  %p4624_p10 = por %p4623_p3, %p4622_p11 }
  0xbd   : > { %p4618_p8 = pneg %p4617_p7 }
  0xbf   : > { %p4625_p6 = pnand %p4624_p10, %p4618_p8 }
  0xc1   : > { %4628 = shalt.err (!%p4625_p6)
}
  0xc2   : > { %s6589_s25 = sld [smem:[#allocation25_spill]]  ;;  %s6590_s14 = sld [smem:[#allocation24_spill]] }
  0xc3   : > { %s6591_s21 = sld [smem:[#allocation23_spill]]  ;;  %p169_p8 = scmp.eq.s32.totalorder %s5089_s13, 0 }
  0xc4   : > { %4300 = dma.hbm_to_vmem [thread:$0]  (!%p5323_p12), %s6588_s7, 18432, %s290_s30, [#allocation9], %s6569_s1, %s6569_s1, %s6568_s20  }
  0xc5   : > { %p6592_p3 = scmp.eq.s32.totalorder %s4911_s17, 0  ;;  %p6593_p6 = scmp.eq.s32.totalorder %s6576_s8, 0 }
  0xc6   : > { %s2980_s19 = sshll.u32 %s4907_s16, 4  ;;  %s6595_s27 = sld [smem:[#allocation51_spill]] }
  0xc7   : > { %p6597_p12 = scmp.lt.s32.totalorder %s4911_s17, 4 }
  0xc8   : > { %s171_s6 = sadd.s32 1, %s6589_s25  ;;  %p178_p7 = scmp.ne.s32.totalorder %s6589_s25, %s6590_s14 }
  0xc9   : > { %p184_p10 = scmp.ne.s32.totalorder %s6590_s14, %s6591_s21  ;;  %s6522_s18 = sand.u32 1, %s6589_s25  }
  0xca   : > { %s5353_s5 = scalar_select %p169_p8, %s6589_s25, %s171_s6  }
  0xcb   : > { %p180_p11 = por %p178_p7, %p6592_p3  ;;  %p5359_p13 = por %p184_p10, %p6593_p6 }
  0xcc   : > { %s6596_s2 = smov %s6595_s27  ;;  %s5368_s9 = scalar_lea.hbm %s6595_s27, %s2980_s19 }
  0xcd   : > { %s6594_s22 = scalar_select %p5359_p13, 1, 0 }
  0xce   : > { %s384_s13 = scalar_lea.vmem [#allocation10], %s6522_s18  ;;  %p5374_p9 = pnand %p6597_p12, %p180_p11 }
  0xcf   : > { %s391_s20 = sshll.u32 %s384_s13, 4  ;;  %s6599_s14 = sld [smem:[#allocation52_spill]]  ;;  %s5378_s20 = int_to_ptr.vmem [resolvable:$true] %s391_s20 }
  0xd0   : > { %s4629_s4 = scalar_lea.hbm %s5368_s9, 16  ;;  %p4631_p5 = pneg %p5374_p9 }
  0xd1   : > { %p4630_p0 = scmp.ne.s32.totalorder %s5368_s9, %s4629_s4  ;;  %s4634_s13 = scalar_lea.hbm %s6596_s2, 32 }
  0xd2   : > { %p4635_p4 = scmp.lt.u32.totalorder %s5368_s9, %s6596_s2  ;;  %p4636_p8 = scmp.lt.u32.totalorder %s4634_s13, %s4629_s4 }
  0xd3   : > { %p4632_p2 = pnand %p4631_p5, %p4630_p0  ;;  %p4638_p10 = scmp.lt.u32.totalorder %s4629_s4, %s5368_s9 }
  0xd4   : > { %p4637_p7 = por %p4636_p8, %p4635_p4 }
  0xd5   : > { %s6600_s21 = smov %s6599_s14  ;;  %s5383_s6 = scalar_lea.hbm %s6599_s14, %s2980_s19 }
  0xd6   : > { %p4633_p1 = pneg %p4632_p2  ;;  %p4639_p3 = por %p4638_p10, %p4637_p7 }
  0xd8   : > { %p4640_p11 = pnand %p4639_p3, %p4633_p1 }
  0xda   : > { %4643 = shalt.err (!%p4640_p11)
}
  0xdb   : > { %s4644_s19 = scalar_lea.vmem %s5378_s20, 16  ;;  %s4919_s8 = smov [#allocation10]  }
  0xdc   : > { %p4645_p6 = scmp.ne.s32.totalorder %s5378_s20, %s4644_s19  ;;  %s4649_s30 = sshll.u32 %s4919_s8, 4  ;;  %s4650_s30 = int_to_ptr.vmem [resolvable:$false] %s4649_s30 }
  0xdd   : > { %s4651_s7 = scalar_lea.vmem %s4650_s30, 32  ;;  %p4652_p2 = scmp.lt.s32.totalorder %s5378_s20, %s4650_s30 }
  0xde   : > { %p4647_p12 = pnand %p4645_p6, %p4631_p5  ;;  %p4653_p4 = scmp.lt.s32.totalorder %s4651_s7, %s4644_s19 }
  0xe0   : > { %p4648_p0 = pneg %p4647_p12  ;;  %p4654_p8 = por %p4653_p4, %p4652_p2 }
  0xe2   : > { %p4655_p7 = pnand %p4654_p8, %p4648_p0 }
  0xe4   : > { %4658 = shalt.err (!%p4655_p7)
}
  0xe5   : > { %4313 = dma.hbm_to_vmem [thread:$0]  (!%p5374_p9), %s5368_s9, 16, %s5378_s20, %s5193_s15  }
  0xe6   : > { %s6601_s18 = sand.u32 1, %s6589_s25   ;;  %s4659_s10 = scalar_lea.hbm %s5383_s6, 16 }
  0xe7   : > { %s401_s14 = scalar_lea.vmem [#allocation11], %s6601_s18  ;;  %p4660_p1 = scmp.ne.s32.totalorder %s5383_s6, %s4659_s10 }
  0xe8   : > { %s408_s4 = sshll.u32 %s401_s14, 4  ;;  %s4664_s19 = scalar_lea.hbm %s6600_s21, 32  ;;  %s409_s4 = int_to_ptr.vmem [resolvable:$true] %s408_s4 }
  0xe9   : > { %p4662_p10 = pnand %p4660_p1, %p4631_p5  ;;  %p4665_p11 = scmp.lt.u32.totalorder %s5383_s6, %s6600_s21 }
  0xea   : > { %p4666_p6 = scmp.lt.u32.totalorder %s4664_s19, %s4659_s10  ;;  %p4668_p0 = scmp.lt.u32.totalorder %s4659_s10, %s5383_s6 }
  0xeb   : > { %p4663_p3 = pneg %p4662_p10 }
  0xec   : > { %p4667_p12 = por %p4666_p6, %p4665_p11 }
  0xee   : > { %p4669_p2 = por %p4668_p0, %p4667_p12 }
  0xf0   : > { %p4670_p4 = pnand %p4669_p2, %p4663_p3 }
  0xf2   : > { %4673 = shalt.err (!%p4670_p4)
}
  0xf3   : > { %s4674_s9 = scalar_lea.vmem %s409_s4, 16  ;;  %s4920_s15 = smov [#allocation11]  }
  0xf4   : > { %p4675_p8 = scmp.ne.s32.totalorder %s409_s4, %s4674_s9  ;;  %s4679_s25 = sshll.u32 %s4920_s15, 4  ;;  %s4680_s25 = int_to_ptr.vmem [resolvable:$false] %s4679_s25 }
  0xf5   : > { %s4681_s20 = scalar_lea.vmem %s4680_s25, 32  ;;  %p4682_p10 = scmp.lt.s32.totalorder %s409_s4, %s4680_s25 }
  0xf6   : > { %p4677_p7 = pnand %p4675_p8, %p4631_p5  ;;  %p4683_p13 = scmp.lt.s32.totalorder %s4681_s20, %s4674_s9 }
  0xf8   : > { %p4678_p1 = pneg %p4677_p7  ;;  %p4684_p6 = por %p4683_p13, %p4682_p10 }
  0xfa   : > { %p4685_p11 = pnand %p4684_p6, %p4678_p1 }
  0xfc   : > { %4688 = shalt.err (!%p4685_p11)
}
  0xfd   : > { %4316 = dma.hbm_to_vmem [thread:$0]  (!%p5374_p9), %s5383_s6, 16, %s409_s4, %s5120_s3  }
  0xfe   : > { %p6602_p3 = scmp.ne.s32.totalorder %s6585_s12, 0 }
 0x100   : > { %417 = sbr.rel (%p6602_p3) target bundleno = 975 (0x3cf), region = 44 }
 0x107   : > { %s6603_s7 = sld [smem:[#allocation33_spill]]  ;;  %s421_s14 = sand.u32 1, %s4887_s11  }
 0x108   : > { %s5437_s10 = sshll.u32 %s421_s14, 4  ;;  %p6604_p13 = scmp.ne.s32.totalorder %s6580_s23, 0 }
 0x109   : > { %s423_s13 = scalar_lea.vmem [#allocation2], %s5437_s10 }
 0x10d   : > { %s419_s18 = sand.u32 1, %s6603_s7  }
 0x10e   : > { %s420_s27 = scalar_lea.sflag [#allocation3], %s419_s18 }
 0x10f   : > { %4814 = dma.done.wait (%p6604_p13), %s420_s27, 256  }
 0x110   : > { %4816 = vsyncadd (%p6604_p13), %s420_s27, 4294967040  ;;  %s6605_s1 = sld [smem:[#allocation27_spill]]  ;;  %s429_s6 = scalar_lea.sflag [#allocation6], %s419_s18 }
 0x111   : > { %p6606_p9 = scmp.ne.s32.totalorder %s6582_s24, 0 }
 0x116   : > { %s5445_s3 = sand.u32 1, %s6605_s1  }
 0x117   : > { %s2984_s12 = sshll.u32 %s5445_s3, 7 }
 0x118   : > { %s5450_s4 = scalar_lea.vmem [#allocation5], %s2984_s12 }
 0x119   : > { %4818 = dma.done.wait (%p6606_p9), %s429_s6, 2048  }
 0x11a   : > { %4820 = vsyncadd (%p6606_p9), %s429_s6, 4294965248  ;;  %s439_s23 = sand.u32 1, %s4863_s28   ;;  %p6607_p5 = scmp.ne.s32.totalorder %s6584_s0, 0 }
 0x11b   : > { %s5457_s19 = sshll.u32 %s439_s23, 4 }
 0x11c   : > { %s441_s8 = scalar_lea.vmem [#allocation7], %s5457_s19 }
 0x11d   : > { %4822 = dma.done.wait (%p6607_p5), %s429_s6, 256  }
 0x11e   : > { %4824 = vsyncadd (%p6607_p5), %s429_s6, 4294967040  ;;  %p6608_p12 = scmp.eq.s32.totalorder %s6603_s7, 0 }
 0x120   : > { %4826 = dma.done.wait (%p6608_p12), [#allocation9], 18432   ;;  %p6609_p0 = pmov %p6608_p12 }
 0x121   : > { %s6610_s24 = sld [smem:[#allocation24_spill]]  ;;  %p6611_p2 = scmp.ne.s32.totalorder %s6594_s22, 0 }
 0x122   : > { %4828 = vsyncadd (%p6609_p0), [#allocation9], 4294948864 }
 0x127   : > { %s452_s30 = sand.u32 1, %s6610_s24  }
 0x128   : > { %s5469_s9 = scalar_lea.vmem [#allocation10], %s452_s30 }
 0x129   : > { %4830 = dma.done.wait (%p6611_p2), %s420_s27, 16  }
 0x12a   : > { %4832 = vsyncadd (%p6611_p2), %s420_s27, 4294967280  ;;  %s5475_s15 = scalar_lea.vmem [#allocation11], %s452_s30 }
 0x12b   : > { %4834 = dma.done.wait (%p6611_p2), %s429_s6, 16  }
 0x12c   : > { %4836 = vsyncadd (%p6611_p2), %s429_s6, 4294967280  ;;  %v956_v0 = vld [vmem:[#allocation8 + $0x200] sm:$0xff]  ;;  %v957_v1 = vld [vmem:[#allocation8 + $0x208] sm:$0xff]  ;;  %s6612_s0 = sld [smem:[#allocation30_spill]]  ;;  %vm811_vm0 = vcmask 1040384   ;;  %vm1052_vm2 = vcmask 1046528  }
 0x12d   : > { %v908_v2 = vld [vmem:[#allocation8 + $0x80] sm:$0xff]  ;;  %v3971_v3 = vpack.c.bf16 %v957_v1, %v956_v0  ;;  %v909_v4 = vld [vmem:[#allocation8 + $0x88] sm:$0xff]  ;;  %v958_v5 = vld [vmem:[#allocation8 + $0x210] sm:$0xff]  ;;  %vm1399_vm4 = vcmask 1045504   ;;  %s6288_s20 = scalar_lea.vmem [#allocation12], %s2984_s12  ;;  %s6633_s7 = sld [smem:[#allocation31_spill]] }
 0x12e   : > { %v959_v6 = vld [vmem:[#allocation8 + $0x218] sm:$0xff]  ;;  %v3843_v7 = vpack.c.bf16 %v909_v4, %v908_v2  ;;  %v910_v9 = vld [vmem:[#allocation8 + $0x90] sm:$0xff]  ;;  %v960_v11 = vld [vmem:[#allocation8 + $0x220] sm:$0xff]  ;;  %s6634_s18 = sld [smem:[#allocation36_spill]]  ;;  %s2721_s1 = sshll.u32 %s6288_s20, 4  ;;  %s6358_s1 = int_to_ptr.vmem [resolvable:$true] %s2721_s1 }
 0x12f   : > { %v3975_v8 = vpack.c.bf16 %v959_v6, %v958_v5  ;;  %v911_v10 = vld [vmem:[#allocation8 + $0x98] sm:$0xff]  ;;  %3972 = vmatprep.subr.bf16.mxu0 %v3971_v3  ;;  %v961_v13 = vld [vmem:[#allocation8 + $0x228] sm:$0xff]  ;;  %v912_v14 = vld [vmem:[#allocation8 + $0xa0] sm:$0xff]  ;;  %s2700_s19 = scalar_lea.sflag [#allocation4], %s5445_s3  ;;  %s4921_s24 = smov [#allocation12]  }
 0x130   : > { %v3847_v12 = vpack.c.bf16 %v911_v10, %v910_v9  ;;  %v913_v15 = vld [vmem:[#allocation8 + $0xa8] sm:$0xff]  ;;  %3974 = vmatpush3.bf16.msra.mxu0 %v3971_v3  ;;  %3844 = vmatprep.subr.bf16.mxu1 %v3843_v7  ;;  %v3979_v16 = vpack.c.bf16 %v961_v13, %v960_v11  ;;  %v962_v18 = vld [vmem:[#allocation8 + $0x230] sm:$0xff]  ;;  %v963_v19 = vld [vmem:[#allocation8 + $0x238] sm:$0xff]  ;;  %s4693_s30 = sshll.u32 %s4921_s24, 4  ;;  %s4694_s30 = int_to_ptr.vmem [resolvable:$false] %s4693_s30 }
 0x131   : > { %3846 = vmatpush3.bf16.msra.mxu1 %v3843_v7  ;;  %3976 = vmatprep.subr.bf16.mxu0 %v3975_v8  ;;  %v3851_v17 = vpack.c.bf16 %v913_v15, %v912_v14  ;;  %v914_v20 = vld [vmem:[#allocation8 + $0xb0] sm:$0xff]  ;;  %v915_v21 = vld [vmem:[#allocation8 + $0xb8] sm:$0xff]  ;;  %v3983_v22 = vpack.c.bf16 %v963_v19, %v962_v18  ;;  %v964_v23 = vld [vmem:[#allocation8 + $0x240] sm:$0xff]  ;;  %p4696_p11 = scmp.lt.s32.totalorder %s6358_s1, %s4694_s30 }
 0x132   : > { %3848 = vmatprep.subr.bf16.mxu1 %v3847_v12  ;;  %p779_p4 = scmp.eq.s32.totalorder %s6612_s0, 0  ;;  %v965_v24 = vld [vmem:[#allocation8 + $0x248] sm:$0xff]  ;;  %v3855_v25 = vpack.c.bf16 %v915_v21, %v914_v20  ;;  %v916_v26 = vld [vmem:[#allocation8 + $0xc0] sm:$0xff]  ;;  %v966_v32 = vld [vmem:[#allocation8 + $0x250] sm:$0xff]  ;;  %p785_p8 = scmp.eq.s32.totalorder %s6612_s0, 1 }
 0x133   : > { %v917_v27 = vld [vmem:[#allocation8 + $0xc8] sm:$0xff]  ;;  %v527_v28 = vld [vmem:[%s5450_s4] sm:$0xff]  ;;  %v967_v33 = vld [vmem:[#allocation8 + $0x258] sm:$0xff]  ;;  %v3987_v37 = vpack.c.bf16 %v965_v24, %v964_v23  ;;  %s3050_s14 = sshll.u32 %s6612_s0, 4  ;;  %s3043_s10 = sshll.u32 %s6633_s7, 5 }
 0x134   : > { %3978 = vmatpush3.bf16.msra.mxu0 %v3975_v8  ;;  %v528_v29 = vld [vmem:[%s5450_s4 + $0x8] sm:$0xff]  ;;  %v5485_v30 = vld [vmem:[%s5469_s9] ss:$0 sm:$0xff]  ;;  %s5496_s22 = scalar_select %p779_p4, 1, 0  ;;  %v918_v38 = vld [vmem:[#allocation8 + $0xd0] sm:$0xff]  ;;  %v3859_v42 = vpack.c.bf16 %v917_v27, %v916_v26  ;;  %v3991_v55 = vpack.c.bf16 %v967_v33, %v966_v32 }
 0x135   : > { %3850 = vmatpush3.bf16.msra.mxu1 %v3847_v12  ;;  %3980 = vmatprep.subr.bf16.mxu0 %v3979_v16  ;;  %v5488_v31 = vld [vmem:[%s5475_s15] ss:$0 sm:$0xff]  ;;  %v554_v34 = vmul.f32 %v5485_v30, %v527_v28  ;;  %v555_v35 = vmul.f32 %v5485_v30, %v528_v29  ;;  %v919_v39 = vld [vmem:[#allocation8 + $0xd8] sm:$0xff]  ;;  %v529_v47 = vld [vmem:[%s5450_s4 + $0x10] sm:$0xff]  ;;  %s6153_s25 = scalar_select %p785_p8, 1, 0 }
 0x136   : > { %3852 = vmatprep.subr.bf16.mxu1 %v3851_v17  ;;  %v525_v36 = vld [vmem:[%s423_s13] sm:$0xff]  ;;  %v526_v40 = vld [vmem:[%s423_s13 + $0x8] sm:$0xff]  ;;  %v556_v53 = vmul.f32 %v5485_v30, %v529_v47  ;;  %v781_v60 = vstv %s5496_s22  ;;  %v3863_v61 = vpack.c.bf16 %v919_v39, %v918_v38  ;;  %vm5946_vm3 = vmneg %vm811_vm0  ;;  %s2718_s27 = sadd.s32 %s3050_s14, %s3043_s10  ;;  %p6636_p1 = scmp.ne.s32.totalorder %s6634_s18, 0 }
 0x137   : > { %v552_v41 = vmul.f32 %v5485_v30, %v525_v36  ;;  %v968_v43 = vld [vmem:[#allocation8 + $0x260] sm:$0xff]  ;;  %v5502_v44 = vadd.f32 %v5488_v31, %v554_v34  ;;  %v5505_v45 = vadd.f32 %v5488_v31, %v555_v35  ;;  %v553_v46 = vmul.f32 %v5485_v30, %v526_v40  ;;  %v530_v48 = vld [vmem:[%s5450_s4 + $0x18] sm:$0xff]  ;;  %v969_v49 = vld [vmem:[#allocation8 + $0x268] sm:$0xff]  ;;  %s3044_s13 = sshll.u32 %s2718_s27, 7 }
 0x138   : > { %3982 = vmatpush3.bf16.msra.mxu0 %v3979_v16  ;;  %v920_v50 = vld [vmem:[#allocation8 + $0xe0] sm:$0xff]  ;;  %v921_v51 = vld [vmem:[#allocation8 + $0xe8] sm:$0xff]  ;;  %v557_v54 = vmul.f32 %v5485_v30, %v530_v48  ;;  %v970_v56 = vld [vmem:[#allocation8 + $0x270] sm:$0xff]  ;;  %v5523_v2 = vadd.f32 %v5488_v31, %v556_v53  ;;  %v3995_v3 = vpack.c.bf16 %v969_v49, %v968_v43  ;;  %vm5593_vm1 = vcmp.eq.s32.totalorder %v781_v60, 1 }
 0x139   : > { %3854 = vmatpush3.bf16.msra.mxu1 %v3851_v17  ;;  %3984 = vmatprep.subr.bf16.mxu0 %v3983_v22  ;;  %v5511_v52 = vadd.f32 %v5488_v31, %v552_v41  ;;  %v971_v57 = vld [vmem:[#allocation8 + $0x278] sm:$0xff]  ;;  %v621_v58 = vmul.f32 0.044715, %v5502_v44  ;;  %v622_v59 = vmul.f32 0.044715, %v5505_v45  ;;  %v922_v62 = vld [vmem:[#allocation8 + $0xf0] sm:$0xff]  ;;  %v5519_v0 = vadd.f32 %v5488_v31, %v553_v46 }
 0x13a   : > { %3856 = vmatprep.subr.bf16.mxu1 %v3855_v25  ;;  %v923_v63 = vld [vmem:[#allocation8 + $0xf8] sm:$0xff]  ;;  %v972_v6 = vld [vmem:[#allocation8 + $0x280] sm:$0xff]  ;;  %v973_v7 = vld [vmem:[#allocation8 + $0x288] sm:$0xff]  ;;  %v5528_v8 = vadd.f32 %v5488_v31, %v557_v54  ;;  %v3867_v9 = vpack.c.bf16 %v921_v51, %v920_v50  ;;  %v5530_v10 = vpack.c.bf16 %v971_v57, %v970_v56  ;;  %v623_v17 = vmul.f32 0.044715, %v5523_v2 }
 0x13b   : > { %v619_v1 = vmul.f32 0.044715, %v5511_v52  ;;  %v641_v4 = vmul.f32 %v621_v58, %v5502_v44  ;;  %v642_v5 = vmul.f32 %v622_v59, %v5505_v45  ;;  %v620_v11 = vmul.f32 0.044715, %v5519_v0  ;;  %v531_v13 = vld [vmem:[%s5450_s4 + $0x20] sm:$0xff]  ;;  %v532_v18 = vld [vmem:[%s5450_s4 + $0x28] sm:$0xff] }
 0x13c   : > { %3986 = vmatpush3.bf16.msra.mxu0 %v3983_v22  ;;  %v5535_v14 = vpack.c.bf16 %v923_v63, %v922_v62  ;;  %v5541_v19 = vpack.c.bf16 %v973_v7, %v972_v6  ;;  %v624_v22 = vmul.f32 0.044715, %v5528_v8  ;;  %v558_v26 = vmul.f32 %v5485_v30, %v531_v13  ;;  %v892_v29 = vld [vmem:[#allocation8] sm:$0xff]  ;;  %v893_v32 = vld [vmem:[#allocation8 + $0x8] sm:$0xff]  ;;  %v974_v51 = vld [vmem:[#allocation8 + $0x290] sm:$0xff] }
 0x13d   : > { %3858 = vmatpush3.bf16.msra.mxu1 %v3855_v25  ;;  %3988 = vmatprep.subr.bf16.mxu0 %v3987_v37  ;;  %v639_v12 = vmul.f32 %v619_v1, %v5511_v52  ;;  %v661_v15 = vmul.f32 %v641_v4, %v5502_v44  ;;  %v662_v16 = vmul.f32 %v642_v5, %v5505_v45  ;;  %v5566_v48 = vmul.f32 0.5, %v5502_v44  ;;  %v533_v53 = vld [vmem:[%s5450_s4 + $0x30] sm:$0xff]  ;;  %v534_v58 = vld [vmem:[%s5450_s4 + $0x38] sm:$0xff]  ;;  %v535_v62 = vld [vmem:[%s5450_s4 + $0x40] sm:$0xff] }
 0x13e   : > { %3860 = vmatprep.subr.bf16.mxu1 %v3859_v42  ;;  %v640_v20 = vmul.f32 %v620_v11, %v5519_v0  ;;  %v643_v25 = vmul.f32 %v623_v17, %v5523_v2  ;;  %v644_v33 = vmul.f32 %v624_v22, %v5528_v8  ;;  %v559_v34 = vmul.f32 %v5485_v30, %v532_v18  ;;  %v536_v4 = vld [vmem:[%s5450_s4 + $0x48] sm:$0xff]  ;;  %v895_v6 = vld [vmem:[#allocation8 + $0x18] sm:$0xff]  ;;  %v976_v60 = vld [vmem:[#allocation8 + $0x2a0] sm:$0xff] }
 0x13f   : > { %v659_v21 = vmul.f32 %v639_v12, %v5511_v52  ;;  %v681_v23 = vadd.f32 %v661_v15, %v5502_v44  ;;  %v682_v24 = vadd.f32 %v662_v16, %v5505_v45  ;;  %v5556_v38 = vadd.f32 %v5488_v31, %v558_v26  ;;  %v977_v16 = vld [vmem:[#allocation8 + $0x2a8] sm:$0xff]  ;;  %v896_v22 = vld [vmem:[#allocation8 + $0x20] sm:$0xff] }
 0x140   : > { %3990 = vmatpush3.bf16.msra.mxu0 %v3987_v37  ;;  %v660_v27 = vmul.f32 %v640_v20, %v5519_v0  ;;  %v663_v37 = vmul.f32 %v643_v25, %v5523_v2  ;;  %v664_v41 = vmul.f32 %v644_v33, %v5528_v8  ;;  %v5561_v43 = vpack.c.bf16 %v893_v32, %v892_v29  ;;  %v978_v32 = vld [vmem:[#allocation8 + $0x2b0] sm:$0xff]  ;;  %v979_v33 = vld [vmem:[#allocation8 + $0x2b8] sm:$0xff] }
 0x141   : > { %3862 = vmatpush3.bf16.msra.mxu1 %v3859_v42  ;;  %3992 = vmatprep.subr.bf16.mxu0 %v3991_v55  ;;  %v679_v28 = vadd.f32 %v659_v21, %v5511_v52  ;;  %v701_v35 = vmul.f32 0.7978846, %v681_v23  ;;  %v702_v36 = vmul.f32 0.7978846, %v682_v24  ;;  %v586_v42 = vadd.f32 %v5488_v31, %v559_v34  ;;  %v897_v23 = vld [vmem:[#allocation8 + $0x28] sm:$0xff] }
 0x142   : > { %3864 = vmatprep.subr.bf16.mxu1 %v3863_v61  ;;  %v680_v39 = vadd.f32 %v660_v27, %v5519_v0  ;;  %v683_v46 = vadd.f32 %v663_v37, %v5523_v2  ;;  %v625_v47 = vmul.f32 0.044715, %v5556_v38  ;;  %v684_v50 = vadd.f32 %v664_v41, %v5528_v8  ;;  %v899_v41 = vld [vmem:[#allocation8 + $0x38] sm:$0xff] }
 0x143   : > { %v699_v40 = vmul.f32 0.7978846, %v679_v28  ;;  %4469 = vtanh.f32 %v701_v35  ;;  %v626_v56 = vmul.f32 0.044715, %v586_v42  ;;  %v5574_v44 = vmul.f32 0.5, %v5505_v45 }
 0x144   : > { %3994 = vmatpush3.bf16.msra.mxu0 %v3991_v55  ;;  %4471 = vtanh.f32 %v702_v36  ;;  %v700_v49 = vmul.f32 0.7978846, %v680_v39  ;;  %v703_v54 = vmul.f32 0.7978846, %v683_v46  ;;  %v975_v55 = vld [vmem:[#allocation8 + $0x298] sm:$0xff]  ;;  %v645_v57 = vmul.f32 %v625_v47, %v5556_v38 }
 0x145   : > { %3866 = vmatpush3.bf16.msra.mxu1 %v3863_v61  ;;  %3996 = vmatprep.subr.bf16.mxu0 %v3995_v3  ;;  %4473 = vtanh.f32 %v699_v40  ;;  %v5577_v59 = vmul.f32 0.5, %v5511_v52  ;;  %v704_v61 = vmul.f32 0.7978846, %v684_v50  ;;  %v646_v63 = vmul.f32 %v626_v56, %v586_v42  ;;  %v894_v52 = vld [vmem:[#allocation8 + $0x10] sm:$0xff] }
 0x146   : > { %3868 = vmatprep.subr.bf16.mxu1 %v3867_v9  ;;  %4475 = vtanh.f32 %v700_v49  ;;  %v665_v1 = vmul.f32 %v645_v57, %v5556_v38  ;;  %v5585_v5 = vmul.f32 0.5, %v5519_v0  ;;  %v5587_v45 = vpack.c.bf16 %v975_v55, %v974_v51  ;;  %v898_v40 = vld [vmem:[#allocation8 + $0x30] sm:$0xff] }
 0x147   : > { %4477 = vtanh.f32 %v703_v54  ;;  %v561_v7 = vmul.f32 %v5485_v30, %v534_v58  ;;  %v666_v11 = vmul.f32 %v646_v63, %v586_v42  ;;  %v562_v13 = vmul.f32 %v5485_v30, %v535_v62 }
 0x148   : > { %3998 = vmatpush3.bf16.msra.mxu0 %v3995_v3  ;;  %v560_v3 = vmul.f32 %v5485_v30, %v533_v53  ;;  %4479 = vtanh.f32 %v704_v61  ;;  %v685_v12 = vadd.f32 %v665_v1, %v5556_v38  ;;  %v5606_v15 = vmul.f32 0.5, %v5528_v8 }
 0x149   : > { %3870 = vmatpush3.bf16.msra.mxu1 %v3867_v9  ;;  %4000 = vmatprep.subr.bf16.mxu0 %v5530_v10  ;;  %v5609_v17 = vadd.f32 %v5488_v31, %v561_v7  ;;  %v563_v18 = vmul.f32 %v5485_v30, %v536_v4  ;;  %v5613_v20 = vpack.c.bf16 %v895_v6, %v894_v52  ;;  %v5617_v8 = vmul.f32 0.5, %v5556_v38 }
 0x14a   : > { %3872 = vmatprep.subr.bf16.mxu1 %v5535_v14  ;;  %v5599_v0 = vadd.f32 %v5488_v31, %v560_v3  ;;  %v686_v21 = vadd.f32 %v666_v11, %v586_v42  ;;  %v5619_v24 = vmul.f32 0.5, %v586_v42  ;;  %v5623_v26 = vadd.f32 %v5488_v31, %v562_v13 }
 0x14b   : > { %v628_v25 = vmul.f32 0.044715, %v5609_v17  ;;  %v5627_v34 = vadd.f32 %v5488_v31, %v563_v18  ;;  %v5629_v37 = vpack.c.bf16 %v977_v16, %v976_v60  ;;  %v5631_v38 = vpack.c.bf16 %v897_v23, %v896_v22 }
 0x14c   : > { %4002 = vmatpush3.bf16.msra.mxu0 %v5530_v10  ;;  %v603_v10 = vmul.f32 0.5, %v5523_v2  ;;  %v627_v2 = vmul.f32 0.044715, %v5599_v0  ;;  %v706_v28 = vmul.f32 0.7978846, %v686_v21  ;;  %v5638_v55 = vpack.c.bf16 %v979_v33, %v978_v32 }
 0x14d   : > { %3874 = vmatpush3.bf16.msra.mxu1 %v5535_v14  ;;  %4004 = vmatprep.subr.bf16.mxu0 %v5541_v19  ;;  %v705_v14 = vmul.f32 0.7978846, %v685_v12  ;;  %v4470_v27 = vpop.eup %4469  ;;  %v648_v39 = vmul.f32 %v628_v25, %v5609_v17  ;;  %v629_v49 = vmul.f32 0.044715, %v5623_v26  ;;  %v5641_v61 = vpack.c.bf16 %v899_v41, %v898_v40 }
 0x14e   : > { %3876 = vmatprep.subr.bf16.mxu1 %v5561_v43  ;;  %v647_v29 = vmul.f32 %v627_v2, %v5599_v0  ;;  %v4472_v35 = vpop.eup %4471  ;;  %v741_v36 = vadd.f32 1.0, %v4470_v27  ;;  %v630_v62 = vmul.f32 0.044715, %v5627_v34 }
 0x14f   : > { %4481 = vtanh.f32 %v705_v14  ;;  %v4474_v42 = vpop.eup %4473  ;;  %v742_v46 = vadd.f32 1.0, %v4472_v35  ;;  %v668_v54 = vmul.f32 %v648_v39, %v5609_v17  ;;  %v649_v11 = vmul.f32 %v629_v49, %v5623_v26 }
 0x150   : > { %4483 = vtanh.f32 %v706_v28  ;;  %v667_v47 = vmul.f32 %v647_v29, %v5599_v0  ;;  %v4476_v50 = vpop.eup %4475  ;;  %v761_v51 = vmul.f32 %v741_v36, %v5566_v48  ;;  %v739_v53 = vadd.f32 1.0, %v4474_v42 }
 0x151   : > { %v4478_v56 = vpop.eup %4477  ;;  %v762_v57 = vmul.f32 %v742_v46, %v5574_v44  ;;  %v740_v58 = vadd.f32 1.0, %v4476_v50  ;;  %v688_v60 = vadd.f32 %v668_v54, %v5609_v17 }
 0x152   : > { %v4480_v63 = vpop.eup %4479  ;;  %v5644_v1 = vrot.slane %v761_v51, 7  ;;  %v759_v3 = vmul.f32 %v739_v53, %v5577_v59  ;;  %v743_v4 = vadd.f32 1.0, %v4478_v56  ;;  %v687_v48 = vadd.f32 %v667_v47, %v5599_v0  ;;  %v537_v53 = vld [vmem:[%s5450_s4 + $0x50] sm:$0xff] }
 0x153   : > { %v816_v52 = vrot.slane %v762_v57, 7  ;;  %v760_v6 = vmul.f32 %v740_v58, %v5585_v5  ;;  %v744_v7 = vadd.f32 1.0, %v4480_v63  ;;  %v708_v40 = vmul.f32 0.7978846, %v688_v60 }
 0x154   : > { %v5652_v44 = vsel %vm811_vm0, 0.0, %v5644_v1  ;;  %v783_v12 = vsel %vm5593_vm1, 0.0, %v759_v3  ;;  %v763_v13 = vmul.f32 %v743_v4, %v603_v10  ;;  %v707_v9 = vmul.f32 0.7978846, %v687_v48 }
 0x155   : > { %v5659_v59 = vsel %vm811_vm0, %v5644_v1, %v816_v52  ;;  %v1058_v16 = vrot.slane %v5652_v44, 1  ;;  %v784_v5 = vsel %vm5593_vm1, 0.0, %v760_v6  ;;  %v5664_v18 = vrot.slane %v783_v12, 7  ;;  %v538_v12 = vld [vmem:[%s5450_s4 + $0x58] sm:$0xff] }
 0x156   : > { %v1059_v21 = vrot.slane %v5659_v59, 1  ;;  %v813_v14 = vrot.slane %v784_v5, 7  ;;  %v5668_v22 = vsel %vm811_vm0, %v816_v52, 0.0  ;;  %v764_v10 = vmul.f32 %v744_v7, %v5606_v15  ;;  %v981_v7 = vld [vmem:[#allocation8 + $0x2c8] sm:$0xff] }
 0x157   : > { %v5673_v2 = vsel %vm811_vm0, 0.0, %v5664_v18  ;;  %v1061_v25 = vrot.slane %v5668_v22, 1  ;;  %v5676_v27 = vrot.slane %v763_v13, 7  ;;  %4485 = vtanh.f32 %v707_v9  ;;  %v901_v9 = vld [vmem:[#allocation8 + $0x48] sm:$0xff] }
 0x158   : > { %v1060_v28 = vsel %vm1052_vm2, %v1058_v16, %v1059_v21  ;;  %v5681_v29 = vsel %vm811_vm0, %v5664_v18, %v813_v14  ;;  %v1053_v32 = vrot.slane %v5673_v2, 1  ;;  %v5685_v15 = vsel %vm811_vm0, %v813_v14, 0.0 }
 0x159   : > { %v4482_v23 = vpop.eup %4481  ;;  %3595 = vmatprep.mubr.f32.mxu0 %v1060_v28  ;;  %v1054_v35 = vrot.slane %v5681_v29, 1  ;;  %v1062_v36 = vsel %vm1052_vm2, %v1059_v21, %v1061_v25  ;;  %v1056_v39 = vrot.slane %v5685_v15, 1  ;;  %v819_v41 = vrot.slane %v764_v10, 7  ;;  %v900_v10 = vld [vmem:[#allocation8 + $0x40] sm:$0xff] }
 0x15a   : > { %v4484_v33 = vpop.eup %4483  ;;  %3596 = vmatmul.mubr.f32.vlgmr.msra.gmra.mrb[0].mxu0 %v1062_v36  ;;  %v5692_v42 = vsel %vm811_vm0, 0.0, %v5676_v27  ;;  %v745_v46 = vadd.f32 1.0, %v4482_v23  ;;  %4487 = vtanh.f32 %v708_v40  ;;  %v650_v3 = vmul.f32 %v630_v62, %v5627_v34  ;;  %v980_v62 = vld [vmem:[#allocation8 + $0x2c0] sm:$0xff] }
 0x15b   : > { %v746_v47 = vadd.f32 1.0, %v4484_v33  ;;  %v1055_v49 = vsel %vm1052_vm2, %v1053_v32, %v1054_v35  ;;  %4006 = vmatpush3.bf16.msra.mxu0 %v5541_v19  ;;  %v1057_v50 = vsel %vm1052_vm2, %v1054_v35, %v1056_v39  ;;  %v1063_v51 = vrot.slane %v5692_v42, 1  ;;  %v539_v33 = vld [vmem:[%s5450_s4 + $0x60] sm:$0xff]  ;;  %v540_v35 = vld [vmem:[%s5450_s4 + $0x68] sm:$0xff] }
 0x15c   : > { %3371 = vmatprep.mubr.f32.mxu1 %v1055_v49  ;;  %v5701_v54 = vsel %vm811_vm0, %v5676_v27, %v819_v41  ;;  %4008 = vmatprep.subr.bf16.mxu0 %v5587_v45  ;;  %v5705_v56 = vsel %vm811_vm0, %v819_v41, 0.0  ;;  %v765_v57 = vmul.f32 %v745_v46, %v5617_v8  ;;  %v669_v52 = vmul.f32 %v649_v11, %v5623_v26  ;;  %v982_v41 = vld [vmem:[#allocation8 + $0x2d0] sm:$0xff]  ;;  %v983_v46 = vld [vmem:[#allocation8 + $0x2d8] sm:$0xff] }
 0x15d   : > { %v766_v19 = vmul.f32 %v746_v47, %v5619_v24  ;;  %3372 = vmatmul.mubr.f32.vlgmr.msra.gmra.mrb[0].mxu1 %v1057_v50  ;;  %v1064_v58 = vrot.slane %v5701_v54, 1  ;;  %v1066_v63 = vrot.slane %v5705_v56, 1  ;;  %v564_v8 = vmul.f32 %v5485_v30, %v537_v53 }
 0x15e   : > { %3878 = vmatpush3.bf16.msra.mxu1 %v5561_v43  ;;  %3374 = vmatprep.mubr.f32.mxu1 %v1060_v28  ;;  %v5713_v4 = vrot.slane %v765_v57, 7  ;;  %v670_v43 = vmul.f32 %v650_v3, %v5627_v34  ;;  %v689_v60 = vadd.f32 %v669_v52, %v5623_v26  ;;  %v5748_v25 = vpack.c.bf16 %v981_v7, %v980_v62  ;;  %v985_v52 = vld [vmem:[#allocation8 + $0x2e8] sm:$0xff] }
 0x15f   : > { %v822_v48 = vrot.slane %v766_v19, 7  ;;  %v5718_v24 = vsel %vm1052_vm2, %v1063_v51, %v1064_v58  ;;  %v5721_v6 = vsel %vm1052_vm2, %v1064_v58, %v1066_v63  ;;  %4010 = vmatpush3.bf16.msra.mxu0 %v5587_v45  ;;  %3880 = vmatprep.subr.bf16.mxu1 %v5613_v20  ;;  %v565_v28 = vmul.f32 %v5485_v30, %v538_v12  ;;  %v903_v51 = vld [vmem:[#allocation8 + $0x58] sm:$0xff]  ;;  %v984_v19 = vld [vmem:[#allocation8 + $0x2e0] sm:$0xff] }
 0x160   : > { %3598 = vmatprep.mubr.f32.mxu0 %v5718_v24  ;;  %v5734_v13 = vsel %vm811_vm0, 0.0, %v5713_v4  ;;  %4012 = vmatprep.subr.bf16.mxu0 %v5629_v37  ;;  %v690_v14 = vadd.f32 %v670_v43, %v5627_v34  ;;  %v709_v23 = vmul.f32 0.7978846, %v689_v60  ;;  %v5752_v32 = vadd.f32 %v5488_v31, %v564_v8  ;;  %v904_v8 = vld [vmem:[#allocation8 + $0x60] sm:$0xff]  ;;  %v905_v43 = vld [vmem:[#allocation8 + $0x68] sm:$0xff] }
 0x161   : > { %v5730_v11 = vsel %vm811_vm0, %v5713_v4, %v822_v48  ;;  %v5738_v45 = vsel %vm811_vm0, %v822_v48, 0.0  ;;  %3599 = vmatmul.mubr.f32.gmra.mrb[2].mxu0 %v5721_v6  ;;  %3375 = vmatmul.mubr.f32.gmra.mrb[2].mxu1 %v1062_v36  ;;  %v1068_v16 = vrot.slane %v5734_v13, 1  ;;  %v608_v47 = vmul.f32 0.5, %v5609_v17  ;;  %v4486_v53 = vpop.eup %4485 }
 0x162   : > { %v1069_v5 = vrot.slane %v5730_v11, 1  ;;  %v1071_v21 = vrot.slane %v5738_v45, 1  ;;  %3882 = vmatpush3.bf16.msra.mxu1 %v5613_v20  ;;  %3377 = vmatprep.mubr.f32.mxu1 %v5718_v24  ;;  %v607_v20 = vmul.f32 0.5, %v5599_v0  ;;  %v710_v40 = vmul.f32 0.7978846, %v690_v14  ;;  %v541_v14 = vld [vmem:[%s5450_s4 + $0x70] sm:$0xff] }
 0x163   : > { %4014 = vmatpush3.bf16.msra.mxu0 %v5629_v37  ;;  %3884 = vmatprep.subr.bf16.mxu1 %v5631_v38  ;;  %4489 = vtanh.f32 %v709_v23  ;;  %v5769_v49 = vadd.f32 %v5488_v31, %v565_v28  ;;  %v631_v50 = vmul.f32 0.044715, %v5752_v32  ;;  %v902_v37 = vld [vmem:[#allocation8 + $0x50] sm:$0xff]  ;;  %v3891_v0 = vpack.c.bf16 %v901_v9, %v900_v10 }
 0x164   : > { %v5757_v36 = vsel %vm1052_vm2, %v1068_v16, %v1069_v5  ;;  %v5760_v39 = vsel %vm1052_vm2, %v1069_v5, %v1071_v21  ;;  %4016 = vmatprep.subr.bf16.mxu0 %v5638_v55  ;;  %4491 = vtanh.f32 %v710_v40  ;;  %v566_v57 = vmul.f32 %v5485_v30, %v539_v33  ;;  %v4488_v62 = vpop.eup %4487  ;;  %v542_v40 = vld [vmem:[%s5450_s4 + $0x78] sm:$0xff]  ;;  %s6635_s4 = sld [smem:[#allocation53_spill]] }
 0x165   : > { %3601 = vmatprep.mubr.f32.mxu0 %v5757_v36  ;;  %3378 = vmatmul.mubr.f32.gmra.mrb[4].mxu1 %v5721_v6  ;;  %v567_v17 = vmul.f32 %v5485_v30, %v540_v35  ;;  %v747_v58 = vadd.f32 1.0, %v4486_v53  ;;  %v632_v63 = vmul.f32 0.044715, %v5769_v49  ;;  %v651_v3 = vmul.f32 %v631_v50, %v5752_v32 }
 0x166   : > { %3602 = vmatmul.mubr.f32.gmra.mrb[4].mxu0 %v5760_v39  ;;  %3886 = vmatpush3.bf16.msra.mxu1 %v5631_v38  ;;  %v4023_v48 = vpack.c.bf16 %v983_v46, %v982_v41  ;;  %v609_v7 = vmul.f32 0.5, %v5623_v26  ;;  %v5783_v38 = vpack.c.bf16 %v903_v51, %v902_v37  ;;  %v5786_v12 = vadd.f32 %v5488_v31, %v566_v57 }
 0x167   : > { %3380 = vmatprep.mubr.f32.mxu1 %v5757_v36  ;;  %4018 = vmatpush3.bf16.msra.mxu0 %v5638_v55  ;;  %v5789_v60 = vadd.f32 %v5488_v31, %v567_v17  ;;  %v748_v16 = vadd.f32 1.0, %v4488_v62  ;;  %v767_v5 = vmul.f32 %v747_v58, %v607_v20  ;;  %v652_v21 = vmul.f32 %v632_v63, %v5769_v49 }
 0x168   : > { %3888 = vmatprep.subr.bf16.mxu1 %v5641_v61  ;;  %4020 = vmatprep.subr.bf16.mxu0 %v5748_v25  ;;  %v671_v55 = vmul.f32 %v651_v3, %v5752_v32  ;;  %v633_v26 = vmul.f32 0.044715, %v5786_v12  ;;  %v4027_v23 = vpack.c.bf16 %v985_v52, %v984_v19  ;;  %v5798_v9 = vpack.c.bf16 %v905_v43, %v904_v8 }
 0x169   : > { %3381 = vmatmul.mubr.f32.gmra.mrb[6].mxu1 %v5760_v39  ;;  %v634_v10 = vmul.f32 0.044715, %v5789_v60  ;;  %v768_v28 = vmul.f32 %v748_v16, %v608_v47  ;;  %v5800_v33 = vrot.slane %v767_v5, 7  ;;  %v672_v35 = vmul.f32 %v652_v21, %v5769_v49  ;;  %v986_v21 = vld [vmem:[#allocation8 + $0x2f0] sm:$0xff] }
 0x16a   : > { %3890 = vmatpush3.bf16.msra.mxu1 %v5641_v61  ;;  %v691_v20 = vadd.f32 %v671_v55, %v5752_v32  ;;  %v610_v41 = vmul.f32 0.5, %v5627_v34  ;;  %v653_v46 = vmul.f32 %v633_v26, %v5786_v12  ;;  %v568_v47 = vmul.f32 %v5485_v30, %v541_v14  ;;  %v987_v55 = vld [vmem:[#allocation8 + $0x2f8] sm:$0xff]  ;;  %s6356_s23 = scalar_lea.hbm %s6635_s4, %s3044_s13 }
 0x16b   : > { %4022 = vmatpush3.bf16.msra.mxu0 %v5748_v25  ;;  %3892 = vmatprep.subr.bf16.mxu1 %v3891_v0  ;;  %v654_v50 = vmul.f32 %v634_v10, %v5789_v60  ;;  %v825_v37 = vrot.slane %v768_v28, 7  ;;  %v5813_v61 = vsel %vm811_vm0, 0.0, %v5800_v33  ;;  %v692_v51 = vadd.f32 %v672_v35, %v5769_v49 }
 0x16c   : > { %v711_v53 = vmul.f32 0.7978846, %v691_v20  ;;  %4024 = vmatprep.subr.bf16.mxu0 %v4023_v48  ;;  %v1073_v34 = vrot.slane %v5813_v61, 1  ;;  %v673_v25 = vmul.f32 %v653_v46, %v5786_v12  ;;  %v569_v17 = vmul.f32 %v5485_v30, %v542_v40  ;;  %v906_v40 = vld [vmem:[#allocation8 + $0x70] sm:$0xff]  ;;  %v907_v46 = vld [vmem:[#allocation8 + $0x78] sm:$0xff] }
 0x16d   : > { %v674_v57 = vmul.f32 %v654_v50, %v5789_v60  ;;  %v4490_v19 = vpop.eup %4489  ;;  %v5822_v58 = vsel %vm811_vm0, %v5800_v33, %v825_v37  ;;  %v5825_v63 = vsel %vm811_vm0, %v825_v37, 0.0  ;;  %v712_v3 = vmul.f32 0.7978846, %v692_v51  ;;  %v989_v51 = vld [vmem:[#allocation8 + $0x308] sm:$0xff] }
 0x16e   : > { %3894 = vmatpush3.bf16.msra.mxu1 %v3891_v0  ;;  %4493 = vtanh.f32 %v711_v53  ;;  %v4492_v52 = vpop.eup %4491  ;;  %v1074_v8 = vrot.slane %v5822_v58, 1  ;;  %v1076_v43 = vrot.slane %v5825_v63, 1  ;;  %v749_v62 = vadd.f32 1.0, %v4490_v19 }
 0x16f   : > { %4026 = vmatpush3.bf16.msra.mxu0 %v4023_v48  ;;  %3896 = vmatprep.subr.bf16.mxu1 %v5783_v38  ;;  %v693_v30 = vadd.f32 %v673_v25, %v5786_v12  ;;  %v750_v16 = vadd.f32 1.0, %v4492_v52  ;;  %4495 = vtanh.f32 %v712_v3  ;;  %v694_v5 = vadd.f32 %v674_v57, %v5789_v60 }
 0x170   : > { %4028 = vmatprep.subr.bf16.mxu0 %v4027_v23  ;;  %v5833_v0 = vadd.f32 %v5488_v31, %v568_v47  ;;  %v5836_v14 = vsel %vm1052_vm2, %v1073_v34, %v1074_v8  ;;  %v5839_v26 = vsel %vm1052_vm2, %v1074_v8, %v1076_v43  ;;  %v769_v48 = vmul.f32 %v749_v62, %v609_v7 }
 0x171   : > { %v713_v10 = vmul.f32 0.7978846, %v693_v30  ;;  %3604 = vmatprep.mubr.f32.mxu0 %v5836_v14  ;;  %v770_v28 = vmul.f32 %v750_v16, %v610_v41  ;;  %3383 = vmatprep.mubr.f32.mxu1 %v5836_v14  ;;  %v714_v35 = vmul.f32 0.7978846, %v694_v5  ;;  %v5844_v20 = vadd.f32 %v5488_v31, %v569_v17  ;;  %v988_v41 = vld [vmem:[#allocation8 + $0x300] sm:$0xff] }
 0x172   : > { %3605 = vmatmul.mubr.f32.gmra.mrb[6].mxu0 %v5839_v26  ;;  %v5847_v50 = vrot.slane %v769_v48, 7  ;;  %3384 = vmatmul.mubr.f32.gmra.mrb[8].mxu1 %v5839_v26  ;;  %v635_v7 = vmul.f32 0.044715, %v5833_v0  ;;  %v4031_v47 = vpack.c.bf16 %v987_v55, %v986_v21  ;;  %v611_v34 = vmul.f32 0.5, %v5752_v32  ;;  %v924_v17 = vld [vmem:[#allocation8 + $0x100] sm:$0xff] }
 0x173   : > { %4497 = vtanh.f32 %v713_v10  ;;  %v828_v37 = vrot.slane %v770_v28, 7  ;;  %3898 = vmatpush3.bf16.msra.mxu1 %v5783_v38  ;;  %4030 = vmatpush3.bf16.msra.mxu0 %v4027_v23  ;;  %v636_v31 = vmul.f32 0.044715, %v5844_v20  ;;  %v3903_v57 = vpack.c.bf16 %v907_v46, %v906_v40  ;;  %v925_v38 = vld [vmem:[#allocation8 + $0x108] sm:$0xff] }
 0x174   : > { %4499 = vtanh.f32 %v714_v35  ;;  %v5855_v53 = vsel %vm811_vm0, 0.0, %v5847_v50  ;;  %3900 = vmatprep.subr.bf16.mxu1 %v5798_v9  ;;  %v655_v25 = vmul.f32 %v635_v7, %v5833_v0  ;;  %4032 = vmatprep.subr.bf16.mxu0 %v4031_v47  ;;  %v5872_v62 = vpack.c.bf16 %v989_v51, %v988_v41 }
 0x175   : > { %v5862_v23 = vsel %vm811_vm0, %v5847_v50, %v828_v37  ;;  %v1078_v19 = vrot.slane %v5855_v53, 1  ;;  %v5866_v3 = vsel %vm811_vm0, %v828_v37, 0.0  ;;  %v656_v52 = vmul.f32 %v636_v31, %v5844_v20 }
 0x176   : > { %v1079_v32 = vrot.slane %v5862_v23, 1  ;;  %v1081_v8 = vrot.slane %v5866_v3, 1  ;;  %v675_v43 = vmul.f32 %v655_v25, %v5833_v0  ;;  %v612_v16 = vmul.f32 0.5, %v5769_v49 }
 0x177   : > { %3902 = vmatpush3.bf16.msra.mxu1 %v5798_v9  ;;  %v676_v5 = vmul.f32 %v656_v52, %v5844_v20  ;;  %4034 = vmatpush3.bf16.msra.mxu0 %v4031_v47  ;;  %v5877_v21 = vpack.c.bf16 %v925_v38, %v924_v17  ;;  %v613_v7 = vmul.f32 0.5, %v5786_v12  ;;  %v614_v51 = vmul.f32 0.5, %v5789_v60 }
 0x178   : > { %v4494_v30 = vpop.eup %4493  ;;  %v5880_v55 = vsel %vm1052_vm2, %v1078_v19, %v1079_v32  ;;  %v5883_v48 = vsel %vm1052_vm2, %v1079_v32, %v1081_v8  ;;  %v695_v28 = vadd.f32 %v675_v43, %v5833_v0  ;;  %3904 = vmatprep.subr.bf16.mxu1 %v3903_v57  ;;  %4036 = vmatprep.subr.bf16.mxu0 %v5872_v62 }
 0x179   : > { %6615 = vst [vmem:[#allocation40_spill] sm:$0xff] %v5883_v48  ;;  %v751_v10 = vadd.f32 1.0, %v4494_v30  ;;  %v4496_v49 = vpop.eup %4495  ;;  %3607 = vmatprep.mubr.f32.mxu0 %v5880_v55  ;;  %3386 = vmatprep.mubr.f32.mxu1 %v5880_v55  ;;  %v696_v9 = vadd.f32 %v676_v5, %v5844_v20 }
 0x17a   : > { %3608 = vmatmul.mubr.f32.gmra.mrb[8].mxu0 %v5883_v48  ;;  %v752_v35 = vadd.f32 1.0, %v4496_v49  ;;  %3387 = vmatmul.mubr.f32.gmra.mrb[10].mxu1 %v5883_v48  ;;  %v715_v46 = vmul.f32 0.7978846, %v695_v28 }
 0x17b   : > { %v771_v40 = vmul.f32 %v751_v10, %v611_v34  ;;  %v716_v47 = vmul.f32 0.7978846, %v696_v9  ;;  %3906 = vmatpush3.bf16.msra.mxu1 %v3903_v57 }
 0x17c   : > { %v772_v31 = vmul.f32 %v752_v35, %v612_v16  ;;  %4501 = vtanh.f32 %v715_v46  ;;  %3908 = vmatprep.subr.bf16.mxu1 %v5877_v21 }
 0x17d   : > { %v4498_v37 = vpop.eup %4497  ;;  %v5893_v41 = vrot.slane %v771_v40, 7  ;;  %4503 = vtanh.f32 %v716_v47 }
 0x17e   : > { %v4500_v25 = vpop.eup %4499  ;;  %v753_v17 = vadd.f32 1.0, %v4498_v37  ;;  %v831_v34 = vrot.slane %v772_v31, 7  ;;  %v616_v37 = vmul.f32 0.5, %v5844_v20  ;;  %v927_v20 = vld [vmem:[#allocation8 + $0x118] sm:$0xff] }
 0x17f   : > { %v5899_v38 = vsel %vm811_vm0, 0.0, %v5893_v41  ;;  %v754_v12 = vadd.f32 1.0, %v4500_v25 }
 0x180   : > { %v1083_v57 = vrot.slane %v5899_v38, 1  ;;  %v773_v19 = vmul.f32 %v753_v17, %v613_v7  ;;  %v5904_v52 = vsel %vm811_vm0, %v5893_v41, %v831_v34  ;;  %v5907_v60 = vsel %vm811_vm0, %v831_v34, 0.0 }
 0x181   : > { %v774_v32 = vmul.f32 %v754_v12, %v614_v51  ;;  %v1084_v8 = vrot.slane %v5904_v52, 1  ;;  %v1086_v43 = vrot.slane %v5907_v60, 1  ;;  %v615_v7 = vmul.f32 0.5, %v5833_v0  ;;  %v926_v0 = vld [vmem:[#allocation8 + $0x110] sm:$0xff] }
 0x182   : > { %v5911_v30 = vrot.slane %v773_v19, 7 }
 0x183   : > { %v834_v16 = vrot.slane %v774_v32, 7  ;;  %v5914_v5 = vsel %vm1052_vm2, %v1083_v57, %v1084_v8  ;;  %v5917_v10 = vsel %vm1052_vm2, %v1084_v8, %v1086_v43  ;;  %v3911_v8 = vpack.c.bf16 %v927_v20, %v926_v0  ;;  %v930_v20 = vld [vmem:[#allocation8 + $0x130] sm:$0xff] }
 0x184   : > { %6616 = vst [vmem:[#allocation41_spill] sm:$0xff] %v5914_v5  ;;  %6617 = vst [vmem:[#allocation42_spill] sm:$0xff] %v5917_v10  ;;  %v5921_v28 = vsel %vm811_vm0, 0.0, %v5911_v30  ;;  %3610 = vmatprep.mubr.f32.mxu0 %v5914_v5  ;;  %3389 = vmatprep.mubr.f32.mxu1 %v5914_v5  ;;  %v1403_v43 = vrot.slane %v5685_v15, 2 }
 0x185   : > { %v5926_v49 = vsel %vm811_vm0, %v5911_v30, %v834_v16  ;;  %v1088_v9 = vrot.slane %v5921_v28, 1  ;;  %v5931_v35 = vsel %vm811_vm0, %v834_v16, 0.0  ;;  %3611 = vmatmul.mubr.f32.gmra.mrb[10].mxu0 %v5917_v10  ;;  %3390 = vmatmul.mubr.f32.gmra.mrb[12].mxu1 %v5917_v10 }
 0x186   : > { %v1089_v40 = vrot.slane %v5926_v49, 1  ;;  %v1091_v46 = vrot.slane %v5931_v35, 1  ;;  %v4502_v47 = vpop.eup %4501 }
 0x187   : > { %v4504_v31 = vpop.eup %4503  ;;  %v755_v17 = vadd.f32 1.0, %v4502_v47  ;;  %v929_v47 = vld [vmem:[#allocation8 + $0x128] sm:$0xff] }
 0x188   : > { %v5940_v51 = vsel %vm1052_vm2, %v1088_v9, %v1089_v40  ;;  %v5943_v25 = vsel %vm1052_vm2, %v1089_v40, %v1091_v46  ;;  %v756_v12 = vadd.f32 1.0, %v4504_v31  ;;  %v1405_v9 = vrot.slane %v5652_v44, 2 }
 0x189   : > { %6618 = vst [vmem:[#allocation43_spill] sm:$0xff] %v5940_v51  ;;  %6619 = vst [vmem:[#allocation44_spill] sm:$0xff] %v5943_v25  ;;  %3613 = vmatprep.mubr.f32.mxu0 %v5940_v51  ;;  %3392 = vmatprep.mubr.f32.mxu1 %v5940_v51  ;;  %v775_v57 = vmul.f32 %v755_v17, %v615_v7  ;;  %v1406_v46 = vrot.slane %v5659_v59, 2  ;;  %v928_v7 = vld [vmem:[#allocation8 + $0x120] sm:$0xff] }
 0x18a   : > { %3614 = vmatmul.mubr.f32.gmra.mrb[12].mxu0 %v5943_v25  ;;  %3393 = vmatmul.mubr.f32.gmra.mrb[14].mxu1 %v5943_v25  ;;  %v776_v19 = vmul.f32 %v756_v12, %v616_v37  ;;  %v1401_v37 = vrot.slane %v5681_v29, 2  ;;  %v1410_v12 = vrot.slane %v5692_v42, 2  ;;  %v3915_v0 = vpack.c.bf16 %v929_v47, %v928_v7  ;;  %v990_v7 = vld [vmem:[#allocation8 + $0x310] sm:$0xff]  ;;  %v991_v47 = vld [vmem:[#allocation8 + $0x318] sm:$0xff] }
 0x18b   : > { %3427 = vmatprep.mubr.msk.f32.mxu1 %vm5946_vm3, %v5664_v18  ;;  %v5957_v32 = vrot.slane %v775_v57, 7  ;;  %v1400_v18 = vrot.slane %v5673_v2, 2  ;;  %v1408_v2 = vrot.slane %v5668_v22, 2  ;;  %v931_v57 = vld [vmem:[#allocation8 + $0x138] sm:$0xff]  ;;  %v5998_v25 = vsel %vm1399_vm4, %v1405_v9, %v1406_v46 }
 0x18c   : > { %v837_v16 = vrot.slane %v776_v19, 7  ;;  %v1411_v42 = vrot.slane %v5701_v54, 2 }
 0x18d   : > { %v5963_v40 = vsel %vm811_vm0, 0.0, %v5957_v32  ;;  %v5986_v19 = vsel %vm1399_vm4, %v1400_v18, %v1401_v37  ;;  %v6009_v9 = vsel %vm1399_vm4, %v1406_v46, %v1408_v2  ;;  %v1413_v18 = vrot.slane %v5705_v56, 2  ;;  %v544_v46 = vld [vmem:[%s441_s8 + $0x8] sm:$0xff]  ;;  %v992_v2 = vld [vmem:[#allocation8 + $0x320] sm:$0xff] }
 0x18e   : > { %3428 = vmatmul.mubr.f32.vlgmr.msra.gmra.mrb[0].mxu1 %v5681_v29  ;;  %v5971_v15 = vsel %vm811_vm0, %v5957_v32, %v837_v16  ;;  %v1780_v44 = vrot.slane %v5963_v40, 1  ;;  %v5975_v31 = vsel %vm811_vm0, %v837_v16, 0.0  ;;  %v993_v56 = vld [vmem:[#allocation8 + $0x328] sm:$0xff] }
 0x18f   : > { %3910 = vmatpush3.bf16.msra.mxu1 %v5877_v21  ;;  %3430 = vmatprep.mubr.msk.f32.mxu1 %vm5946_vm3, %v5644_v1  ;;  %v1781_v29 = vrot.slane %v5971_v15, 1  ;;  %v1783_v17 = vrot.slane %v5975_v31, 1  ;;  %v5989_v21 = vsel %vm1399_vm4, %v1401_v37, %v1403_v43  ;;  %v3919_v43 = vpack.c.bf16 %v931_v57, %v930_v20  ;;  %v932_v37 = vld [vmem:[#allocation8 + $0x140] sm:$0xff] }
 0x190   : > { %3912 = vmatprep.subr.bf16.mxu1 %v3911_v8  ;;  %v1416_v20 = vrot.slane %v5730_v11, 2  ;;  %v4509_v57 = vld [vmem:[%s5469_s9] ss:$0 sm:$0xff]  ;;  %s4695_s9 = scalar_lea.vmem %s4694_s30, 4096 }
 0x191   : > { %v5992_v16 = vsel %vm1052_vm2, %v1780_v44, %v1781_v29  ;;  %v5995_v22 = vsel %vm1052_vm2, %v1781_v29, %v1783_v17  ;;  %v933_v44 = vld [vmem:[#allocation8 + $0x148] sm:$0xff]  ;;  %v6015_v29 = vsel %vm1399_vm4, %v1410_v12, %v1411_v42  ;;  %v4039_v17 = vpack.c.bf16 %v991_v47, %v990_v7 }
 0x192   : > { %6622 = vst [vmem:[#allocation45_spill] sm:$0xff] %v5992_v16  ;;  %6623 = vst [vmem:[#allocation46_spill] sm:$0xff] %v5995_v22  ;;  %3431 = vmatmul.mubr.f32.gmra.mrb[2].mxu1 %v5659_v59  ;;  %3616 = vmatprep.mubr.f32.mxu0 %v5992_v16  ;;  %v3923_v12 = vpack.c.bf16 %v933_v44, %v932_v37  ;;  %v1418_v47 = vrot.slane %v5738_v45, 2  ;;  %v935_v16 = vld [vmem:[#allocation8 + $0x158] sm:$0xff]  ;;  %v571_v51 = vmul.f32 %v4509_v57, %v544_v46 }
 0x193   : > { %3914 = vmatpush3.bf16.msra.mxu1 %v3911_v8  ;;  %3617 = vmatmul.mubr.f32.gmra.mrb[14].mxu0 %v5995_v22  ;;  %v543_v8 = vld [vmem:[%s441_s8] sm:$0xff]  ;;  %v1415_v22 = vrot.slane %v5734_v13, 2  ;;  %v6030_v13 = vsel %vm1399_vm4, %v1411_v42, %v1413_v18  ;;  %v4043_v37 = vpack.c.bf16 %v993_v56, %v992_v2  ;;  %v1420_v44 = vrot.slane %v5813_v61, 2  ;;  %v995_v42 = vld [vmem:[#allocation8 + $0x338] sm:$0xff]  ;;  %v937_v2 = vld [vmem:[#allocation8 + $0x168] sm:$0xff]  ;;  %s4689_s8 = scalar_lea.vmem %s6358_s1, 2048 }
 0x194   : > { %3433 = vmatprep.mubr.msk.f32.mxu1 %vm5946_vm3, %v5676_v27  ;;  %3651 = vmatprep.mubr.f32.mxu0 %v5998_v25  ;;  %v570_v7 = vmul.f32 %v4509_v57, %v543_v8  ;;  %v994_v8 = vld [vmem:[#allocation8 + $0x330] sm:$0xff]  ;;  %v6048_v61 = vsel %vm1399_vm4, %v1416_v20, %v1418_v47  ;;  %v1423_v46 = vrot.slane %v5825_v63, 2  ;;  %v1428_v47 = vrot.slane %v5866_v3, 2  ;;  %p4690_p7 = scmp.ne.s32.totalorder %s6358_s1, %s4689_s8  ;;  %p4697_p3 = scmp.lt.s32.totalorder %s4695_s9, %s4689_s8 }
 0x195   : > { %3916 = vmatprep.subr.bf16.mxu1 %v3915_v0  ;;  %v6034_v10 = vsel %vm1399_vm4, %v1415_v22, %v1416_v20  ;;  %v4510_v22 = vld [vmem:[%s5475_s15] ss:$0 sm:$0xff]  ;;  %v997_v20 = vld [vmem:[#allocation8 + $0x348] sm:$0xff] }
 0x196   : > { %3434 = vmatmul.mubr.f32.gmra.mrb[4].mxu1 %v5701_v54  ;;  %v6044_v18 = vadd.f32 %v4510_v22, %v570_v7  ;;  %v6051_v56 = vadd.f32 %v4510_v22, %v571_v51  ;;  %v1425_v7 = vrot.slane %v5855_v53, 2  ;;  %p4691_p10 = pnand %p4690_p7, %p6636_p1  ;;  %p4698_p13 = por %p4697_p3, %p4696_p11 }
 0x197   : > { %3918 = vmatpush3.bf16.msra.mxu1 %v3915_v0  ;;  %3436 = vmatprep.mubr.msk.f32.mxu1 %vm5946_vm3, %v5713_v4  ;;  %v934_v0 = vld [vmem:[#allocation8 + $0x150] sm:$0xff] }
 0x198   : > { %3652 = vmatmul.mubr.f32.vlgmr.msra.gmra.mrb[0].mxu0 %v6009_v9  ;;  %3920 = vmatprep.subr.bf16.mxu1 %v3919_v43  ;;  %v3927_v45 = vpack.c.bf16 %v935_v16, %v934_v0  ;;  %v4047_v16 = vpack.c.bf16 %v995_v42, %v994_v8  ;;  %v996_v0 = vld [vmem:[#allocation8 + $0x340] sm:$0xff]  ;;  %v637_v51 = vmul.f32 0.044715, %v6044_v18  ;;  %v638_v8 = vmul.f32 0.044715, %v6051_v56  ;;  %p4692_p6 = pneg %p4691_p10 }
 0x199   : > { %4038 = vmatpush3.bf16.msra.mxu0 %v5872_v62  ;;  %3654 = vmatprep.mubr.f32.mxu0 %v6015_v29  ;;  %v1421_v62 = vrot.slane %v5822_v58, 2  ;;  %v4051_v22 = vpack.c.bf16 %v997_v20, %v996_v0  ;;  %v940_v0 = vld [vmem:[#allocation8 + $0x180] sm:$0xff]  ;;  %v6631_v34 = vld [vmem:[#allocation45_spill] sm:$0xff] }
 0x19a   : > { %4040 = vmatprep.subr.bf16.mxu0 %v4039_v17  ;;  %3437 = vmatmul.mubr.f32.gmra.mrb[6].mxu1 %v5730_v11  ;;  %v658_v20 = vmul.f32 %v638_v8, %v6051_v56  ;;  %v942_v8 = vld [vmem:[#allocation8 + $0x190] sm:$0xff]  ;;  %p4699_p9 = pnand %p4698_p13, %p4692_p6 }
 0x19b   : > { %3922 = vmatpush3.bf16.msra.mxu1 %v3919_v43  ;;  %3439 = vmatprep.mubr.msk.f32.mxu1 %vm5946_vm3, %v5800_v33  ;;  %v936_v43 = vld [vmem:[#allocation8 + $0x160] sm:$0xff]  ;;  %v6054_v57 = vsel %vm1399_vm4, %v1420_v44, %v1421_v62  ;;  %v6066_v53 = vsel %vm1399_vm4, %v1421_v62, %v1423_v46  ;;  %v938_v44 = vld [vmem:[#allocation8 + $0x170] sm:$0xff]  ;;  %v999_v62 = vld [vmem:[#allocation8 + $0x358] sm:$0xff]  ;;  %v657_v46 = vmul.f32 %v637_v51, %v6044_v18 }
 0x19c   : > { %3655 = vmatmul.mubr.f32.gmra.mrb[2].mxu0 %v6030_v13  ;;  %3924 = vmatprep.subr.bf16.mxu1 %v3923_v12  ;;  %v3931_v63 = vpack.c.bf16 %v937_v2, %v936_v43  ;;  %v1430_v43 = vrot.slane %v5899_v38, 2  ;;  %v998_v2 = vld [vmem:[#allocation8 + $0x350] sm:$0xff]  ;;  %v1000_v51 = vld [vmem:[#allocation8 + $0x360] sm:$0xff] }
 0x19d   : > { %4042 = vmatpush3.bf16.msra.mxu0 %v4039_v17  ;;  %3657 = vmatprep.mubr.f32.mxu0 %v6034_v10  ;;  %v1426_v17 = vrot.slane %v5862_v23, 2  ;;  %v4055_v48 = vpack.c.bf16 %v999_v62, %v998_v2 }
 0x19e   : > { %4044 = vmatprep.subr.bf16.mxu0 %v4043_v37  ;;  %3440 = vmatmul.mubr.f32.gmra.mrb[8].mxu1 %v5822_v58 }
 0x19f   : > { %3926 = vmatpush3.bf16.msra.mxu1 %v3923_v12  ;;  %3442 = vmatprep.mubr.msk.f32.mxu1 %vm5946_vm3, %v5847_v50  ;;  %v939_v12 = vld [vmem:[#allocation8 + $0x178] sm:$0xff]  ;;  %v6071_v42 = vsel %vm1399_vm4, %v1425_v7, %v1426_v17  ;;  %v6083_v38 = vsel %vm1399_vm4, %v1426_v17, %v1428_v47  ;;  %v1433_v7 = vrot.slane %v5907_v60, 2  ;;  %v1001_v17 = vld [vmem:[#allocation8 + $0x368] sm:$0xff]  ;;  %v677_v47 = vmul.f32 %v657_v46, %v6044_v18  ;;  %v1002_v46 = vld [vmem:[#allocation8 + $0x370] sm:$0xff] }
 0x1a0   : > { %3658 = vmatmul.mubr.f32.gmra.mrb[4].mxu0 %v6048_v61  ;;  %3928 = vmatprep.subr.bf16.mxu1 %v3927_v45  ;;  %v3935_v3 = vpack.c.bf16 %v939_v12, %v938_v44  ;;  %v1435_v44 = vrot.slane %v5921_v28, 2  ;;  %v1438_v12 = vrot.slane %v5931_v35, 2  ;;  %v4059_v62 = vpack.c.bf16 %v1001_v17, %v1000_v51  ;;  %v1004_v17 = vld [vmem:[#allocation8 + $0x380] sm:$0xff] }
 0x1a1   : > { %4046 = vmatpush3.bf16.msra.mxu0 %v4043_v37  ;;  %3660 = vmatprep.mubr.f32.mxu0 %v6054_v57  ;;  %v1431_v37 = vrot.slane %v5904_v52, 2 }
 0x1a2   : > { %4048 = vmatprep.subr.bf16.mxu0 %v4047_v16  ;;  %3443 = vmatmul.mubr.f32.gmra.mrb[10].mxu1 %v5862_v23 }
 0x1a3   : > { %3930 = vmatpush3.bf16.msra.mxu1 %v3927_v45  ;;  %3445 = vmatprep.mubr.msk.f32.mxu1 %vm5946_vm3, %v5893_v41  ;;  %v941_v45 = vld [vmem:[#allocation8 + $0x188] sm:$0xff]  ;;  %v6088_v5 = vsel %vm1399_vm4, %v1430_v43, %v1431_v37  ;;  %v6100_v28 = vsel %vm1399_vm4, %v1431_v37, %v1433_v7  ;;  %v678_v43 = vmul.f32 %v658_v20, %v6051_v56  ;;  %v1003_v37 = vld [vmem:[#allocation8 + $0x378] sm:$0xff]  ;;  %v944_v20 = vld [vmem:[#allocation8 + $0x1a0] sm:$0xff] }
 0x1a4   : > { %3661 = vmatmul.mubr.f32.gmra.mrb[6].mxu0 %v6066_v53  ;;  %3932 = vmatprep.subr.bf16.mxu1 %v3931_v63  ;;  %v3939_v60 = vpack.c.bf16 %v941_v45, %v940_v0  ;;  %v1948_v0 = vrot.slane %v5963_v40, 2  ;;  %v697_v7 = vadd.f32 %v677_v47, %v6044_v18  ;;  %v1951_v45 = vrot.slane %v5975_v31, 2 }
 0x1a5   : > { %4050 = vmatpush3.bf16.msra.mxu0 %v4047_v16  ;;  %3663 = vmatprep.mubr.f32.mxu0 %v6071_v42  ;;  %v1436_v16 = vrot.slane %v5926_v49, 2  ;;  %v4063_v51 = vpack.c.bf16 %v1003_v37, %v1002_v46  ;;  %v1009_v46 = vld [vmem:[#allocation8 + $0x3a8] sm:$0xff] }
 0x1a6   : > { %4052 = vmatprep.subr.bf16.mxu0 %v4051_v22  ;;  %3446 = vmatmul.mubr.f32.gmra.mrb[12].mxu1 %v5904_v52 }
 0x1a7   : > { %3934 = vmatpush3.bf16.msra.mxu1 %v3931_v63  ;;  %3448 = vmatprep.mubr.msk.f32.mxu1 %vm5946_vm3, %v5911_v30  ;;  %v943_v63 = vld [vmem:[#allocation8 + $0x198] sm:$0xff]  ;;  %v6105_v2 = vsel %vm1399_vm4, %v1435_v44, %v1436_v16  ;;  %v6115_v40 = vsel %vm1399_vm4, %v1436_v16, %v1438_v12  ;;  %v945_v44 = vld [vmem:[#allocation8 + $0x1a8] sm:$0xff]  ;;  %v717_v16 = vmul.f32 0.7978846, %v697_v7  ;;  %v946_v12 = vld [vmem:[#allocation8 + $0x1b0] sm:$0xff] }
 0x1a8   : > { %3664 = vmatmul.mubr.f32.gmra.mrb[8].mxu0 %v6083_v38  ;;  %3936 = vmatprep.subr.bf16.mxu1 %v3935_v3  ;;  %v3943_v35 = vpack.c.bf16 %v943_v63, %v942_v8  ;;  %v3947_v31 = vpack.c.bf16 %v945_v44, %v944_v20  ;;  %v947_v8 = vld [vmem:[#allocation8 + $0x1b8] sm:$0xff]  ;;  %v1010_v20 = vld [vmem:[#allocation8 + $0x3b0] sm:$0xff] }
 0x1a9   : > { %4054 = vmatpush3.bf16.msra.mxu0 %v4051_v22  ;;  %3666 = vmatprep.mubr.f32.mxu0 %v6088_v5  ;;  %v1949_v22 = vrot.slane %v5971_v15, 2  ;;  %4505 = vtanh.f32 %v717_v16  ;;  %v951_v7 = vld [vmem:[#allocation8 + $0x1d8] sm:$0xff]  ;;  %v1012_v16 = vld [vmem:[#allocation8 + $0x3c0] sm:$0xff] }
 0x1aa   : > { %4056 = vmatprep.subr.bf16.mxu0 %v4055_v48  ;;  %3449 = vmatmul.mubr.f32.gmra.mrb[14].mxu1 %v5926_v49  ;;  %v1011_v44 = vld [vmem:[#allocation8 + $0x3b8] sm:$0xff] }
 0x1ab   : > { %3938 = vmatpush3.bf16.msra.mxu1 %v3935_v3  ;;  %3483 = vmatprep.mubr.f32.mxu1 %v5986_v19  ;;  %v698_v3 = vadd.f32 %v678_v43, %v6051_v56  ;;  %v6120_v19 = vsel %vm1399_vm4, %v1948_v0, %v1949_v22  ;;  %v6127_v47 = vsel %vm1399_vm4, %v1949_v22, %v1951_v45  ;;  %v949_v0 = vld [vmem:[#allocation8 + $0x1c8] sm:$0xff]  ;;  %v1008_v22 = vld [vmem:[#allocation8 + $0x3a0] sm:$0xff] }
 0x1ac   : > { %3667 = vmatmul.mubr.f32.gmra.mrb[10].mxu0 %v6100_v28  ;;  %3940 = vmatprep.subr.bf16.mxu1 %v3939_v60  ;;  %v3951_v43 = vpack.c.bf16 %v947_v8, %v946_v12  ;;  %v4075_v45 = vpack.c.bf16 %v1009_v46, %v1008_v22  ;;  %v1013_v12 = vld [vmem:[#allocation8 + $0x3c8] sm:$0xff]  ;;  %v1014_v22 = vld [vmem:[#allocation8 + $0x3d0] sm:$0xff]  ;;  %v1015_v46 = vld [vmem:[#allocation8 + $0x3d8] sm:$0xff] }
 0x1ad   : > { %4058 = vmatpush3.bf16.msra.mxu0 %v4055_v48  ;;  %3669 = vmatprep.mubr.f32.mxu0 %v6105_v2  ;;  %v1005_v48 = vld [vmem:[#allocation8 + $0x388] sm:$0xff]  ;;  %v718_v63 = vmul.f32 0.7978846, %v698_v3 }
 0x1ae   : > { %4060 = vmatprep.subr.bf16.mxu0 %v4059_v62  ;;  %3484 = vmatmul.mubr.f32.vlgmr.msra.gmra.mrb[0].mxu1 %v5989_v21  ;;  %v4067_v21 = vpack.c.bf16 %v1005_v48, %v1004_v17  ;;  %v953_v17 = vld [vmem:[#allocation8 + $0x1e8] sm:$0xff] }
 0x1af   : > { %3942 = vmatpush3.bf16.msra.mxu1 %v3939_v60  ;;  %3486 = vmatprep.mubr.f32.mxu1 %v5998_v25  ;;  %v1006_v60 = vld [vmem:[#allocation8 + $0x390] sm:$0xff]  ;;  %v1007_v25 = vld [vmem:[#allocation8 + $0x398] sm:$0xff]  ;;  %4507 = vtanh.f32 %v718_v63 }
 0x1b0   : > { %3670 = vmatmul.mubr.f32.gmra.mrb[12].mxu0 %v6115_v40  ;;  %3944 = vmatprep.subr.bf16.mxu1 %v3943_v35 }
 0x1b1   : > { %4062 = vmatpush3.bf16.msra.mxu0 %v4059_v62  ;;  %3672 = vmatprep.mubr.f32.mxu0 %v6120_v19  ;;  %v948_v62 = vld [vmem:[#allocation8 + $0x1c0] sm:$0xff] }
 0x1b2   : > { %4064 = vmatprep.subr.bf16.mxu0 %v4063_v51  ;;  %3487 = vmatmul.mubr.f32.gmra.mrb[2].mxu1 %v6009_v9  ;;  %v4071_v9 = vpack.c.bf16 %v1007_v25, %v1006_v60  ;;  %v3955_v37 = vpack.c.bf16 %v949_v0, %v948_v62  ;;  %v954_v60 = vld [vmem:[#allocation8 + $0x1f0] sm:$0xff]  ;;  %v955_v25 = vld [vmem:[#allocation8 + $0x1f8] sm:$0xff]  ;;  %v618_v0 = vmul.f32 0.5, %v6051_v56  ;;  %v4087_v56 = vpack.c.bf16 %v1015_v46, %v1014_v22 }
 0x1b3   : > { %3946 = vmatpush3.bf16.msra.mxu1 %v3943_v35  ;;  %3489 = vmatprep.mubr.f32.mxu1 %v6015_v29  ;;  %v950_v35 = vld [vmem:[#allocation8 + $0x1d0] sm:$0xff]  ;;  %v4506_v48 = vpop.eup %4505  ;;  %v1027_v46 = vld [vmem:[#allocation8 + $0x438] sm:$0xff] }
 0x1b4   : > { %3673 = vmatmul.mubr.f32.gmra.mrb[14].mxu0 %v6127_v47  ;;  %3948 = vmatprep.subr.bf16.mxu1 %v3947_v31  ;;  %v3959_v3 = vpack.c.bf16 %v951_v7, %v950_v35  ;;  %v757_v62 = vadd.f32 1.0, %v4506_v48  ;;  %v3967_v35 = vpack.c.bf16 %v955_v25, %v954_v60  ;;  %v1021_v7 = vld [vmem:[#allocation8 + $0x408] sm:$0xff]  ;;  %v1022_v48 = vld [vmem:[#allocation8 + $0x410] sm:$0xff]  ;;  %v1019_v60 = vld [vmem:[#allocation8 + $0x3f8] sm:$0xff] }
 0x1b5   : > { %4066 = vmatpush3.bf16.msra.mxu0 %v4063_v51  ;;  %3707 = vmatprep.mubr.msk.f32.mxu0 %vm5946_vm3, %v5676_v27  ;;  %v952_v51 = vld [vmem:[#allocation8 + $0x1e0] sm:$0xff] }
 0x1b6   : > { %4068 = vmatprep.subr.bf16.mxu0 %v4067_v21  ;;  %3490 = vmatmul.mubr.f32.gmra.mrb[4].mxu1 %v6030_v13  ;;  %v3963_v63 = vpack.c.bf16 %v953_v17, %v952_v51 }
 0x1b7   : > { %3950 = vmatpush3.bf16.msra.mxu1 %v3947_v31  ;;  %3492 = vmatprep.mubr.f32.mxu1 %v6034_v10  ;;  %v4079_v31 = vpack.c.bf16 %v1011_v44, %v1010_v20  ;;  %v1016_v44 = vld [vmem:[#allocation8 + $0x3e0] sm:$0xff] }
 0x1b8   : > { %3708 = vmatmul.mubr.f32.vlgmr.msra.gmra.mrb[0].mxu0 %v5701_v54  ;;  %3952 = vmatprep.subr.bf16.mxu1 %v3951_v43 }
 0x1b9   : > { %4070 = vmatpush3.bf16.msra.mxu0 %v4067_v21  ;;  %3710 = vmatprep.mubr.msk.f32.mxu0 %vm5946_vm3, %v5713_v4  ;;  %v4508_v8 = vpop.eup %4507  ;;  %v4083_v21 = vpack.c.bf16 %v1013_v12, %v1012_v16 }
 0x1ba   : > { %4072 = vmatprep.subr.bf16.mxu0 %v4071_v9  ;;  %3493 = vmatmul.mubr.f32.gmra.mrb[6].mxu1 %v6048_v61 }
 0x1bb   : > { %3954 = vmatpush3.bf16.msra.mxu1 %v3951_v43  ;;  %3495 = vmatprep.mubr.f32.mxu1 %v6054_v57  ;;  %v617_v43 = vmul.f32 0.5, %v6044_v18  ;;  %v1020_v18 = vld [vmem:[#allocation8 + $0x400] sm:$0xff] }
 0x1bc   : > { %3711 = vmatmul.mubr.f32.gmra.mrb[2].mxu0 %v5730_v11  ;;  %3956 = vmatprep.subr.bf16.mxu1 %v3955_v37  ;;  %v4099_v17 = vpack.c.bf16 %v1021_v7, %v1020_v18  ;;  %v1031_v18 = vld [vmem:[#allocation8 + $0x458] sm:$0xff] }
 0x1bd   : > { %4074 = vmatpush3.bf16.msra.mxu0 %v4071_v9  ;;  %3713 = vmatprep.mubr.msk.f32.mxu0 %vm5946_vm3, %v5800_v33  ;;  %v758_v9 = vadd.f32 1.0, %v4508_v8 }
 0x1be   : > { %4076 = vmatprep.subr.bf16.mxu0 %v4075_v45  ;;  %3496 = vmatmul.mubr.f32.gmra.mrb[8].mxu1 %v6066_v53 }
 0x1bf   : > { %3958 = vmatpush3.bf16.msra.mxu1 %v3955_v37  ;;  %3498 = vmatprep.mubr.f32.mxu1 %v6071_v42  ;;  %v787_v37 = vstv %s6153_s25  ;;  %v778_v20 = vmul.f32 %v758_v9, %v618_v0  ;;  %v1025_v0 = vld [vmem:[#allocation8 + $0x428] sm:$0xff] }
 0x1c0   : > { %3714 = vmatmul.mubr.f32.gmra.mrb[4].mxu0 %v5822_v58  ;;  %3960 = vmatprep.subr.bf16.mxu1 %v3959_v3  ;;  %vm6168_vm5 = vcmp.eq.s32.totalorder %v787_v37, 1  ;;  %v1028_v37 = vld [vmem:[#allocation8 + $0x440] sm:$0xff] }
 0x1c1   : > { %4078 = vmatpush3.bf16.msra.mxu0 %v4075_v45  ;;  %3716 = vmatprep.mubr.msk.f32.mxu0 %vm5946_vm3, %v5847_v50  ;;  %v777_v45 = vmul.f32 %v757_v62, %v617_v43  ;;  %v790_v8 = vsel %vm6168_vm5, 0.0, %v778_v20  ;;  %v1024_v62 = vld [vmem:[#allocation8 + $0x420] sm:$0xff] }
 0x1c2   : > { %4080 = vmatprep.subr.bf16.mxu0 %v4079_v31  ;;  %3499 = vmatmul.mubr.f32.gmra.mrb[10].mxu1 %v6083_v38  ;;  %v6191_v43 = vrot.slane %v790_v8, 7 }
 0x1c3   : > { %3962 = vmatpush3.bf16.msra.mxu1 %v3959_v3  ;;  %3501 = vmatprep.mubr.f32.mxu1 %v6088_v5  ;;  %v1017_v3 = vld [vmem:[#allocation8 + $0x3e8] sm:$0xff]  ;;  %v789_v12 = vsel %vm6168_vm5, 0.0, %v777_v45  ;;  %v6632_v45 = vld [vmem:[#allocation46_spill] sm:$0xff] }
 0x1c4   : > { %3717 = vmatmul.mubr.f32.gmra.mrb[6].mxu0 %v5862_v23  ;;  %3964 = vmatprep.subr.bf16.mxu1 %v3963_v63  ;;  %v4091_v16 = vpack.c.bf16 %v1017_v3, %v1016_v44  ;;  %v6189_v25 = vrot.slane %v789_v12, 7 }
 0x1c5   : > { %4082 = vmatpush3.bf16.msra.mxu0 %v4079_v31  ;;  %3719 = vmatprep.mubr.msk.f32.mxu0 %vm5946_vm3, %v5893_v41  ;;  %v1023_v31 = vld [vmem:[#allocation8 + $0x418] sm:$0xff] }
 0x1c6   : > { %4084 = vmatprep.subr.bf16.mxu0 %v4083_v21  ;;  %3502 = vmatmul.mubr.f32.gmra.mrb[12].mxu1 %v6100_v28  ;;  %v6204_v22 = vsel %vm811_vm0, %v6189_v25, %v6191_v43 }
 0x1c7   : > { %3966 = vmatpush3.bf16.msra.mxu1 %v3963_v63  ;;  %3504 = vmatprep.mubr.f32.mxu1 %v6105_v2  ;;  %v1018_v63 = vld [vmem:[#allocation8 + $0x3f0] sm:$0xff] }
 0x1c8   : > { %3720 = vmatmul.mubr.f32.gmra.mrb[8].mxu0 %v5904_v52  ;;  %3968 = vmatprep.subr.bf16.mxu1 %v3967_v35  ;;  %v4095_v9 = vpack.c.bf16 %v1019_v60, %v1018_v63 }
 0x1c9   : > { %4086 = vmatpush3.bf16.msra.mxu0 %v4083_v21  ;;  %3722 = vmatprep.mubr.msk.f32.mxu0 %vm5946_vm3, %v5911_v30  ;;  %v4103_v21 = vpack.c.bf16 %v1023_v31, %v1022_v48 }
 0x1ca   : > { %4088 = vmatprep.subr.bf16.mxu0 %v4087_v56  ;;  %3505 = vmatmul.mubr.f32.gmra.mrb[14].mxu1 %v6115_v40 }
 0x1cb   : > { %3970 = vmatpush3.bf16.msra.mxu1 %v3967_v35  ;;  %3539 = vmatprep.mubr.msk.f32.mxu1 %vm5946_vm3, %v5644_v1  ;;  %v4107_v1 = vpack.c.bf16 %v1025_v0, %v1024_v62  ;;  %v1029_v35 = vld [vmem:[#allocation8 + $0x448] sm:$0xff] }
 0x1cc   : > { %3723 = vmatmul.mubr.f32.gmra.mrb[10].mxu0 %v5926_v49  ;;  %4131 = vmatprep.subr.bf16.mxu1 %v4099_v17 }
 0x1cd   : > { %4090 = vmatpush3.bf16.msra.mxu0 %v4087_v56  ;;  %3725 = vmatprep.mubr.msk.f32.mxu0 %vm5946_vm3, %v5957_v32  ;;  %v2448_v56 = vrot.slane %v6204_v22, 2 }
 0x1ce   : > { %4092 = vmatprep.subr.bf16.mxu0 %v4091_v16  ;;  %3540 = vmatmul.mubr.f32.vlgmr.msra.gmra.mrb[0].mxu1 %v5659_v59  ;;  %v1026_v59 = vld [vmem:[#allocation8 + $0x430] sm:$0xff] }
 0x1cf   : > { %4139 = vmatpush3.bf16.msra.mxu1 %v4099_v17  ;;  %3542 = vmatprep.mubr.msk.f32.mxu1 %vm5946_vm3, %v5676_v27  ;;  %v4111_v27 = vpack.c.bf16 %v1027_v46, %v1026_v59 }
 0x1d0   : > { %3726 = vmatmul.mubr.f32.gmra.mrb[12].mxu0 %v5971_v15  ;;  %4132 = vmatprep.subr.bf16.mxu1 %v4103_v21 }
 0x1d1   : > { %4094 = vmatpush3.bf16.msra.mxu0 %v4091_v16  ;;  %3728 = vmatprep.mubr.msk.f32.mxu0 %vm5946_vm3, %v6189_v25 }
 0x1d2   : > { %4096 = vmatprep.subr.bf16.mxu0 %v4095_v9  ;;  %3543 = vmatmul.mubr.f32.gmra.mrb[2].mxu1 %v5701_v54  ;;  %v4115_v54 = vpack.c.bf16 %v1029_v35, %v1028_v37 }
 0x1d3   : > { %4140 = vmatpush3.bf16.msra.mxu1 %v4103_v21  ;;  %3545 = vmatprep.mubr.msk.f32.mxu1 %vm5946_vm3, %v5713_v4  ;;  %v1030_v4 = vld [vmem:[#allocation8 + $0x450] sm:$0xff] }
 0x1d4   : > { %3729 = vmatmul.mubr.f32.gmra.mrb[14].mxu0 %v6204_v22  ;;  %4133 = vmatprep.subr.bf16.mxu1 %v4107_v1 }
 0x1d5   : > { %4098 = vmatpush3.bf16.msra.mxu0 %v4095_v9  ;;  %3763 = vmatprep.mubr.f32.mxu0 %v5718_v24  ;;  %v4119_v24 = vpack.c.bf16 %v1031_v18, %v1030_v4 }
 0x1d6   : > { %4100 = vmatprep.subr.bf16.mxu0 %v4099_v17  ;;  %3546 = vmatmul.mubr.f32.gmra.mrb[4].mxu1 %v5730_v11  ;;  %v1033_v11 = vld [vmem:[#allocation8 + $0x468] sm:$0xff] }
 0x1d7   : > { %4141 = vmatpush3.bf16.msra.mxu1 %v4107_v1  ;;  %3548 = vmatprep.mubr.msk.f32.mxu1 %vm5946_vm3, %v5800_v33  ;;  %v1035_v33 = vld [vmem:[#allocation8 + $0x478] sm:$0xff] }
 0x1d8   : > { %3764 = vmatmul.mubr.f32.vlgmr.msra.gmra.mrb[0].mxu0 %v5721_v6  ;;  %4134 = vmatprep.subr.bf16.mxu1 %v4111_v27  ;;  %v1032_v6 = vld [vmem:[#allocation8 + $0x460] sm:$0xff] }
 0x1d9   : > { %4102 = vmatpush3.bf16.msra.mxu0 %v4099_v17  ;;  %3766 = vmatprep.mubr.f32.mxu0 %v5757_v36  ;;  %v4123_v36 = vpack.c.bf16 %v1033_v11, %v1032_v6 }
 0x1da   : > { %4104 = vmatprep.subr.bf16.mxu0 %v4103_v21  ;;  %3549 = vmatmul.mubr.f32.gmra.mrb[6].mxu1 %v5822_v58  ;;  %v6626_v58 = vld [vmem:[#allocation40_spill] sm:$0xff] }
 0x1db   : > { %4142 = vmatpush3.bf16.msra.mxu1 %v4111_v27  ;;  %3551 = vmatprep.mubr.msk.f32.mxu1 %vm5946_vm3, %v5847_v50  ;;  %v881_v50 = vsel %vm811_vm0, 0.0, %v6189_v25 }
 0x1dc   : > { %3767 = vmatmul.mubr.f32.gmra.mrb[2].mxu0 %v5760_v39  ;;  %4135 = vmatprep.subr.bf16.mxu1 %v4115_v54  ;;  %v1034_v39 = vld [vmem:[#allocation8 + $0x470] sm:$0xff] }
 0x1dd   : > { %4106 = vmatpush3.bf16.msra.mxu0 %v4103_v21  ;;  %3769 = vmatprep.mubr.f32.mxu0 %v5836_v14  ;;  %v4127_v14 = vpack.c.bf16 %v1035_v33, %v1034_v39 }
 0x1de   : > { %4108 = vmatprep.subr.bf16.mxu0 %v4107_v1  ;;  %3552 = vmatmul.mubr.f32.gmra.mrb[8].mxu1 %v5862_v23  ;;  %v6628_v23 = vld [vmem:[#allocation42_spill] sm:$0xff] }
 0x1df   : > { %4143 = vmatpush3.bf16.msra.mxu1 %v4115_v54  ;;  %3554 = vmatprep.mubr.msk.f32.mxu1 %vm5946_vm3, %v5893_v41  ;;  %v2280_v41 = vrot.slane %v6204_v22, 1 }
 0x1e0   : > { %3770 = vmatmul.mubr.f32.gmra.mrb[4].mxu0 %v5839_v26  ;;  %4136 = vmatprep.subr.bf16.mxu1 %v4119_v24  ;;  %v6627_v26 = vld [vmem:[#allocation41_spill] sm:$0xff] }
 0x1e1   : > { %4110 = vmatpush3.bf16.msra.mxu0 %v4107_v1  ;;  %3772 = vmatprep.mubr.f32.mxu0 %v5880_v55  ;;  %v6629_v55 = vld [vmem:[#allocation43_spill] sm:$0xff] }
 0x1e2   : > { %4112 = vmatprep.subr.bf16.mxu0 %v4111_v27  ;;  %3555 = vmatmul.mubr.f32.gmra.mrb[10].mxu1 %v5904_v52  ;;  %v2279_v52 = vrot.slane %v881_v50, 1 }
 0x1e3   : > { %4144 = vmatpush3.bf16.msra.mxu1 %v4119_v24  ;;  %3557 = vmatprep.mubr.msk.f32.mxu1 %vm5946_vm3, %v5911_v30  ;;  %v891_v30 = vsel %vm811_vm0, %v6191_v43, 0.0 }
 0x1e4   : > { %3773 = vmatmul.mubr.f32.gmra.mrb[6].mxu0 %v6626_v58  ;;  %4137 = vmatprep.subr.bf16.mxu1 %v4123_v36  ;;  %v2281_v7 = vsel %vm1052_vm2, %v2279_v52, %v2280_v41  ;;  %v2450_v20 = vrot.slane %v891_v30, 2 }
 0x1e5   : > { %4114 = vmatpush3.bf16.msra.mxu0 %v4111_v27  ;;  %3775 = vmatprep.mubr.f32.mxu0 %v6627_v26 }
 0x1e6   : > { %4116 = vmatprep.subr.bf16.mxu0 %v4115_v54  ;;  %3558 = vmatmul.mubr.f32.gmra.mrb[12].mxu1 %v5926_v49  ;;  %v6630_v49 = vld [vmem:[#allocation44_spill] sm:$0xff] }
 0x1e7   : > { %4145 = vmatpush3.bf16.msra.mxu1 %v4123_v36  ;;  %3560 = vmatprep.mubr.msk.f32.mxu1 %vm5946_vm3, %v5957_v32  ;;  %v2282_v32 = vrot.slane %v891_v30, 1 }
 0x1e8   : > { %3776 = vmatmul.mubr.f32.gmra.mrb[8].mxu0 %v6628_v23  ;;  %4138 = vmatprep.subr.bf16.mxu1 %v4127_v14 }
 0x1e9   : > { %4118 = vmatpush3.bf16.msra.mxu0 %v4115_v54  ;;  %3778 = vmatprep.mubr.f32.mxu0 %v6629_v55 }
 0x1ea   : > { %4120 = vmatprep.subr.bf16.mxu0 %v4119_v24  ;;  %3561 = vmatmul.mubr.f32.gmra.mrb[14].mxu1 %v5971_v15  ;;  %v2447_v15 = vrot.slane %v881_v50, 2 }
 0x1eb   : > { %4146 = vmatpush3.bf16.msra.mxu1 %v4127_v14  ;;  %3831 = vmatprep.mubr.f32.mxu1 %v6088_v5  ;;  %v2283_v5 = vsel %vm1052_vm2, %v2280_v41, %v2282_v32 }
 0x1ec   : > { %3779 = vmatmul.mubr.f32.gmra.mrb[10].mxu0 %v6630_v49 }
 0x1ed   : > { %4122 = vmatpush3.bf16.msra.mxu0 %v4119_v24  ;;  %3781 = vmatprep.mubr.f32.mxu0 %v6631_v34 }
 0x1ee   : > { %4124 = vmatprep.subr.bf16.mxu0 %v4123_v36  ;;  %3832 = vmatmul.mubr.f32.vlgmr.msra.gmra.mrb[16].mxu1 %v6100_v28  ;;  %v2449_v28 = vsel %vm1399_vm4, %v2447_v15, %v2448_v56 }
 0x1ef   : > { %3834 = vmatprep.mubr.f32.mxu1 %v6105_v2  ;;  %v2451_v2 = vsel %vm1399_vm4, %v2448_v56, %v2450_v20 }
 0x1f0   : > { %3782 = vmatmul.mubr.f32.gmra.mrb[12].mxu0 %v6632_v45 }
 0x1f1   : > { %4126 = vmatpush3.bf16.msra.mxu0 %v4123_v36  ;;  %3784 = vmatprep.mubr.f32.mxu0 %v2281_v7 }
 0x1f2   : > { %4128 = vmatprep.subr.bf16.mxu0 %v4127_v14  ;;  %3835 = vmatmul.mubr.f32.gmra.mrb[18].mxu1 %v6115_v40 }
 0x1f3   : > { %3837 = vmatprep.mubr.f32.mxu1 %v6120_v19 }
 0x1f4   : > { %3785 = vmatmul.mubr.f32.gmra.mrb[14].mxu0 %v2283_v5 }
 0x1f5   : > { %4130 = vmatpush3.bf16.msra.mxu0 %v4127_v14  ;;  %3819 = vmatprep.mubr.f32.mxu0 %v6015_v29 }
 0x1f6   : > { %3838 = vmatmul.mubr.f32.gmra.mrb[20].mxu1 %v6127_v47 }
 0x1f7   : > { %3840 = vmatprep.mubr.f32.mxu1 %v2449_v28 }
 0x1f8   : > { %3820 = vmatmul.mubr.f32.vlgmr.msra.gmra.mrb[0].mxu0 %v6030_v13 }
 0x1f9   : > { %3822 = vmatprep.mubr.f32.mxu0 %v6034_v10 }
 0x1fa   : > { %3841 = vmatmul.mubr.f32.gmra.mrb[22].mxu1 %v2451_v2 }
 0x1fc   : > { %3823 = vmatmul.mubr.f32.gmra.mrb[2].mxu0 %v6048_v61 }
 0x1fd   : > { %3825 = vmatprep.mubr.f32.mxu0 %v6054_v57 }
 0x200   : > { %3826 = vmatmul.mubr.f32.gmra.mrb[4].mxu0 %v6066_v53 }
 0x201   : > { %3828 = vmatprep.mubr.f32.mxu0 %v6071_v42 }
 0x204   : > { %3829 = vmatmul.mubr.f32.gmra.mrb[6].mxu0 %v6083_v38 }
 0x2a1   : > { %v3541_v29 = vpop.f32.mrb[0].mxu1 }
 0x2a2   : > { %v1683_v40 = vpop.f32.mrb[1].mxu1 }
 0x2a5   : > { %v6270_v19 = vpop.f32.mrb[2].mxu1 }
 0x2a6   : > { %v6272_v47 = vpop.f32.mrb[3].mxu1 }
 0x2a9   : > { %v6274_v13 = vpop.f32.mrb[4].mxu1 }
 0x2aa   : > { %v6276_v10 = vpop.f32.mrb[5].mxu1 }
 0x2ad   : > { %v6278_v44 = vpop.f32.mrb[6].mxu1 }
 0x2ae   : > { %v6280_v61 = vpop.f32.mrb[7].mxu1 }
 0x2b1   : > { %v3553_v57 = vpop.f32.mrb[8].mxu1 }
 0x2b2   : > { %v1723_v53 = vpop.f32.mrb[9].mxu1 }
 0x2b5   : > { %v3556_v3 = vpop.f32.mrb[10].mxu1 }
 0x2b6   : > { %v1733_v42 = vpop.f32.mrb[11].mxu1 }
 0x2b9   : > { %v3559_v51 = vpop.f32.mrb[12].mxu1 }
 0x2ba   : > { %v1743_v38 = vpop.f32.mrb[13].mxu1 }
 0x2bb   : > { %v3777_v17 = vpop.f32.mrb[8].mxu0 }
 0x2bc   : > { %v4155_v48 = vadd.f32 %v3777_v17, %v3553_v57  ;;  %v2392_v31 = vpop.f32.mrb[9].mxu0 }
 0x2bd   : > { %v4157_v16 = vadd.f32 %v2392_v31, %v1723_v53  ;;  %v3562_v12 = vpop.f32.mrb[14].mxu1 }
 0x2be   : > { %v1753_v8 = vpop.f32.mrb[15].mxu1 }
 0x2bf   : > { %v3780_v63 = vpop.f32.mrb[10].mxu0 }
 0x2c0   : > { %v4159_v60 = vadd.f32 %v3780_v63, %v3556_v3  ;;  %v2402_v21 = vpop.f32.mrb[11].mxu0 }
 0x2c1   : > { %v4161_v25 = vadd.f32 %v2402_v21, %v1733_v42  ;;  %v3833_v43 = vpop.f32.mrb[16].mxu1 }
 0x2c2   : > { %v6282_v62 = vadd.f32 %v4155_v48, %v3833_v43  ;;  %v2560_v0 = vpop.f32.mrb[17].mxu1 }
 0x2c3   : > { %v3783_v9 = vpop.f32.mrb[12].mxu0  ;;  %v6284_v1 = vadd.f32 %v4157_v16, %v2560_v0 }
 0x2c4   : > { %v4163_v22 = vadd.f32 %v3783_v9, %v3559_v51  ;;  %v2412_v59 = vpop.f32.mrb[13].mxu0  ;;  %2692 = vst [vmem:[%s6288_s20 + $0x48] sm:$0xff] %v6282_v62  ;;  %v2648_v0 = vmul.f32 %v6282_v62, %v6282_v62 }
 0x2c5   : > { %v4165_v46 = vadd.f32 %v2412_v59, %v1743_v38  ;;  %2691 = vst [vmem:[%s6288_s20 + $0x40] sm:$0xff] %v6284_v1  ;;  %v3836_v27 = vpop.f32.mrb[18].mxu1 }
 0x2c6   : > { %v6294_v37 = vadd.f32 %v4159_v60, %v3836_v27  ;;  %v2570_v35 = vpop.f32.mrb[19].mxu1 }
 0x2c7   : > { %v3786_v54 = vpop.f32.mrb[14].mxu0  ;;  %v6296_v4 = vadd.f32 %v4161_v25, %v2570_v35  ;;  %v2647_v25 = vmul.f32 %v6284_v1, %v6284_v1 }
 0x2c8   : > { %v4167_v18 = vadd.f32 %v3786_v54, %v3562_v12  ;;  %v2422_v24 = vpop.f32.mrb[15].mxu0  ;;  %2694 = vst [vmem:[%s6288_s20 + $0x58] sm:$0xff] %v6294_v37  ;;  %v2650_v27 = vmul.f32 %v6294_v37, %v6294_v37 }
 0x2c9   : > { %v4169_v6 = vadd.f32 %v2422_v24, %v1753_v8  ;;  %2693 = vst [vmem:[%s6288_s20 + $0x50] sm:$0xff] %v6296_v4  ;;  %v3839_v11 = vpop.f32.mrb[20].mxu1 }
 0x2ca   : > { %v6302_v36 = vadd.f32 %v4163_v22, %v3839_v11  ;;  %v2580_v39 = vpop.f32.mrb[21].mxu1  ;;  %v2649_v22 = vmul.f32 %v6296_v4, %v6296_v4 }
 0x2cb   : > { %v3821_v33 = vpop.f32.mrb[0].mxu0  ;;  %v6304_v58 = vadd.f32 %v4165_v46, %v2580_v39 }
 0x2cc   : > { %v4147_v14 = vadd.f32 %v3821_v33, %v3541_v29  ;;  %v2520_v26 = vpop.f32.mrb[1].mxu0  ;;  %2696 = vst [vmem:[%s6288_s20 + $0x68] sm:$0xff] %v6302_v36  ;;  %v2652_v24 = vmul.f32 %v6302_v36, %v6302_v36 }
 0x2cd   : > { %v4148_v50 = vadd.f32 %v2520_v26, %v1683_v40  ;;  %2695 = vst [vmem:[%s6288_s20 + $0x60] sm:$0xff] %v6304_v58  ;;  %v3842_v23 = vpop.f32.mrb[22].mxu1 }
 0x2ce   : > { %v2640_v55 = vmul.f32 %v4147_v14, %v4147_v14  ;;  %2684 = vst [vmem:[%s6288_s20 + $0x8] sm:$0xff] %v4147_v14  ;;  %v6311_v41 = vadd.f32 %v4167_v18, %v3842_v23  ;;  %v2590_v52 = vpop.f32.mrb[23].mxu1 }
 0x2cf   : > { %v2615_v30 = vadd.f32 %v4148_v50, %v4147_v14  ;;  %v2639_v49 = vmul.f32 %v4148_v50, %v4148_v50  ;;  %2683 = vst [vmem:[%s6288_s20] sm:$0xff] %v4148_v50  ;;  %v3824_v34 = vpop.f32.mrb[2].mxu0  ;;  %v4170_v32 = vadd.f32 %v4169_v6, %v2590_v52 }
 0x2d0   : > { %v4149_v7 = vadd.f32 %v3824_v34, %v6270_v19  ;;  %v2530_v56 = vpop.f32.mrb[3].mxu0  ;;  %2698 = vst [vmem:[%s6288_s20 + $0x78] sm:$0xff] %v6311_v41  ;;  %v2654_v14 = vmul.f32 %v6311_v41, %v6311_v41 }
 0x2d1   : > { %v2655_v45 = vadd.f32 %v2640_v55, %v2639_v49  ;;  %v4150_v15 = vadd.f32 %v2530_v56, %v6272_v47  ;;  %2697 = vst [vmem:[%s6288_s20 + $0x70] sm:$0xff] %v4170_v32  ;;  %v2653_v11 = vmul.f32 %v4170_v32, %v4170_v32 }
 0x2d2   : > { %2686 = vst [vmem:[%s6288_s20 + $0x18] sm:$0xff] %v4149_v7  ;;  %v2642_v40 = vmul.f32 %v4149_v7, %v4149_v7 }
 0x2d3   : > { %v2616_v5 = vadd.f32 %v4150_v15, %v2615_v30  ;;  %v2641_v20 = vmul.f32 %v4150_v15, %v4150_v15  ;;  %2685 = vst [vmem:[%s6288_s20 + $0x10] sm:$0xff] %v4150_v15  ;;  %v3827_v28 = vpop.f32.mrb[4].mxu0 }
 0x2d4   : > { %v4151_v2 = vadd.f32 %v3827_v28, %v6274_v13  ;;  %v2540_v29 = vpop.f32.mrb[5].mxu0 }
 0x2d5   : > { %v2656_v19 = vadd.f32 %v2655_v45, %v2641_v20  ;;  %v4152_v57 = vadd.f32 %v2540_v29, %v6276_v10  ;;  %v2617_v53 = vadd.f32 %v4149_v7, %v2616_v5 }
 0x2d6   : > { %2688 = vst [vmem:[%s6288_s20 + $0x28] sm:$0xff] %v4151_v2  ;;  %v2644_v48 = vmul.f32 %v4151_v2, %v4151_v2 }
 0x2d7   : > { %v2618_v3 = vadd.f32 %v4152_v57, %v2617_v53  ;;  %v2643_v47 = vmul.f32 %v4152_v57, %v4152_v57  ;;  %v2657_v42 = vadd.f32 %v2656_v19, %v2642_v40  ;;  %2687 = vst [vmem:[%s6288_s20 + $0x20] sm:$0xff] %v4152_v57  ;;  %v3830_v51 = vpop.f32.mrb[6].mxu0 }
 0x2d8   : > { %v4153_v38 = vadd.f32 %v3830_v51, %v6278_v44  ;;  %v2550_v17 = vpop.f32.mrb[7].mxu0 }
 0x2d9   : > { %v2658_v31 = vadd.f32 %v2657_v42, %v2643_v47  ;;  %v4154_v13 = vadd.f32 %v2550_v17, %v6280_v61  ;;  %v2619_v16 = vadd.f32 %v4151_v2, %v2618_v3 }
 0x2da   : > { %2690 = vst [vmem:[%s6288_s20 + $0x38] sm:$0xff] %v4153_v38  ;;  %v2646_v63 = vmul.f32 %v4153_v38, %v4153_v38 }
 0x2db   : > { %v2620_v12 = vadd.f32 %v4154_v13, %v2619_v16  ;;  %v2645_v8 = vmul.f32 %v4154_v13, %v4154_v13  ;;  %v2659_v10 = vadd.f32 %v2658_v31, %v2644_v48  ;;  %2689 = vst [vmem:[%s6288_s20 + $0x30] sm:$0xff] %v4154_v13 }
 0x2dd   : > { %v2621_v60 = vadd.f32 %v4153_v38, %v2620_v12  ;;  %v2660_v21 = vadd.f32 %v2659_v10, %v2645_v8 }
 0x2df   : > { %v2622_v43 = vadd.f32 %v6284_v1, %v2621_v60  ;;  %v2661_v44 = vadd.f32 %v2660_v21, %v2646_v63  ;;  %v2651_v1 = vmul.f32 %v6304_v58, %v6304_v58 }
 0x2e1   : > { %v2623_v61 = vadd.f32 %v6282_v62, %v2622_v43  ;;  %v2662_v9 = vadd.f32 %v2661_v44, %v2647_v25 }
 0x2e3   : > { %v2663_v59 = vadd.f32 %v2662_v9, %v2648_v0  ;;  %v2624_v46 = vadd.f32 %v6296_v4, %v2623_v61 }
 0x2e5   : > { %v2625_v35 = vadd.f32 %v6294_v37, %v2624_v46  ;;  %v2664_v54 = vadd.f32 %v2663_v59, %v2649_v22 }
 0x2e7   : > { %v2626_v62 = vadd.f32 %v6304_v58, %v2625_v35  ;;  %v2665_v18 = vadd.f32 %v2664_v54, %v2650_v27 }
 0x2e9   : > { %v2627_v4 = vadd.f32 %v6302_v36, %v2626_v62  ;;  %v2666_v6 = vadd.f32 %v2665_v18, %v2651_v1 }
 0x2eb   : > { %v2628_v39 = vadd.f32 %v4170_v32, %v2627_v4  ;;  %v2667_v37 = vadd.f32 %v2666_v6, %v2652_v24 }
 0x2ed   : > { %v2629_v33 = vadd.f32 %v6311_v41, %v2628_v39  ;;  %v2668_v26 = vadd.f32 %v2667_v37, %v2653_v11 }
 0x2ef   : > { %2630 = vadd.xlane.f32.xlu0 %v2629_v33  ;;  %v2669_v58 = vadd.f32 %v2668_v26, %v2654_v14 }
 0x2f3   : > { %2670 = vadd.xlane.f32.xlu0 %v2669_v58 }
 0x2f4   : > { %4702 = shalt.err (!%p4699_p9)
}
 0x2f5   : > { %s4703_s15 = scalar_lea.hbm %s6356_s23, 2048  ;;  %s4707_s20 = scalar_lea.hbm %s6635_s4, 8192 }
 0x2f6   : > { %p4704_p5 = scmp.ne.s32.totalorder %s6356_s23, %s4703_s15  ;;  %p4708_p2 = scmp.lt.u32.totalorder %s6356_s23, %s6635_s4 }
 0x2f7   : > { %p4709_p4 = scmp.lt.u32.totalorder %s4707_s20, %s4703_s15  ;;  %p4711_p7 = scmp.lt.u32.totalorder %s4703_s15, %s6356_s23 }
 0x2f8   : > { %p4705_p12 = pnand %p4704_p5, %p6636_p1 }
 0x2f9   : > { %p4710_p8 = por %p4709_p4, %p4708_p2 }
 0x2fa   : > { %p4706_p0 = pneg %p4705_p12 }
 0x2fb   : > { %p4712_p10 = por %p4711_p7, %p4710_p8 }
 0x2fd   : > { %p4713_p6 = pnand %p4712_p10, %p4706_p0 }
 0x2ff   : > { %4716 = shalt.err (!%p4713_p6)
}
 0x300   : > { %s4922_s27 = smov 128   ;;  %s4923_s13 = smov 8  }
 0x301   : > { %4293 = dma.vmem_to_hbm [thread:$0]  (%p6636_p1), %s6358_s1, 2048, %s6356_s23, %s2700_s19, %s4922_s27, %s4922_s27, %s4923_s13  }
 0x302   : > { %s2988_s1 = sshll.u32 %s5445_s3, 1  ;;  %s3045_s12 = sshll.u32 %s6633_s7, 1 }
 0x303   : > { %s2735_s6 = sadd.s32 %s6612_s0, %s3045_s12  ;;  %s514_s23 = scalar_lea.vmem [#allocation13], %s2988_s1 }
 0x304   : > { %s2739_s19 = sshll.u32 %s514_s23, 4  ;;  %s3046_s24 = sshll.u32 %s2735_s6, 5  ;;  %s6392_s19 = int_to_ptr.vmem [resolvable:$true] %s2739_s19 }
 0x305   : > { %s6637_s22 = sld [smem:[#allocation54_spill]]  ;;  %s2705_s0 = scalar_lea.sflag [#allocation14], %s5445_s3 }
 0x306   : > { %s4717_s7 = scalar_lea.vmem %s6392_s19, 32  ;;  %s4924_s20 = smov [#allocation13]  }
 0x307   : > { %p4718_p11 = scmp.ne.s32.totalorder %s6392_s19, %s4717_s7  ;;  %s4721_s14 = sshll.u32 %s4924_s20, 4  ;;  %s4722_s14 = int_to_ptr.vmem [resolvable:$false] %s4721_s14 }
 0x308   : > { %s4723_s10 = scalar_lea.vmem %s4722_s14, 64  ;;  %p4724_p9 = scmp.lt.s32.totalorder %s6392_s19, %s4722_s14 }
 0x309   : > { %p4719_p3 = pnand %p4718_p11, %p6636_p1  ;;  %p4725_p5 = scmp.lt.s32.totalorder %s4723_s10, %s4717_s7 }
 0x30b   : > { %s6390_s25 = scalar_lea.hbm %s6637_s22, %s3046_s24  ;;  %p4720_p13 = pneg %p4719_p3 }
 0x30c   : > { %p4726_p12 = por %p4725_p5, %p4724_p9 }
 0x30e   : > { %p4727_p0 = pnand %p4726_p12, %p4720_p13 }
 0x37c   : > { %v2631_v36 = vpop.xlane.xlu0 %2630 }
 0x37d   : > { %v2632_v50 = vrot.slane %v2631_v36, 4 }
 0x37f   : > { %v2633_v23 = vadd.f32 %v2632_v50, %v2631_v36 }
 0x380   : > { %v2671_v55 = vpop.xlane.xlu0 %2670 }
 0x381   : > { %v2634_v41 = vrot.slane %v2633_v23, 2  ;;  %v2672_v52 = vrot.slane %v2671_v55, 4 }
 0x383   : > { %v2673_v30 = vadd.f32 %v2672_v52, %v2671_v55  ;;  %v2635_v49 = vadd.f32 %v2634_v41, %v2633_v23 }
 0x385   : > { %v2674_v34 = vrot.slane %v2673_v30, 2  ;;  %v2636_v32 = vrot.slane %v2635_v49, 1 }
 0x387   : > { %v2675_v7 = vadd.f32 %v2674_v34, %v2673_v30  ;;  %v2637_v56 = vadd.f32 %v2636_v32, %v2635_v49 }
 0x389   : > { %4275 = vpush %v2637_v56  ;;  %v2676_v45 = vrot.slane %v2675_v7, 1 }
 0x38b   : > { %v2677_v15 = vadd.f32 %v2676_v45, %v2675_v7 }
 0x38d   : > { %4277 = vpush %v2677_v15 }
 0x3ba   : > { %s4276_s8 = spop %4275 }
 0x3bb   : > { %v2679_v5 = vstv %s4276_s8 }
 0x3be   : > { %s4278_s30 = spop %4277 }
 0x3bf   : > { %v2680_v20 = vstv %s4278_s30 }
 0x3c0   : > { %v2681_v28 = vsel %vm811_vm0, %v2679_v5, %v2680_v20 }
 0x3c1   : > { %2682 = vst [vmem:[%s514_s23] sm:$0x3] %v2681_v28 }
 0x3c2   : > { %4730 = shalt.err (!%p4727_p0)
}
 0x3c3   : > { %s4731_s3 = scalar_lea.hbm %s6390_s25, 32  ;;  %s4735_s1 = scalar_lea.hbm %s6637_s22, 128 }
 0x3c4   : > { %p4732_p2 = scmp.ne.s32.totalorder %s6390_s25, %s4731_s3  ;;  %p4736_p7 = scmp.lt.u32.totalorder %s6390_s25, %s6637_s22 }
 0x3c5   : > { %p4737_p10 = scmp.lt.u32.totalorder %s4735_s1, %s4731_s3  ;;  %p4739_p11 = scmp.lt.u32.totalorder %s4731_s3, %s6390_s25 }
 0x3c6   : > { %p4733_p4 = pnand %p4732_p2, %p6636_p1 }
 0x3c7   : > { %p4738_p6 = por %p4737_p10, %p4736_p7 }
 0x3c8   : > { %p4734_p8 = pneg %p4733_p4 }
 0x3c9   : > { %p4740_p3 = por %p4739_p11, %p4738_p6 }
 0x3cb   : > { %p4741_p13 = pnand %p4740_p3, %p4734_p8 }
 0x3cd   : > { %4744 = shalt.err (!%p4741_p13)
}
 0x3ce   : > { %4294 = dma.vmem_to_hbm [thread:$0]  (%p6636_p1), %s6392_s19, 32, %s6390_s25, %s2705_s0  }
 0x3cf PF: > { %s6638_s23 = sld [smem:[#allocation26_spill]]  ;;  %s6639_s8 = sld [smem:[#allocation37_spill]] }
 0x3d0   : > { %p4327_p9 = scmp.ge.s32.totalorder %s4911_s17, 2 }
 0x3d5   : > { %s2751_s24 = sand.u32 1, %s6638_s23   ;;  %p6640_p5 = scmp.ne.s32.totalorder %s6639_s8, 0 }
 0x3d6   : > { %s2752_s30 = scalar_lea.sflag [#allocation4], %s2751_s24 }
 0x3d7   : > { %p4318_p12 = pnand %p4327_p9, %p6640_p5 }
 0x3d9   : > { %4838 = dma.done.wait (!%p4318_p12), %s2752_s30, 2048  }
 0x3da   : > { %4840 = vsyncadd (!%p4318_p12), %s2752_s30, 4294965248  ;;  %s2761_s9 = scalar_lea.sflag [#allocation14], %s2751_s24 }
 0x3db   : > { %4842 = dma.done.wait (!%p4318_p12), %s2761_s9, 32  }
 0x3dc   : > { %4844 = vsyncadd (!%p4318_p12), %s2761_s9, 4294967264  ;;  %s31_s17 = sadd.s32 1, %s4911_s17   ;;  %s6642_s24 = sld [smem:[#allocation24_spill]] }
 0x3dd   : > { %p6422_p0 = scmp.ge.s32.totalorder %s31_s17, 6   ;;  %s6643_s25 = sld [smem:[#allocation25_spill]] }
 0x3de   : > { %s6644_s19 = smov %s5240_s26  ;;  %s6645_s30 = sld [smem:[#allocation27_spill]] }
 0x3df   : > { %s6646_s8 = sld [smem:[#allocation28_spill]]  ;;  %s6647_s9 = sld [smem:[#allocation38_spill]] }
 0x3e0   : > { %s6648_s15 = sld [smem:[#allocation29_spill]]  ;;  %s6649_s12 = sld [smem:[#allocation39_spill]] }
 0x3e1   : > { %s6650_s13 = sld [smem:[#allocation32_spill]]  ;;  %s6651_s0 = sld [smem:[#allocation34_spill]] }
 0x3e2   : > { %s6652_s7 = sld [smem:[#allocation35_spill]]  ;;  %s6653_s26 = smov %s5353_s5 }
 0x3e3   : > { %s6654_s27 = smov %s4863_s28  ;;  %s6655_s28 = smov %s4867_s29 }
 0x3e4   : > { %s6656_s29 = smov %s6644_s19  ;;  %s6657_s10 = smov %s4887_s11 }
 0x3e5   : > { %s6659_s14 = smov %s4907_s16  ;;  %30 = sbr.rel (!%p6422_p0) target bundleno = 26 (0x1a), region = 156 }
 0x3e6   : > { %s6658_s11 = smov %s6648_s15 }
 0x3e7   : > { %s6660_s15 = smov %s6651_s0 }
 0x3e8   : > { %s6661_s16 = smov %s6652_s7 }
 0x3ec   :  { %2766 = vsyncpa [#allocation3], 1 }
 0x3ed   :  { %2768 = vsyncpa [#allocation3 + $0x1], 1 }
 0x3ee   :  { %2769 = vsyncpa [#allocation6], 1 }
 0x3ef   :  { %2771 = vsyncpa [#allocation6 + $0x1], 1 }
 0x3f0   :  { %2772 = vsyncpa [#allocation9], 1 }
 0x3f1   :  { %2773 = vsyncpa [#allocation4], 1 }
 0x3f2   :  { %2775 = vsyncpa [#allocation4 + $0x1], 1 }
 0x3f3   :  { %2776 = vsyncpa [#allocation14], 1 }
 0x3f4   :  { %2778 = vsyncpa [#allocation14 + $0x1], 1 }

</bundles_post_ra>
